<compile_context>
chip_gen: v7x
topology: tpu7x:2x2x1
jax: 0.10.0
libtpu: 0.0.40
codegen_flags: <defaults>
</compile_context>

<pallas_src>
import math
import functools

import jax
import jax.numpy as jnp
from jax.experimental import pallas as pl
from jax.experimental.pallas import tpu as pltpu

F32 = jnp.float32
BF16 = jnp.bfloat16


def _round_up(x, m):
    return (x + m - 1) // m * m


def _vmem_limit_bytes():
    # Generation-aware scoped-VMEM budget: v7x has 64 MiB physical VMEM,
    # v5e / v6e have 128 MiB.
    try:
        kind = jax.devices()[0].device_kind.lower()
    except Exception:
        kind = ""
    if "v7" in kind:
        return 44 * 1024 * 1024
    if "v5" in kind or "v6" in kind:
        return 96 * 1024 * 1024
    return 48 * 1024 * 1024


def _compiler_params(dim_sem):
    return pltpu.CompilerParams(
        dimension_semantics=dim_sem,
        vmem_limit_bytes=_vmem_limit_bytes())


def _const_spec(arr, grid_rank):
    # Whole-array block with a constant block index: Pallas fetches it once and
    # keeps it resident across grid steps (weights, shared tables).
    # TODO(synk): verify single-buffering of constant-index blocks in the
    # Mosaic dump (pipeline_mode=pl.Buffered(1) would make it explicit).
    zeros = (0,) * arr.ndim
    if grid_rank == 1:
        return pl.BlockSpec(arr.shape, lambda i: zeros)
    return pl.BlockSpec(arr.shape, lambda i, j: zeros)


def _pick_bag_group(B, K, max_rows=256):
    """Largest divisor G of B with G*K rows per program bounded by max_rows."""
    cands = [g for g in range(1, B + 1)
             if B % g == 0 and g * K <= max_rows and (g * K) % 8 == 0]
    if cands:
        return max(cands)
    return B   # rare fallback: whole batch in one program (always block-legal)


def _pick_ffn_chunk(e4, max_chunk=1024):
    """FFN hidden chunk: largest multiple of 128 dividing 4E, capped for VMEM."""
    if e4 <= max_chunk:
        return e4
    best = e4
    for c in range(128, max_chunk + 1, 128):
        if e4 % c == 0:
            best = c
    return best


def _layernorm(x, gamma, beta, eps):
    mu = jnp.mean(x, axis=-1, keepdims=True)
    var = jnp.mean((x - mu) * (x - mu), axis=-1, keepdims=True)
    return (x - mu) * jax.lax.rsqrt(var + eps) * gamma + beta


def _erf(x):
    # Abramowitz & Stegun 7.1.26 (|err| < 1.5e-7, below f32 noise): exp +
    # polynomial only, with the divide pushed onto the EUP reciprocal slot.
    # TODO(synk): switch to lax.erf once Mosaic lowering of erf_p is guaranteed.
    a1, a2, a3, a4, a5 = (0.254829592, -0.284496736, 1.421413741,
                          -1.453152027, 1.061405429)
    p = 0.3275911
    s = jnp.where(x >= 0.0, 1.0, -1.0)
    a = jnp.abs(x)
    t = pl.reciprocal(1.0 + p * a, approx=True)
    poly = ((((a5 * t + a4) * t + a3) * t + a2) * t + a1) * t
    return s * (1.0 - poly * jnp.exp(-a * a))


def _gelu_exact(x):
    return 0.5 * x * (1.0 + _erf(x * (1.0 / math.sqrt(2.0))))


def _swap_pairs(x):
    # (x0, x1, x2, x3, ...) -> (x1, x0, x3, x2, ...) along the lane axis; the
    # rotate_half sign flip is folded into the sin table built in the wrapper.
    # TODO(synk): pltpu.roll(x, +-1, axis=-1) would move the shifts onto the
    # XLU slot; kept as lane-concat shifts to pin down shift-direction
    # semantics exactly.
    nxt = jnp.concatenate([x[..., 1:], x[..., :1]], axis=-1)    # x[j + 1]
    prv = jnp.concatenate([x[..., -1:], x[..., :-1]], axis=-1)  # x[j - 1]
    lane = jax.lax.broadcasted_iota(jnp.int32, x.shape, dimension=x.ndim - 1)
    return jnp.where(lane % 2 == 0, nxt, prv)


# --------------------------- Retriever MLP kernel ---------------------------
def _retriever_kernel(x_ref,
                      w1, b1, g1, be1,
                      w2, b2, g2, be2,
                      w3, b3, g3, be3,
                      w4r, b4,
                      o_ref):
    x = x_ref[...]                                            # [T, d0p] bf16
    h = jnp.dot(x, w1[...], preferred_element_type=F32) + b1[...]
    h = jnp.maximum(_layernorm(h, g1[...], be1[...], 1e-5), 0.0)
    h = jnp.dot(h.astype(BF16), w2[...], preferred_element_type=F32) + b2[...]
    h = jnp.maximum(_layernorm(h, g2[...], be2[...], 1e-5), 0.0)
    h = jnp.dot(h.astype(BF16), w3[...], preferred_element_type=F32) + b3[...]
    h = jnp.maximum(_layernorm(h, g3[...], be3[...], 1e-5), 0.0)
    # Final 1-wide Linear computed as [1, d3] @ [T, d3]^T so the per-row sims
    # land on the lane axis -> lane-dense (unmasked) store of the output.
    logit = jax.lax.dot_general(w4r[...], h, (((1,), (1,)), ((), ())),
                                preferred_element_type=F32) + b4[...]
    o_ref[...] = jax.nn.sigmoid(logit)[None]                  # [1, 1, T]


def retriever_forward(x, p):
    n, d0 = x.shape
    d0p = _round_up(d0, 128)                  # pad the contraction dim (exact)
    row_tile = min(1024, _round_up(n, 128))   # mem-bound: large row tiles
    n_pad = _round_up(n, row_tile)
    n_tiles = n_pad // row_tile

    x = jnp.pad(x, ((0, n_pad - n), (0, d0p - d0))).astype(BF16)
    w1 = jnp.pad(p['w1'], ((0, d0p - d0), (0, 0))).astype(BF16)

    weights = (w1, p['b1'], p['g1'], p['be1'],
               p['w2'].astype(BF16), p['b2'], p['g2'], p['be2'],
               p['w3'].astype(BF16), p['b3'], p['g3'], p['be3'],
               p['w4t'], p['b4'])
    out = pl.pallas_call(
        _retriever_kernel,
        grid=(n_tiles,),
        out_shape=jax.ShapeDtypeStruct((n_tiles, 1, row_tile), F32),
        in_specs=[pl.BlockSpec((row_tile, d0p), lambda i: (i, 0))]
                 + [_const_spec(w, 1) for w in weights],
        out_specs=pl.BlockSpec((1, 1, row_tile), lambda i: (i, 0, 0)),
        compiler_params=_compiler_params(("parallel",)),
    )(x, *weights)
    return out.reshape(n_pad)[:n]


# ------------------ Fused RoFormer encoder layer kernel ----------------------
# grid = (bag groups, FFN hidden chunks). Attention runs at chunk 0 and its
# result (h1) is held in VMEM scratch; the FFN accumulates across chunks; the
# output block is written at the last chunk.
def _roformer_layer_kernel(x_ref, mask_ref, cos_ref, sin_ref,
                           wq, bq, wk, bk, wv, bv, wo, bo, g1, be1,
                           wi, bi, wf, bf, g2, be2,
                           o_ref, h1_sc, ff_sc, *, G, K, E, H):
    j = pl.program_id(1)
    Dh = E // H
    scale = 1.0 / math.sqrt(Dh)

    @pl.when(j == 0)
    def _attention():
        x = x_ref[...]                                        # [G*K, E] f32
        xb = x.astype(BF16)
        q = jnp.dot(xb, wq[...], preferred_element_type=F32) + bq[...]
        k = jnp.dot(xb, wk[...], preferred_element_type=F32) + bk[...]
        v = jnp.dot(xb, wv[...], preferred_element_type=F32) + bv[...]

        # Rotary (RoFormer interleaved); sin table carries the rotate_half sign.
        q3 = q.reshape(G, K, E)
        k3 = k.reshape(G, K, E)
        v3 = v.reshape(G, K, E)
        cosf = cos_ref[...][None]                             # [1, K, E]
        sinf = sin_ref[...][None]
        q3 = q3 * cosf + _swap_pairs(q3) * sinf
        k3 = k3 * cosf + _swap_pairs(k3) * sinf

        # Additive pad mask broadcast per *query* row, exactly reproducing the
        # reference's mask.unsqueeze(-1).unsqueeze(1) broadcast.
        mask3 = mask_ref[...].reshape(G, K, 1)

        # Per-head attention, batched over the G bags; the per-head context ->
        # output projection is accumulated directly (no head stack / concat).
        attn = jnp.zeros((G * K, E), F32)
        for h in range(H):
            sl = slice(h * Dh, (h + 1) * Dh)
            qh = q3[..., sl].astype(BF16)
            kh = k3[..., sl].astype(BF16)
            vh = v3[..., sl].astype(BF16)
            s = jnp.einsum('gqd,gkd->gqk', qh, kh,
                           preferred_element_type=F32) * scale + mask3
            m = jnp.max(s, axis=-1, keepdims=True)
            e = jnp.exp(s - m)
            pr = e * pl.reciprocal(jnp.sum(e, axis=-1, keepdims=True),
                                   approx=True)
            ctx = jnp.einsum('gqk,gkd->gqd', pr.astype(BF16), vh,
                             preferred_element_type=F32)      # [G, K, Dh]
            attn = attn + jnp.dot(ctx.reshape(G * K, Dh).astype(BF16),
                                  wo[sl, :], preferred_element_type=F32)
        attn = attn + bo[...]
        h1_sc[...] = _layernorm(attn + x, g1[...], be1[...], 1e-12)
        ff_sc[...] = jnp.zeros_like(ff_sc)

    # FFN, chunked over the 4E hidden dim (grid axis 1): only an (E, ftile)
    # weight slab and a (rows, ftile) activation chunk live in VMEM at once.
    pre = jnp.dot(h1_sc[...].astype(BF16), wi[...],
                  preferred_element_type=F32) + bi[...]
    act = _gelu_exact(pre)
    ff_sc[...] += jnp.dot(act.astype(BF16), wf[...],
                          preferred_element_type=F32)

    @pl.when(j == pl.num_programs(1) - 1)
    def _finalize():
        ff = ff_sc[...] + bf[...]
        o_ref[...] = _layernorm(ff + h1_sc[...], g2[...], be2[...], 1e-12)


_W_KEYS = ('wq', 'bq', 'wk', 'bk', 'wv', 'bv', 'wo', 'bo',
           'g1', 'be1', 'wi', 'bi', 'wf', 'bf', 'g2', 'be2')
_MATMUL_W = frozenset(('wq', 'wk', 'wv', 'wo', 'wi', 'wf'))


def roformer_layer_forward(x2d, mask2d, cosf, sinf, lp, B, K, E, H, G, ftile):
    R = G * K
    nb = B // G
    nf = (4 * E) // ftile
    kern = functools.partial(_roformer_layer_kernel, G=G, K=K, E=E, H=H)

    # bf16 matmul operands (MXU-native on v5e/v6e/v7x); biases / LN params f32.
    w = {kk: (lp[kk].astype(BF16) if kk in _MATMUL_W else lp[kk])
         for kk in _W_KEYS}

    data_specs = [
        pl.BlockSpec((R, E), lambda i, j: (i, 0)),   # x: G bags per program
        pl.BlockSpec((R, 1), lambda i, j: (i, 0)),   # per-query additive mask
        pl.BlockSpec((K, E), lambda i, j: (0, 0)),   # cos (shared, resident)
        pl.BlockSpec((K, E), lambda i, j: (0, 0)),   # sin (sign-folded)
    ]
    weight_specs = []
    for kk in _W_KEYS:
        if kk == 'wi':
            weight_specs.append(pl.BlockSpec((E, ftile), lambda i, j: (0, j)))
        elif kk == 'bi':
            weight_specs.append(pl.BlockSpec((1, ftile), lambda i, j: (0, j)))
        elif kk == 'wf':
            weight_specs.append(pl.BlockSpec((ftile, E), lambda i, j: (j, 0)))
        else:
            weight_specs.append(_const_spec(w[kk], 2))

    return pl.pallas_call(
        kern,
        grid=(nb, nf),
        out_shape=jax.ShapeDtypeStruct((B * K, E), F32),
        in_specs=data_specs + weight_specs,
        out_specs=pl.BlockSpec((R, E), lambda i, j: (i, 0)),
        scratch_shapes=[pltpu.VMEM((R, E), F32),   # h1 (post-attention)
                        pltpu.VMEM((R, E), F32)],  # FFN accumulator
        compiler_params=_compiler_params(("parallel", "arbitrary")),
    )(x2d, mask2d, cosf, sinf, *[w[kk] for kk in _W_KEYS])


# ------------------------------ Output head ----------------------------------
def _predout_kernel(x_ref, wt, b, o_ref, *, G, K, E):
    x = x_ref[...].reshape(G, K, E)                           # G bags
    nz = jnp.sum((x != 0.0).astype(F32), axis=-1, keepdims=True)
    m = (nz > 0.0).astype(F32)                                # x.ne(0).any(-1)
    num = jnp.sum(x * m, axis=1)                              # [G, E]
    den = jnp.sum(m, axis=1)                                  # [G, 1]
    pooled = num / den
    logit = jax.lax.dot_general(wt[...], pooled, (((1,), (1,)), ((), ())),
                                preferred_element_type=F32) + b[...]
    o_ref[...] = jax.nn.sigmoid(logit)[None]                  # [1, 1, G]


def predout_forward(x2d, p, B, K, E, G):
    # TODO(synk): could be fused as a second lane-dense output of the last
    # RoFormer layer call (saves one [B*K, E] HBM pass); kept separate but
    # bag-batched (G bags / grid step).
    nb = B // G
    kern = functools.partial(_predout_kernel, G=G, K=K, E=E)
    args = (p['wt'], p['b'])
    out = pl.pallas_call(
        kern,
        grid=(nb,),
        out_shape=jax.ShapeDtypeStruct((nb, 1, G), F32),
        in_specs=[pl.BlockSpec((G * K, E), lambda i: (i, 0))]
                 + [_const_spec(a, 1) for a in args],
        out_specs=pl.BlockSpec((1, 1, G), lambda i: (i, 0, 0)),
        compiler_params=_compiler_params(("parallel",)),
    )(x2d, *args)
    return out.reshape(B, 1)


# ------------------------------ Full forward ---------------------------------
def remed_forward(params, reprs, times, *, n_heads, max_retrieve_len, pred_time):
    B, L, E = reprs.shape
    K, H = max_retrieve_len, n_heads

    reprs_p = jnp.pad(reprs, ((0, 0), (0, K), (0, 0)))
    times_p = jnp.pad(times, ((0, 0), (0, K)))
    all_zero = jnp.all(reprs_p == 0, axis=-1)                 # [B, L+K]
    times_p = jnp.where(all_zero, jnp.asarray(1e10, F32), times_p)
    S = L + K

    # -- Retriever (row-tiled Pallas MLP, bf16 input, lane-dense sims) --
    ret_in = jnp.concatenate(
        [reprs_p, times_p[..., None].astype(reprs.dtype)], axis=-1)
    sim = retriever_forward(ret_in.reshape(B * S, E + 1), params['retriever'])
    sim = sim.reshape(B, S)
    _sim = jnp.where(all_zero, 0.0, sim)

    # TODO(synk): top-k / sort / gather stay in plain JAX (no clean Pallas TPU
    # primitive); a scalar-prefetch row gather into the RoFormer kernel would
    # remove one [B,K,E] HBM round trip but is not done here.
    topk_values, topk_idx = jax.lax.top_k(_sim, K)
    topk = jnp.take_along_axis(
        reprs_p, jnp.broadcast_to(topk_idx[..., None], (B, K, E)), axis=1)
    topk_times = jnp.take_along_axis(times_p, topk_idx, axis=1)
    order = jnp.argsort(topk_times, axis=1)
    topk_times = jnp.take_along_axis(topk_times, order, axis=1)
    topk = jnp.take_along_axis(
        topk, jnp.broadcast_to(order[..., None], (B, K, E)), axis=1)

    # -- predictor path (eval / inference semantics; dropout = identity) --
    row0 = topk[:, 0, :]
    row0 = jnp.where(jnp.sum(row0, axis=-1, keepdims=True) == 0,
                     params['random_token_emb'][None, :], row0)
    topk = topk.at[:, 0, :].set(row0)

    # ReprTimeEnc: pad mask computed BEFORE the PE add (matches reference).
    src_pad = jnp.all(topk == 0, axis=-1)                     # [B, K]
    t_enc = pred_time * 60.0 - topk_times                     # [B, K]
    div_term = jnp.exp(jnp.arange(0, E, 2, dtype=F32) * (-math.log(10000.0) / E))
    arg = t_enc[..., None] * div_term                         # [B, K, E//2]
    pe = jnp.stack([jnp.sin(arg), jnp.cos(arg)], axis=-1).reshape(B, K, E)
    x2d = (topk + pe).reshape(B * K, E).astype(F32)

    # Additive pad mask, applied per *query* exactly as the reference's
    # mask.unsqueeze(-1).unsqueeze(1) broadcast does.
    mask_add = (src_pad.astype(F32) * float(jnp.finfo(F32).min)).reshape(B * K, 1)

    # RoFormer rotary tables: [K, E], shared across bags and layers; the
    # rotate_half even/odd sign flip is folded into the sin table.
    Dh = E // H
    pos = jnp.arange(K, dtype=F32)[:, None]
    inv_freq = jnp.power(10000.0, -2.0 * jnp.arange(Dh // 2, dtype=F32) / Dh)[None, :]
    ang = pos * inv_freq                                      # [K, Dh//2]
    sin_i = jnp.repeat(jnp.sin(ang), 2, axis=1)               # [s0,s0,s1,s1,...]
    cos_i = jnp.repeat(jnp.cos(ang), 2, axis=1)
    sign = jnp.where(jnp.arange(E) % 2 == 0, -1.0, 1.0).astype(F32)
    sinf = jnp.tile(sin_i, (1, H)) * sign[None, :]            # [K, E]
    cosf = jnp.tile(cos_i, (1, H))                            # [K, E]

    G = _pick_bag_group(B, K)
    ftile = _pick_ffn_chunk(4 * E)
    # TODO(synk): the n_layers calls could be fused into one pallas_call with a
    # layer grid axis (keeps x resident in VMEM across layers on v5e/v6e).
    for lp in params['layers']:
        x2d = roformer_layer_forward(x2d, mask_add, cosf, sinf, lp,
                                     B, K, E, H, G, ftile)

    return predout_forward(x2d, params['out'], B, K, E, G)    # [B, 1]


# ------------------------------ Parameter init --------------------------------
def _dense(key, fi, fo, scale=0.05):
    kw, kb = jax.random.split(key)
    return (jax.random.normal(kw, (fi, fo), F32) * scale,
            jax.random.normal(kb, (1, fo), F32) * 0.01)


def init_params(key, pred_dim, n_heads, n_layers):
    E = pred_dim
    k_ret, k_layers, k_out, k_tok = jax.random.split(key, 4)

    d0, d1, d2, d3 = E + 1, (E + 1) // 2, (E + 1) // 4, (E + 1) // 8
    kr = jax.random.split(k_ret, 4)
    w1, b1 = _dense(kr[0], d0, d1)
    w2, b2 = _dense(kr[1], d1, d2)
    w3, b3 = _dense(kr[2], d2, d3)
    w4, b4 = _dense(kr[3], d3, 1)
    retriever = dict(
        w1=w1, b1=b1, g1=jnp.ones((1, d1), F32), be1=jnp.zeros((1, d1), F32),
        w2=w2, b2=b2, g2=jnp.ones((1, d2), F32), be2=jnp.zeros((1, d2), F32),
        w3=w3, b3=b3, g3=jnp.ones((1, d3), F32), be3=jnp.zeros((1, d3), F32),
        w4t=w4.T, b4=b4)

    layers = []
    for lk in jax.random.split(k_layers, n_layers):
        ks = jax.random.split(lk, 6)
        wq, bq = _dense(ks[0], E, E)
        wk, bk = _dense(ks[1], E, E)
        wv, bv = _dense(ks[2], E, E)
        wo, bo = _dense(ks[3], E, E)
        wi, bi = _dense(ks[4], E, 4 * E)
        wf, bf = _dense(ks[5], 4 * E, E)
        layers.append(dict(
            wq=wq, bq=bq, wk=wk, bk=bk, wv=wv, bv=bv, wo=wo, bo=bo,
            g1=jnp.ones((1, E), F32), be1=jnp.zeros((1, E), F32),
            wi=wi, bi=bi, wf=wf, bf=bf,
            g2=jnp.ones((1, E), F32), be2=jnp.zeros((1, E), F32)))

    wout, bout = _dense(k_out, E, 1)
    out = dict(wt=wout.T, b=bout)

    return dict(retriever=retriever, layers=layers, out=out,
                random_token_emb=jax.random.normal(k_tok, (E,), F32))


# ---------------------------------- Main --------------------------------------
if __name__ == "__main__":
    PRED_DIM, N_HEADS, N_LAYERS = 32, 4, 2
    MAX_RETRIEVE_LEN, PRED_TIME = 8, 48
    B, L = 2, 8

    key = jax.random.PRNGKey(0)
    kp, kr, kt = jax.random.split(key, 3)
    params = init_params(kp, PRED_DIM, N_HEADS, N_LAYERS)

    reprs = jax.random.normal(kr, (B, L, PRED_DIM), F32)
    reprs = reprs.at[0, L - 1].set(0.0)      # one all-zero event row to exercise masking
    times = jax.random.uniform(kt, (B, L), F32, 0.0, float(PRED_TIME * 60))

    fwd = jax.jit(functools.partial(
        remed_forward, n_heads=N_HEADS,
        max_retrieve_len=MAX_RETRIEVE_LEN, pred_time=float(PRED_TIME)))

    pred = fwd(params, reprs, times)
    jax.block_until_ready(pred)
    assert pred.shape == (B, 1), pred.shape
    assert bool(jnp.all(jnp.isfinite(pred)))
    print("KERNEL_OK")
</pallas_src>

<mosaic_0001>
module attributes {stable_mosaic.version = 11 : i64} {
  func.func @_retriever_kernel(%arg0: i32, %arg1: memref<128x128xbf16, #tpu.memory_space<vmem>>, %arg2: memref<128x16xbf16, #tpu.memory_space<vmem>>, %arg3: memref<1x16xf32, #tpu.memory_space<vmem>>, %arg4: memref<1x16xf32, #tpu.memory_space<vmem>>, %arg5: memref<1x16xf32, #tpu.memory_space<vmem>>, %arg6: memref<16x8xbf16, #tpu.memory_space<vmem>>, %arg7: memref<1x8xf32, #tpu.memory_space<vmem>>, %arg8: memref<1x8xf32, #tpu.memory_space<vmem>>, %arg9: memref<1x8xf32, #tpu.memory_space<vmem>>, %arg10: memref<8x4xbf16, #tpu.memory_space<vmem>>, %arg11: memref<1x4xf32, #tpu.memory_space<vmem>>, %arg12: memref<1x4xf32, #tpu.memory_space<vmem>>, %arg13: memref<1x4xf32, #tpu.memory_space<vmem>>, %arg14: memref<1x4xf32, #tpu.memory_space<vmem>>, %arg15: memref<1x1xf32, #tpu.memory_space<vmem>>, %arg16: memref<1x1x128xf32, #tpu.memory_space<vmem>>) attributes {dimension_semantics = [#tpu.dimension_semantics<parallel>], iteration_bounds = array<i64: 1>, scalar_prefetch = 0 : i64, scratch_operands = 0 : i64, tpu.core_type = #tpu.core_type<tc>, window_params = [{transform_indices = @transform_0, window_bounds = array<i64: 128, 128>}, {pipeline_mode = #tpu.pipeline_mode<synchronous>, transform_indices = @transform_1, window_bounds = array<i64: 128, 16>}, {pipeline_mode = #tpu.pipeline_mode<synchronous>, transform_indices = @transform_2, window_bounds = array<i64: 1, 16>}, {pipeline_mode = #tpu.pipeline_mode<synchronous>, transform_indices = @transform_3, window_bounds = array<i64: 1, 16>}, {pipeline_mode = #tpu.pipeline_mode<synchronous>, transform_indices = @transform_4, window_bounds = array<i64: 1, 16>}, {pipeline_mode = #tpu.pipeline_mode<synchronous>, transform_indices = @transform_5, window_bounds = array<i64: 16, 8>}, {pipeline_mode = #tpu.pipeline_mode<synchronous>, transform_indices = @transform_6, window_bounds = array<i64: 1, 8>}, {pipeline_mode = #tpu.pipeline_mode<synchronous>, transform_indices = @transform_7, window_bounds = array<i64: 1, 8>}, {pipeline_mode = #tpu.pipeline_mode<synchronous>, transform_indices = @transform_8, window_bounds = array<i64: 1, 8>}, {pipeline_mode = #tpu.pipeline_mode<synchronous>, transform_indices = @transform_9, window_bounds = array<i64: 8, 4>}, {pipeline_mode = #tpu.pipeline_mode<synchronous>, transform_indices = @transform_10, window_bounds = array<i64: 1, 4>}, {pipeline_mode = #tpu.pipeline_mode<synchronous>, transform_indices = @transform_11, window_bounds = array<i64: 1, 4>}, {pipeline_mode = #tpu.pipeline_mode<synchronous>, transform_indices = @transform_12, window_bounds = array<i64: 1, 4>}, {pipeline_mode = #tpu.pipeline_mode<synchronous>, transform_indices = @transform_13, window_bounds = array<i64: 1, 4>}, {pipeline_mode = #tpu.pipeline_mode<synchronous>, transform_indices = @transform_14, window_bounds = array<i64: 1, 1>}, {transform_indices = @transform_15, window_bounds = array<i64: 1, 1, 128>}]} {
    %c0 = arith.constant 0 : index
    %c0_0 = arith.constant 0 : index
    %0 = vector.load %arg1[%c0, %c0_0] : memref<128x128xbf16, #tpu.memory_space<vmem>>, vector<128x128xbf16>
    %c0_1 = arith.constant 0 : index
    %c0_2 = arith.constant 0 : index
    %1 = vector.load %arg2[%c0_1, %c0_2] : memref<128x16xbf16, #tpu.memory_space<vmem>>, vector<128x16xbf16>
    %cst = arith.constant dense<0.000000e+00> : vector<128x16xf32>
    %2 = tpu.matmul %0, %1, %cst {dimension_numbers = #tpu.dot_dimension_numbers<[1], [0], [0], [1], [0, 0, 1, 1], [], []>} : vector<128x128xbf16>, vector<128x16xbf16>, vector<128x16xf32> -> vector<128x16xf32>
    %c0_3 = arith.constant 0 : index
    %c0_4 = arith.constant 0 : index
    %3 = vector.load %arg3[%c0_3, %c0_4] : memref<1x16xf32, #tpu.memory_space<vmem>>, vector<1x16xf32>
    %4 = vector.broadcast %3 : vector<1x16xf32> to vector<128x16xf32>
    %5 = arith.addf %2, %4 : vector<128x16xf32>
    %c0_5 = arith.constant 0 : index
    %c0_6 = arith.constant 0 : index
    %6 = vector.load %arg4[%c0_5, %c0_6] : memref<1x16xf32, #tpu.memory_space<vmem>>, vector<1x16xf32>
    %c0_7 = arith.constant 0 : index
    %c0_8 = arith.constant 0 : index
    %7 = vector.load %arg5[%c0_7, %c0_8] : memref<1x16xf32, #tpu.memory_space<vmem>>, vector<1x16xf32>
    %cst_9 = arith.constant dense<0.000000e+00> : vector<128xf32>
    %8 = vector.multi_reduction <add>, %5, %cst_9 [1] : vector<128x16xf32> to vector<128xf32>
    %9 = vector.shape_cast %8 : vector<128xf32> to vector<128x1xf32>
    %cst_10 = arith.constant 1.600000e+01 : f32
    %10 = vector.broadcast %cst_10 : f32 to vector<128x1xf32>
    %11 = arith.divf %9, %10 : vector<128x1xf32>
    %12 = vector.broadcast %11 : vector<128x1xf32> to vector<128x16xf32>
    %13 = arith.subf %5, %12 : vector<128x16xf32>
    %14 = vector.broadcast %11 : vector<128x1xf32> to vector<128x16xf32>
    %15 = arith.subf %5, %14 : vector<128x16xf32>
    %16 = arith.mulf %13, %15 : vector<128x16xf32>
    %cst_11 = arith.constant dense<0.000000e+00> : vector<128xf32>
    %17 = vector.multi_reduction <add>, %16, %cst_11 [1] : vector<128x16xf32> to vector<128xf32>
    %18 = vector.shape_cast %17 : vector<128xf32> to vector<128x1xf32>
    %cst_12 = arith.constant 1.600000e+01 : f32
    %19 = vector.broadcast %cst_12 : f32 to vector<128x1xf32>
    %20 = arith.divf %18, %19 : vector<128x1xf32>
    %21 = vector.broadcast %11 : vector<128x1xf32> to vector<128x16xf32>
    %22 = arith.subf %5, %21 : vector<128x16xf32>
    %cst_13 = arith.constant 9.99999974E-6 : f32
    %23 = vector.broadcast %cst_13 : f32 to vector<128x1xf32>
    %24 = arith.addf %20, %23 : vector<128x1xf32>
    %25 = math.rsqrt %24 : vector<128x1xf32>
    %26 = vector.broadcast %25 : vector<128x1xf32> to vector<128x16xf32>
    %27 = arith.mulf %22, %26 : vector<128x16xf32>
    %28 = vector.broadcast %6 : vector<1x16xf32> to vector<128x16xf32>
    %29 = arith.mulf %27, %28 : vector<128x16xf32>
    %30 = vector.broadcast %7 : vector<1x16xf32> to vector<128x16xf32>
    %31 = arith.addf %29, %30 : vector<128x16xf32>
    %cst_14 = arith.constant 0.000000e+00 : f32
    %32 = vector.broadcast %cst_14 : f32 to vector<128x16xf32>
    %33 = arith.maximumf %31, %32 : vector<128x16xf32>
    %34 = arith.truncf %33 : vector<128x16xf32> to vector<128x16xbf16>
    %c0_15 = arith.constant 0 : index
    %c0_16 = arith.constant 0 : index
    %35 = vector.load %arg6[%c0_15, %c0_16] : memref<16x8xbf16, #tpu.memory_space<vmem>>, vector<16x8xbf16>
    %cst_17 = arith.constant dense<0.000000e+00> : vector<128x8xf32>
    %36 = tpu.matmul %34, %35, %cst_17 {dimension_numbers = #tpu.dot_dimension_numbers<[1], [0], [0], [1], [0, 0, 1, 1], [], []>} : vector<128x16xbf16>, vector<16x8xbf16>, vector<128x8xf32> -> vector<128x8xf32>
    %c0_18 = arith.constant 0 : index
    %c0_19 = arith.constant 0 : index
    %37 = vector.load %arg7[%c0_18, %c0_19] : memref<1x8xf32, #tpu.memory_space<vmem>>, vector<1x8xf32>
    %38 = vector.broadcast %37 : vector<1x8xf32> to vector<128x8xf32>
    %39 = arith.addf %36, %38 : vector<128x8xf32>
    %c0_20 = arith.constant 0 : index
    %c0_21 = arith.constant 0 : index
    %40 = vector.load %arg8[%c0_20, %c0_21] : memref<1x8xf32, #tpu.memory_space<vmem>>, vector<1x8xf32>
    %c0_22 = arith.constant 0 : index
    %c0_23 = arith.constant 0 : index
    %41 = vector.load %arg9[%c0_22, %c0_23] : memref<1x8xf32, #tpu.memory_space<vmem>>, vector<1x8xf32>
    %cst_24 = arith.constant dense<0.000000e+00> : vector<128xf32>
    %42 = vector.multi_reduction <add>, %39, %cst_24 [1] : vector<128x8xf32> to vector<128xf32>
    %43 = vector.shape_cast %42 : vector<128xf32> to vector<128x1xf32>
    %cst_25 = arith.constant 8.000000e+00 : f32
    %44 = vector.broadcast %cst_25 : f32 to vector<128x1xf32>
    %45 = arith.divf %43, %44 : vector<128x1xf32>
    %46 = vector.broadcast %45 : vector<128x1xf32> to vector<128x8xf32>
    %47 = arith.subf %39, %46 : vector<128x8xf32>
    %48 = vector.broadcast %45 : vector<128x1xf32> to vector<128x8xf32>
    %49 = arith.subf %39, %48 : vector<128x8xf32>
    %50 = arith.mulf %47, %49 : vector<128x8xf32>
    %cst_26 = arith.constant dense<0.000000e+00> : vector<128xf32>
    %51 = vector.multi_reduction <add>, %50, %cst_26 [1] : vector<128x8xf32> to vector<128xf32>
    %52 = vector.shape_cast %51 : vector<128xf32> to vector<128x1xf32>
    %cst_27 = arith.constant 8.000000e+00 : f32
    %53 = vector.broadcast %cst_27 : f32 to vector<128x1xf32>
    %54 = arith.divf %52, %53 : vector<128x1xf32>
    %55 = vector.broadcast %45 : vector<128x1xf32> to vector<128x8xf32>
    %56 = arith.subf %39, %55 : vector<128x8xf32>
    %cst_28 = arith.constant 9.99999974E-6 : f32
    %57 = vector.broadcast %cst_28 : f32 to vector<128x1xf32>
    %58 = arith.addf %54, %57 : vector<128x1xf32>
    %59 = math.rsqrt %58 : vector<128x1xf32>
    %60 = vector.broadcast %59 : vector<128x1xf32> to vector<128x8xf32>
    %61 = arith.mulf %56, %60 : vector<128x8xf32>
    %62 = vector.broadcast %40 : vector<1x8xf32> to vector<128x8xf32>
    %63 = arith.mulf %61, %62 : vector<128x8xf32>
    %64 = vector.broadcast %41 : vector<1x8xf32> to vector<128x8xf32>
    %65 = arith.addf %63, %64 : vector<128x8xf32>
    %cst_29 = arith.constant 0.000000e+00 : f32
    %66 = vector.broadcast %cst_29 : f32 to vector<128x8xf32>
    %67 = arith.maximumf %65, %66 : vector<128x8xf32>
    %68 = arith.truncf %67 : vector<128x8xf32> to vector<128x8xbf16>
    %c0_30 = arith.constant 0 : index
    %c0_31 = arith.constant 0 : index
    %69 = vector.load %arg10[%c0_30, %c0_31] : memref<8x4xbf16, #tpu.memory_space<vmem>>, vector<8x4xbf16>
    %cst_32 = arith.constant dense<0.000000e+00> : vector<128x4xf32>
    %70 = tpu.matmul %68, %69, %cst_32 {dimension_numbers = #tpu.dot_dimension_numbers<[1], [0], [0], [1], [0, 0, 1, 1], [], []>} : vector<128x8xbf16>, vector<8x4xbf16>, vector<128x4xf32> -> vector<128x4xf32>
    %c0_33 = arith.constant 0 : index
    %c0_34 = arith.constant 0 : index
    %71 = vector.load %arg11[%c0_33, %c0_34] : memref<1x4xf32, #tpu.memory_space<vmem>>, vector<1x4xf32>
    %72 = vector.broadcast %71 : vector<1x4xf32> to vector<128x4xf32>
    %73 = arith.addf %70, %72 : vector<128x4xf32>
    %c0_35 = arith.constant 0 : index
    %c0_36 = arith.constant 0 : index
    %74 = vector.load %arg12[%c0_35, %c0_36] : memref<1x4xf32, #tpu.memory_space<vmem>>, vector<1x4xf32>
    %c0_37 = arith.constant 0 : index
    %c0_38 = arith.constant 0 : index
    %75 = vector.load %arg13[%c0_37, %c0_38] : memref<1x4xf32, #tpu.memory_space<vmem>>, vector<1x4xf32>
    %cst_39 = arith.constant dense<0.000000e+00> : vector<128xf32>
    %76 = vector.multi_reduction <add>, %73, %cst_39 [1] : vector<128x4xf32> to vector<128xf32>
    %77 = vector.shape_cast %76 : vector<128xf32> to vector<128x1xf32>
    %cst_40 = arith.constant 4.000000e+00 : f32
    %78 = vector.broadcast %cst_40 : f32 to vector<128x1xf32>
    %79 = arith.divf %77, %78 : vector<128x1xf32>
    %80 = vector.broadcast %79 : vector<128x1xf32> to vector<128x4xf32>
    %81 = arith.subf %73, %80 : vector<128x4xf32>
    %82 = vector.broadcast %79 : vector<128x1xf32> to vector<128x4xf32>
    %83 = arith.subf %73, %82 : vector<128x4xf32>
    %84 = arith.mulf %81, %83 : vector<128x4xf32>
    %cst_41 = arith.constant dense<0.000000e+00> : vector<128xf32>
    %85 = vector.multi_reduction <add>, %84, %cst_41 [1] : vector<128x4xf32> to vector<128xf32>
    %86 = vector.shape_cast %85 : vector<128xf32> to vector<128x1xf32>
    %cst_42 = arith.constant 4.000000e+00 : f32
    %87 = vector.broadcast %cst_42 : f32 to vector<128x1xf32>
    %88 = arith.divf %86, %87 : vector<128x1xf32>
    %89 = vector.broadcast %79 : vector<128x1xf32> to vector<128x4xf32>
    %90 = arith.subf %73, %89 : vector<128x4xf32>
    %cst_43 = arith.constant 9.99999974E-6 : f32
    %91 = vector.broadcast %cst_43 : f32 to vector<128x1xf32>
    %92 = arith.addf %88, %91 : vector<128x1xf32>
    %93 = math.rsqrt %92 : vector<128x1xf32>
    %94 = vector.broadcast %93 : vector<128x1xf32> to vector<128x4xf32>
    %95 = arith.mulf %90, %94 : vector<128x4xf32>
    %96 = vector.broadcast %74 : vector<1x4xf32> to vector<128x4xf32>
    %97 = arith.mulf %95, %96 : vector<128x4xf32>
    %98 = vector.broadcast %75 : vector<1x4xf32> to vector<128x4xf32>
    %99 = arith.addf %97, %98 : vector<128x4xf32>
    %cst_44 = arith.constant 0.000000e+00 : f32
    %100 = vector.broadcast %cst_44 : f32 to vector<128x4xf32>
    %101 = arith.maximumf %99, %100 : vector<128x4xf32>
    %c0_45 = arith.constant 0 : index
    %c0_46 = arith.constant 0 : index
    %102 = vector.load %arg14[%c0_45, %c0_46] : memref<1x4xf32, #tpu.memory_space<vmem>>, vector<1x4xf32>
    %cst_47 = arith.constant dense<0.000000e+00> : vector<1x128xf32>
    %103 = tpu.matmul %102, %101, %cst_47 {dimension_numbers = #tpu.dot_dimension_numbers<[1], [1], [0], [0], [0, 0, 1, 0], [], []>} : vector<1x4xf32>, vector<128x4xf32>, vector<1x128xf32> -> vector<1x128xf32>
    %c0_48 = arith.constant 0 : index
    %c0_49 = arith.constant 0 : index
    %104 = vector.load %arg15[%c0_48, %c0_49] : memref<1x1xf32, #tpu.memory_space<vmem>>, vector<1x1xf32>
    %105 = vector.broadcast %104 : vector<1x1xf32> to vector<1x128xf32>
    %106 = arith.addf %103, %105 : vector<1x128xf32>
    %107 = arith.negf %106 : vector<1x128xf32>
    %108 = math.exp %107 : vector<1x128xf32>
    %cst_50 = arith.constant 1.000000e+00 : f32
    %109 = vector.broadcast %cst_50 : f32 to vector<1x128xf32>
    %110 = arith.addf %109, %108 : vector<1x128xf32>
    %111 = arith.divf %109, %110 : vector<1x128xf32>
    %112 = vector.shape_cast %111 : vector<1x128xf32> to vector<1x1x128xf32>
    %c0_51 = arith.constant 0 : index
    %c0_52 = arith.constant 0 : index
    %c0_53 = arith.constant 0 : index
    %113 = vector.load %arg16[%c0_51, %c0_52, %c0_53] : memref<1x1x128xf32, #tpu.memory_space<vmem>>, vector<1x1x128xf32>
    tpu.vector_store %arg16[%c0_51, %c0_52, %c0_53], %112 {strides = array<i32>} : memref<1x1x128xf32, #tpu.memory_space<vmem>>, vector<1x1x128xf32>,
    return
  }
  func.func @transform_0(%arg0: i32) -> (i32, i32) {
    %c0_i32 = arith.constant 0 : i32
    %c0_i32_0 = arith.constant 0 : i32
    return %arg0, %c0_i32 : i32, i32
  }
  func.func @transform_1(%arg0: i32) -> (i32, i32) {
    %c0_i32 = arith.constant 0 : i32
    %c0_i32_0 = arith.constant 0 : i32
    %c0_i32_1 = arith.constant 0 : i32
    return %c0_i32, %c0_i32_0 : i32, i32
  }
  func.func @transform_2(%arg0: i32) -> (i32, i32) {
    %c0_i32 = arith.constant 0 : i32
    %c0_i32_0 = arith.constant 0 : i32
    %c0_i32_1 = arith.constant 0 : i32
    return %c0_i32, %c0_i32_0 : i32, i32
  }
  func.func @transform_3(%arg0: i32) -> (i32, i32) {
    %c0_i32 = arith.constant 0 : i32
    %c0_i32_0 = arith.constant 0 : i32
    %c0_i32_1 = arith.constant 0 : i32
    return %c0_i32, %c0_i32_0 : i32, i32
  }
  func.func @transform_4(%arg0: i32) -> (i32, i32) {
    %c0_i32 = arith.constant 0 : i32
    %c0_i32_0 = arith.constant 0 : i32
    %c0_i32_1 = arith.constant 0 : i32
    return %c0_i32, %c0_i32_0 : i32, i32
  }
  func.func @transform_5(%arg0: i32) -> (i32, i32) {
    %c0_i32 = arith.constant 0 : i32
    %c0_i32_0 = arith.constant 0 : i32
    %c0_i32_1 = arith.constant 0 : i32
    return %c0_i32, %c0_i32_0 : i32, i32
  }
  func.func @transform_6(%arg0: i32) -> (i32, i32) {
    %c0_i32 = arith.constant 0 : i32
    %c0_i32_0 = arith.constant 0 : i32
    %c0_i32_1 = arith.constant 0 : i32
    return %c0_i32, %c0_i32_0 : i32, i32
  }
  func.func @transform_7(%arg0: i32) -> (i32, i32) {
    %c0_i32 = arith.constant 0 : i32
    %c0_i32_0 = arith.constant 0 : i32
    %c0_i32_1 = arith.constant 0 : i32
    return %c0_i32, %c0_i32_0 : i32, i32
  }
  func.func @transform_8(%arg0: i32) -> (i32, i32) {
    %c0_i32 = arith.constant 0 : i32
    %c0_i32_0 = arith.constant 0 : i32
    %c0_i32_1 = arith.constant 0 : i32
    return %c0_i32, %c0_i32_0 : i32, i32
  }
  func.func @transform_9(%arg0: i32) -> (i32, i32) {
    %c0_i32 = arith.constant 0 : i32
    %c0_i32_0 = arith.constant 0 : i32
    %c0_i32_1 = arith.constant 0 : i32
    return %c0_i32, %c0_i32_0 : i32, i32
  }
  func.func @transform_10(%arg0: i32) -> (i32, i32) {
    %c0_i32 = arith.constant 0 : i32
    %c0_i32_0 = arith.constant 0 : i32
    %c0_i32_1 = arith.constant 0 : i32
    return %c0_i32, %c0_i32_0 : i32, i32
  }
  func.func @transform_11(%arg0: i32) -> (i32, i32) {
    %c0_i32 = arith.constant 0 : i32
    %c0_i32_0 = arith.constant 0 : i32
    %c0_i32_1 = arith.constant 0 : i32
    return %c0_i32, %c0_i32_0 : i32, i32
  }
  func.func @transform_12(%arg0: i32) -> (i32, i32) {
    %c0_i32 = arith.constant 0 : i32
    %c0_i32_0 = arith.constant 0 : i32
    %c0_i32_1 = arith.constant 0 : i32
    return %c0_i32, %c0_i32_0 : i32, i32
  }
  func.func @transform_13(%arg0: i32) -> (i32, i32) {
    %c0_i32 = arith.constant 0 : i32
    %c0_i32_0 = arith.constant 0 : i32
    %c0_i32_1 = arith.constant 0 : i32
    return %c0_i32, %c0_i32_0 : i32, i32
  }
  func.func @transform_14(%arg0: i32) -> (i32, i32) {
    %c0_i32 = arith.constant 0 : i32
    %c0_i32_0 = arith.constant 0 : i32
    %c0_i32_1 = arith.constant 0 : i32
    return %c0_i32, %c0_i32_0 : i32, i32
  }
  func.func @transform_15(%arg0: i32) -> (i32, i32, i32) {
    %c0_i32 = arith.constant 0 : i32
    %c0_i32_0 = arith.constant 0 : i32
    %c0_i32_1 = arith.constant 0 : i32
    return %arg0, %c0_i32, %c0_i32_0 : i32, i32, i32
  }
}

module attributes {stable_mosaic.version = 11 : i64} {
  func.func @_predout_kernel(%arg0: i32, %arg1: memref<16x32xf32, #tpu.memory_space<vmem>>, %arg2: memref<1x32xf32, #tpu.memory_space<vmem>>, %arg3: memref<1x1xf32, #tpu.memory_space<vmem>>, %arg4: memref<1x1x2xf32, #tpu.memory_space<vmem>>) attributes {dimension_semantics = [#tpu.dimension_semantics<parallel>], iteration_bounds = array<i64: 1>, scalar_prefetch = 0 : i64, scratch_operands = 0 : i64, tpu.core_type = #tpu.core_type<tc>, window_params = [{transform_indices = @transform_0, window_bounds = array<i64: 16, 32>}, {pipeline_mode = #tpu.pipeline_mode<synchronous>, transform_indices = @transform_1, window_bounds = array<i64: 1, 32>}, {pipeline_mode = #tpu.pipeline_mode<synchronous>, transform_indices = @transform_2, window_bounds = array<i64: 1, 1>}, {transform_indices = @transform_3, window_bounds = array<i64: 1, 1, 2>}]} {
    %c0 = arith.constant 0 : index
    %c0_0 = arith.constant 0 : index
    %0 = vector.load %arg1[%c0, %c0_0] : memref<16x32xf32, #tpu.memory_space<vmem>>, vector<16x32xf32>
    %1 = vector.shape_cast %0 : vector<16x32xf32> to vector<2x8x32xf32>
    %cst = arith.constant 0.000000e+00 : f32
    %2 = vector.broadcast %cst : f32 to vector<2x8x32xf32>
    %3 = arith.cmpf one, %1, %2 : vector<2x8x32xf32>
    %4 = arith.extui %3 : vector<2x8x32xi1> to vector<2x8x32xi32>
    %5 = arith.sitofp %4 : vector<2x8x32xi32> to vector<2x8x32xf32>
    %cst_1 = arith.constant dense<0.000000e+00> : vector<2x8xf32>
    %6 = vector.multi_reduction <add>, %5, %cst_1 [2] : vector<2x8x32xf32> to vector<2x8xf32>
    %7 = vector.shape_cast %6 : vector<2x8xf32> to vector<2x8x1xf32>
    %cst_2 = arith.constant 0.000000e+00 : f32
    %8 = vector.broadcast %cst_2 : f32 to vector<2x8x1xf32>
    %9 = arith.cmpf ogt, %7, %8 : vector<2x8x1xf32>
    %10 = arith.extui %9 : vector<2x8x1xi1> to vector<2x8x1xi32>
    %11 = arith.sitofp %10 : vector<2x8x1xi32> to vector<2x8x1xf32>
    %12 = vector.broadcast %11 : vector<2x8x1xf32> to vector<2x8x32xf32>
    %13 = arith.mulf %1, %12 : vector<2x8x32xf32>
    %cst_3 = arith.constant dense<0.000000e+00> : vector<2x32xf32>
    %14 = vector.multi_reduction <add>, %13, %cst_3 [1] : vector<2x8x32xf32> to vector<2x32xf32>
    %cst_4 = arith.constant dense<0.000000e+00> : vector<2x1xf32>
    %15 = vector.multi_reduction <add>, %11, %cst_4 [1] : vector<2x8x1xf32> to vector<2x1xf32>
    %16 = vector.broadcast %15 : vector<2x1xf32> to vector<2x32xf32>
    %17 = arith.divf %14, %16 : vector<2x32xf32>
    %c0_5 = arith.constant 0 : index
    %c0_6 = arith.constant 0 : index
    %18 = vector.load %arg2[%c0_5, %c0_6] : memref<1x32xf32, #tpu.memory_space<vmem>>, vector<1x32xf32>
    %cst_7 = arith.constant dense<0.000000e+00> : vector<1x2xf32>
    %19 = tpu.matmul %18, %17, %cst_7 {dimension_numbers = #tpu.dot_dimension_numbers<[1], [1], [0], [0], [0, 0, 1, 0], [], []>} : vector<1x32xf32>, vector<2x32xf32>, vector<1x2xf32> -> vector<1x2xf32>
    %c0_8 = arith.constant 0 : index
    %c0_9 = arith.constant 0 : index
    %20 = vector.load %arg3[%c0_8, %c0_9] : memref<1x1xf32, #tpu.memory_space<vmem>>, vector<1x1xf32>
    %21 = vector.broadcast %20 : vector<1x1xf32> to vector<1x2xf32>
    %22 = arith.addf %19, %21 : vector<1x2xf32>
    %23 = arith.negf %22 : vector<1x2xf32>
    %24 = math.exp %23 : vector<1x2xf32>
    %cst_10 = arith.constant 1.000000e+00 : f32
    %25 = vector.broadcast %cst_10 : f32 to vector<1x2xf32>
    %26 = arith.addf %25, %24 : vector<1x2xf32>
    %27 = arith.divf %25, %26 : vector<1x2xf32>
    %28 = vector.shape_cast %27 : vector<1x2xf32> to vector<1x1x2xf32>
    %c0_11 = arith.constant 0 : index
    %c0_12 = arith.constant 0 : index
    %c0_13 = arith.constant 0 : index
    %29 = vector.load %arg4[%c0_11, %c0_12, %c0_13] : memref<1x1x2xf32, #tpu.memory_space<vmem>>, vector<1x1x2xf32>
    tpu.vector_store %arg4[%c0_11, %c0_12, %c0_13], %28 {strides = array<i32>} : memref<1x1x2xf32, #tpu.memory_space<vmem>>, vector<1x1x2xf32>,
    return
  }
  func.func @transform_0(%arg0: i32) -> (i32, i32) {
    %c0_i32 = arith.constant 0 : i32
    %c0_i32_0 = arith.constant 0 : i32
    return %arg0, %c0_i32 : i32, i32
  }
  func.func @transform_1(%arg0: i32) -> (i32, i32) {
    %c0_i32 = arith.constant 0 : i32
    %c0_i32_0 = arith.constant 0 : i32
    %c0_i32_1 = arith.constant 0 : i32
    return %c0_i32, %c0_i32_0 : i32, i32
  }
  func.func @transform_2(%arg0: i32) -> (i32, i32) {
    %c0_i32 = arith.constant 0 : i32
    %c0_i32_0 = arith.constant 0 : i32
    %c0_i32_1 = arith.constant 0 : i32
    return %c0_i32, %c0_i32_0 : i32, i32
  }
  func.func @transform_3(%arg0: i32) -> (i32, i32, i32) {
    %c0_i32 = arith.constant 0 : i32
    %c0_i32_0 = arith.constant 0 : i32
    %c0_i32_1 = arith.constant 0 : i32
    return %arg0, %c0_i32, %c0_i32_0 : i32, i32, i32
  }
}

module attributes {stable_mosaic.version = 11 : i64} {
  func.func @_roformer_layer_kernel(%arg0: i32, %arg1: i32, %arg2: memref<16x32xf32, #tpu.memory_space<vmem>>, %arg3: memref<16x1xf32, #tpu.memory_space<vmem>>, %arg4: memref<8x32xf32, #tpu.memory_space<vmem>>, %arg5: memref<8x32xf32, #tpu.memory_space<vmem>>, %arg6: memref<32x32xbf16, #tpu.memory_space<vmem>>, %arg7: memref<1x32xf32, #tpu.memory_space<vmem>>, %arg8: memref<32x32xbf16, #tpu.memory_space<vmem>>, %arg9: memref<1x32xf32, #tpu.memory_space<vmem>>, %arg10: memref<32x32xbf16, #tpu.memory_space<vmem>>, %arg11: memref<1x32xf32, #tpu.memory_space<vmem>>, %arg12: memref<32x32xbf16, #tpu.memory_space<vmem>>, %arg13: memref<1x32xf32, #tpu.memory_space<vmem>>, %arg14: memref<1x32xf32, #tpu.memory_space<vmem>>, %arg15: memref<1x32xf32, #tpu.memory_space<vmem>>, %arg16: memref<32x128xbf16, #tpu.memory_space<vmem>>, %arg17: memref<1x128xf32, #tpu.memory_space<vmem>>, %arg18: memref<128x32xbf16, #tpu.memory_space<vmem>>, %arg19: memref<1x32xf32, #tpu.memory_space<vmem>>, %arg20: memref<1x32xf32, #tpu.memory_space<vmem>>, %arg21: memref<1x32xf32, #tpu.memory_space<vmem>>, %arg22: memref<16x32xf32, #tpu.memory_space<vmem>>, %arg23: memref<16x32xf32, #tpu.memory_space<vmem>>, %arg24: memref<16x32xf32, #tpu.memory_space<vmem>>) attributes {dimension_semantics = [#tpu.dimension_semantics<parallel>, #tpu.dimension_semantics<arbitrary>], iteration_bounds = array<i64: 1, 1>, scalar_prefetch = 0 : i64, scratch_operands = 2 : i64, tpu.core_type = #tpu.core_type<tc>, window_params = [{transform_indices = @transform_0, window_bounds = array<i64: 16, 32>}, {transform_indices = @transform_1, window_bounds = array<i64: 16, 1>}, {pipeline_mode = #tpu.pipeline_mode<synchronous>, transform_indices = @transform_2, window_bounds = array<i64: 8, 32>}, {pipeline_mode = #tpu.pipeline_mode<synchronous>, transform_indices = @transform_3, window_bounds = array<i64: 8, 32>}, {pipeline_mode = #tpu.pipeline_mode<synchronous>, transform_indices = @transform_4, window_bounds = array<i64: 32, 32>}, {pipeline_mode = #tpu.pipeline_mode<synchronous>, transform_indices = @transform_5, window_bounds = array<i64: 1, 32>}, {pipeline_mode = #tpu.pipeline_mode<synchronous>, transform_indices = @transform_6, window_bounds = array<i64: 32, 32>}, {pipeline_mode = #tpu.pipeline_mode<synchronous>, transform_indices = @transform_7, window_bounds = array<i64: 1, 32>}, {pipeline_mode = #tpu.pipeline_mode<synchronous>, transform_indices = @transform_8, window_bounds = array<i64: 32, 32>}, {pipeline_mode = #tpu.pipeline_mode<synchronous>, transform_indices = @transform_9, window_bounds = array<i64: 1, 32>}, {pipeline_mode = #tpu.pipeline_mode<synchronous>, transform_indices = @transform_10, window_bounds = array<i64: 32, 32>}, {pipeline_mode = #tpu.pipeline_mode<synchronous>, transform_indices = @transform_11, window_bounds = array<i64: 1, 32>}, {pipeline_mode = #tpu.pipeline_mode<synchronous>, transform_indices = @transform_12, window_bounds = array<i64: 1, 32>}, {pipeline_mode = #tpu.pipeline_mode<synchronous>, transform_indices = @transform_13, window_bounds = array<i64: 1, 32>}, {transform_indices = @transform_14, window_bounds = array<i64: 32, 128>}, {transform_indices = @transform_15, window_bounds = array<i64: 1, 128>}, {transform_indices = @transform_16, window_bounds = array<i64: 128, 32>}, {pipeline_mode = #tpu.pipeline_mode<synchronous>, transform_indices = @transform_17, window_bounds = array<i64: 1, 32>}, {pipeline_mode = #tpu.pipeline_mode<synchronous>, transform_indices = @transform_18, window_bounds = array<i64: 1, 32>}, {pipeline_mode = #tpu.pipeline_mode<synchronous>, transform_indices = @transform_19, window_bounds = array<i64: 1, 32>}, {transform_indices = @transform_20, window_bounds = array<i64: 16, 32>}]} {
    %c0_i32 = arith.constant 0 : i32
    %0 = arith.cmpi eq, %arg1, %c0_i32 : i32
    %1 = arith.extui %0 : i1 to i32
    %c0_i32_0 = arith.constant 0 : i32
    %2 = arith.cmpi ne, %1, %c0_i32_0 : i32
    scf.if %2 {
      %c0_30 = arith.constant 0 : index
      %c0_31 = arith.constant 0 : index
      %59 = vector.load %arg2[%c0_30, %c0_31] : memref<16x32xf32, #tpu.memory_space<vmem>>, vector<16x32xf32>
      %60 = arith.truncf %59 : vector<16x32xf32> to vector<16x32xbf16>
      %c0_32 = arith.constant 0 : index
      %c0_33 = arith.constant 0 : index
      %61 = vector.load %arg6[%c0_32, %c0_33] : memref<32x32xbf16, #tpu.memory_space<vmem>>, vector<32x32xbf16>
      %cst_34 = arith.constant dense<0.000000e+00> : vector<16x32xf32>
      %62 = tpu.matmul %60, %61, %cst_34 {dimension_numbers = #tpu.dot_dimension_numbers<[1], [0], [0], [1], [0, 0, 1, 1], [], []>} : vector<16x32xbf16>, vector<32x32xbf16>, vector<16x32xf32> -> vector<16x32xf32>
      %c0_35 = arith.constant 0 : index
      %c0_36 = arith.constant 0 : index
      %63 = vector.load %arg7[%c0_35, %c0_36] : memref<1x32xf32, #tpu.memory_space<vmem>>, vector<1x32xf32>
      %64 = vector.broadcast %63 : vector<1x32xf32> to vector<16x32xf32>
      %65 = arith.addf %62, %64 : vector<16x32xf32>
      %c0_37 = arith.constant 0 : index
      %c0_38 = arith.constant 0 : index
      %66 = vector.load %arg8[%c0_37, %c0_38] : memref<32x32xbf16, #tpu.memory_space<vmem>>, vector<32x32xbf16>
      %cst_39 = arith.constant dense<0.000000e+00> : vector<16x32xf32>
      %67 = tpu.matmul %60, %66, %cst_39 {dimension_numbers = #tpu.dot_dimension_numbers<[1], [0], [0], [1], [0, 0, 1, 1], [], []>} : vector<16x32xbf16>, vector<32x32xbf16>, vector<16x32xf32> -> vector<16x32xf32>
      %c0_40 = arith.constant 0 : index
      %c0_41 = arith.constant 0 : index
      %68 = vector.load %arg9[%c0_40, %c0_41] : memref<1x32xf32, #tpu.memory_space<vmem>>, vector<1x32xf32>
      %69 = vector.broadcast %68 : vector<1x32xf32> to vector<16x32xf32>
      %70 = arith.addf %67, %69 : vector<16x32xf32>
      %c0_42 = arith.constant 0 : index
      %c0_43 = arith.constant 0 : index
      %71 = vector.load %arg10[%c0_42, %c0_43] : memref<32x32xbf16, #tpu.memory_space<vmem>>, vector<32x32xbf16>
      %cst_44 = arith.constant dense<0.000000e+00> : vector<16x32xf32>
      %72 = tpu.matmul %60, %71, %cst_44 {dimension_numbers = #tpu.dot_dimension_numbers<[1], [0], [0], [1], [0, 0, 1, 1], [], []>} : vector<16x32xbf16>, vector<32x32xbf16>, vector<16x32xf32> -> vector<16x32xf32>
      %c0_45 = arith.constant 0 : index
      %c0_46 = arith.constant 0 : index
      %73 = vector.load %arg11[%c0_45, %c0_46] : memref<1x32xf32, #tpu.memory_space<vmem>>, vector<1x32xf32>
      %74 = vector.broadcast %73 : vector<1x32xf32> to vector<16x32xf32>
      %75 = arith.addf %72, %74 : vector<16x32xf32>
      %76 = vector.shape_cast %65 : vector<16x32xf32> to vector<2x8x32xf32>
      %77 = vector.shape_cast %70 : vector<16x32xf32> to vector<2x8x32xf32>
      %78 = vector.shape_cast %75 : vector<16x32xf32> to vector<2x8x32xf32>
      %c0_47 = arith.constant 0 : index
      %c0_48 = arith.constant 0 : index
      %79 = vector.load %arg4[%c0_47, %c0_48] : memref<8x32xf32, #tpu.memory_space<vmem>>, vector<8x32xf32>
      %80 = vector.shape_cast %79 : vector<8x32xf32> to vector<1x8x32xf32>
      %c0_49 = arith.constant 0 : index
      %c0_50 = arith.constant 0 : index
      %81 = vector.load %arg5[%c0_49, %c0_50] : memref<8x32xf32, #tpu.memory_space<vmem>>, vector<8x32xf32>
      %82 = vector.shape_cast %81 : vector<8x32xf32> to vector<1x8x32xf32>
      %83 = vector.broadcast %80 : vector<1x8x32xf32> to vector<2x8x32xf32>
      %84 = arith.mulf %76, %83 : vector<2x8x32xf32>
      %85 = vector.extract_strided_slice %76 {offsets = [0, 0, 1], sizes = [2, 8, 31], strides = [1, 1, 1]} : vector<2x8x32xf32> to vector<2x8x31xf32>
      %86 = vector.extract_strided_slice %76 {offsets = [0, 0, 0], sizes = [2, 8, 1], strides = [1, 1, 1]} : vector<2x8x32xf32> to vector<2x8x1xf32>
      %87 = tpu.concatenate %85, %86 in 2 : vector<2x8x31xf32>, vector<2x8x1xf32> -> vector<2x8x32xf32>
      %88 = vector.extract_strided_slice %76 {offsets = [0, 0, 31], sizes = [2, 8, 1], strides = [1, 1, 1]} : vector<2x8x32xf32> to vector<2x8x1xf32>
      %89 = vector.extract_strided_slice %76 {offsets = [0, 0, 0], sizes = [2, 8, 31], strides = [1, 1, 1]} : vector<2x8x32xf32> to vector<2x8x31xf32>
      %90 = tpu.concatenate %88, %89 in 2 : vector<2x8x1xf32>, vector<2x8x31xf32> -> vector<2x8x32xf32>
      %91 = tpu.iota {dimensions = array<i32: 2>} : vector<2x8x32xi32>
      %c2_i32 = arith.constant 2 : i32
      %c0_i32_51 = arith.constant 0 : i32
      %92 = arith.cmpi eq, %c2_i32, %c0_i32_51 : i32
      %c1_i32 = arith.constant 1 : i32
      %93 = arith.select %92, %c1_i32, %c2_i32 : i32
      %94 = vector.broadcast %93 : i32 to vector<2x8x32xi32>
      %95 = arith.remsi %91, %94 : vector<2x8x32xi32>
      %c0_i32_52 = arith.constant 0 : i32
      %96 = vector.broadcast %c0_i32_52 : i32 to vector<2x8x32xi32>
      %97 = arith.cmpi ne, %95, %96 : vector<2x8x32xi32>
      %c0_i32_53 = arith.constant 0 : i32
      %98 = vector.broadcast %c0_i32_53 : i32 to vector<2x8x32xi32>
      %99 = arith.cmpi slt, %95, %98 : vector<2x8x32xi32>
      %c0_i32_54 = arith.constant 0 : i32
      %100 = arith.cmpi slt, %93, %c0_i32_54 : i32
      %101 = vector.broadcast %100 : i1 to vector<2x8x32xi1>
      %102 = vector.broadcast %101 : vector<2x8x32xi1> to vector<2x8x32xi1>
      %103 = arith.xori %99, %102 : vector<2x8x32xi1>
      %104 = arith.andi %103, %97 : vector<2x8x32xi1>
      %105 = vector.broadcast %93 : i32 to vector<2x8x32xi32>
      %106 = arith.addi %95, %105 : vector<2x8x32xi32>
      %107 = arith.select %104, %106, %95 : vector<2x8x32xi1>, vector<2x8x32xi32>
      %c0_i32_55 = arith.constant 0 : i32
      %108 = vector.broadcast %c0_i32_55 : i32 to vector<2x8x32xi32>
      %109 = arith.cmpi eq, %107, %108 : vector<2x8x32xi32>
      %110 = arith.select %109, %87, %90 : vector<2x8x32xi1>, vector<2x8x32xf32>
      %111 = vector.broadcast %82 : vector<1x8x32xf32> to vector<2x8x32xf32>
      %112 = arith.mulf %110, %111 : vector<2x8x32xf32>
      %113 = arith.addf %84, %112 : vector<2x8x32xf32>
      %114 = vector.broadcast %80 : vector<1x8x32xf32> to vector<2x8x32xf32>
      %115 = arith.mulf %77, %114 : vector<2x8x32xf32>
      %116 = vector.extract_strided_slice %77 {offsets = [0, 0, 1], sizes = [2, 8, 31], strides = [1, 1, 1]} : vector<2x8x32xf32> to vector<2x8x31xf32>
      %117 = vector.extract_strided_slice %77 {offsets = [0, 0, 0], sizes = [2, 8, 1], strides = [1, 1, 1]} : vector<2x8x32xf32> to vector<2x8x1xf32>
      %118 = tpu.concatenate %116, %117 in 2 : vector<2x8x31xf32>, vector<2x8x1xf32> -> vector<2x8x32xf32>
      %119 = vector.extract_strided_slice %77 {offsets = [0, 0, 31], sizes = [2, 8, 1], strides = [1, 1, 1]} : vector<2x8x32xf32> to vector<2x8x1xf32>
      %120 = vector.extract_strided_slice %77 {offsets = [0, 0, 0], sizes = [2, 8, 31], strides = [1, 1, 1]} : vector<2x8x32xf32> to vector<2x8x31xf32>
      %121 = tpu.concatenate %119, %120 in 2 : vector<2x8x1xf32>, vector<2x8x31xf32> -> vector<2x8x32xf32>
      %122 = tpu.iota {dimensions = array<i32: 2>} : vector<2x8x32xi32>
      %c2_i32_56 = arith.constant 2 : i32
      %c0_i32_57 = arith.constant 0 : i32
      %123 = arith.cmpi eq, %c2_i32_56, %c0_i32_57 : i32
      %c1_i32_58 = arith.constant 1 : i32
      %124 = arith.select %123, %c1_i32_58, %c2_i32_56 : i32
      %125 = vector.broadcast %124 : i32 to vector<2x8x32xi32>
      %126 = arith.remsi %122, %125 : vector<2x8x32xi32>
      %c0_i32_59 = arith.constant 0 : i32
      %127 = vector.broadcast %c0_i32_59 : i32 to vector<2x8x32xi32>
      %128 = arith.cmpi ne, %126, %127 : vector<2x8x32xi32>
      %c0_i32_60 = arith.constant 0 : i32
      %129 = vector.broadcast %c0_i32_60 : i32 to vector<2x8x32xi32>
      %130 = arith.cmpi slt, %126, %129 : vector<2x8x32xi32>
      %c0_i32_61 = arith.constant 0 : i32
      %131 = arith.cmpi slt, %124, %c0_i32_61 : i32
      %132 = vector.broadcast %131 : i1 to vector<2x8x32xi1>
      %133 = vector.broadcast %132 : vector<2x8x32xi1> to vector<2x8x32xi1>
      %134 = arith.xori %130, %133 : vector<2x8x32xi1>
      %135 = arith.andi %134, %128 : vector<2x8x32xi1>
      %136 = vector.broadcast %124 : i32 to vector<2x8x32xi32>
      %137 = arith.addi %126, %136 : vector<2x8x32xi32>
      %138 = arith.select %135, %137, %126 : vector<2x8x32xi1>, vector<2x8x32xi32>
      %c0_i32_62 = arith.constant 0 : i32
      %139 = vector.broadcast %c0_i32_62 : i32 to vector<2x8x32xi32>
      %140 = arith.cmpi eq, %138, %139 : vector<2x8x32xi32>
      %141 = arith.select %140, %118, %121 : vector<2x8x32xi1>, vector<2x8x32xf32>
      %142 = vector.broadcast %82 : vector<1x8x32xf32> to vector<2x8x32xf32>
      %143 = arith.mulf %141, %142 : vector<2x8x32xf32>
      %144 = arith.addf %115, %143 : vector<2x8x32xf32>
      %c0_63 = arith.constant 0 : index
      %c0_64 = arith.constant 0 : index
      %145 = vector.load %arg3[%c0_63, %c0_64] : memref<16x1xf32, #tpu.memory_space<vmem>>, vector<16x1xf32>
      %146 = vector.shape_cast %145 : vector<16x1xf32> to vector<2x8x1xf32>
      %cst_65 = arith.constant 0.000000e+00 : f32
      %147 = vector.broadcast %cst_65 : f32 to vector<16x32xf32>
      %148 = vector.extract_strided_slice %113 {offsets = [0, 0, 0], sizes = [2, 8, 8], strides = [1, 1, 1]} : vector<2x8x32xf32> to vector<2x8x8xf32>
      %149 = arith.truncf %148 : vector<2x8x8xf32> to vector<2x8x8xbf16>
      %150 = vector.extract_strided_slice %144 {offsets = [0, 0, 0], sizes = [2, 8, 8], strides = [1, 1, 1]} : vector<2x8x32xf32> to vector<2x8x8xf32>
      %151 = arith.truncf %150 : vector<2x8x8xf32> to vector<2x8x8xbf16>
      %152 = vector.extract_strided_slice %78 {offsets = [0, 0, 0], sizes = [2, 8, 8], strides = [1, 1, 1]} : vector<2x8x32xf32> to vector<2x8x8xf32>
      %153 = arith.truncf %152 : vector<2x8x8xf32> to vector<2x8x8xbf16>
      "tpu.trace_start"() <{level = 10 : i32, message = "gqd,gkd->gqk"}> : () -> ()
      %cst_66 = arith.constant dense<0.000000e+00> : vector<2x8x8xf32>
      %154 = tpu.matmul %149, %151, %cst_66 {dimension_numbers = #tpu.dot_dimension_numbers<[2], [2], [1], [1], [0, 0, 0, 1, 1, 1], [0], [0]>} : vector<2x8x8xbf16>, vector<2x8x8xbf16>, vector<2x8x8xf32> -> vector<2x8x8xf32>
      "tpu.trace_stop"() : () -> ()
      %cst_67 = arith.constant 0.353553385 : f32
      %155 = vector.broadcast %cst_67 : f32 to vector<2x8x8xf32>
      %156 = arith.mulf %154, %155 : vector<2x8x8xf32>
      %157 = vector.broadcast %146 : vector<2x8x1xf32> to vector<2x8x8xf32>
      %158 = arith.addf %156, %157 : vector<2x8x8xf32>
      %cst_68 = arith.constant dense<0xFF800000> : vector<2x8xf32>
      %159 = vector.multi_reduction <maximumf>, %158, %cst_68 [2] : vector<2x8x8xf32> to vector<2x8xf32>
      %160 = vector.shape_cast %159 : vector<2x8xf32> to vector<2x8x1xf32>
      %161 = vector.broadcast %160 : vector<2x8x1xf32> to vector<2x8x8xf32>
      %162 = arith.subf %158, %161 : vector<2x8x8xf32>
      %163 = math.exp %162 : vector<2x8x8xf32>
      %cst_69 = arith.constant dense<0.000000e+00> : vector<2x8xf32>
      %164 = vector.multi_reduction <add>, %163, %cst_69 [2] : vector<2x8x8xf32> to vector<2x8xf32>
      %165 = vector.shape_cast %164 : vector<2x8xf32> to vector<2x8x1xf32>
      %166 = tpu.reciprocal %165 {approx = true} : vector<2x8x1xf32> -> vector<2x8x1xf32>
      %167 = vector.broadcast %166 : vector<2x8x1xf32> to vector<2x8x8xf32>
      %168 = arith.mulf %163, %167 : vector<2x8x8xf32>
      %169 = arith.truncf %168 : vector<2x8x8xf32> to vector<2x8x8xbf16>
      "tpu.trace_start"() <{level = 10 : i32, message = "gqk,gkd->gqd"}> : () -> ()
      %cst_70 = arith.constant dense<0.000000e+00> : vector<2x8x8xf32>
      %170 = tpu.matmul %169, %153, %cst_70 {dimension_numbers = #tpu.dot_dimension_numbers<[2], [1], [1], [2], [0, 0, 0, 1, 1, 2], [0], [0]>} : vector<2x8x8xbf16>, vector<2x8x8xbf16>, vector<2x8x8xf32> -> vector<2x8x8xf32>
      "tpu.trace_stop"() : () -> ()
      %171 = vector.shape_cast %170 : vector<2x8x8xf32> to vector<16x8xf32>
      %172 = arith.truncf %171 : vector<16x8xf32> to vector<16x8xbf16>
      %c0_71 = arith.constant 0 : index
      %c0_72 = arith.constant 0 : index
      %173 = vector.load %arg12[%c0_71, %c0_72] : memref<32x32xbf16, #tpu.memory_space<vmem>>, vector<8x32xbf16>
      %cst_73 = arith.constant dense<0.000000e+00> : vector<16x32xf32>
      %174 = tpu.matmul %172, %173, %cst_73 {dimension_numbers = #tpu.dot_dimension_numbers<[1], [0], [0], [1], [0, 0, 1, 1], [], []>} : vector<16x8xbf16>, vector<8x32xbf16>, vector<16x32xf32> -> vector<16x32xf32>
      %175 = arith.addf %147, %174 : vector<16x32xf32>
      %176 = vector.extract_strided_slice %113 {offsets = [0, 0, 8], sizes = [2, 8, 8], strides = [1, 1, 1]} : vector<2x8x32xf32> to vector<2x8x8xf32>
      %177 = arith.truncf %176 : vector<2x8x8xf32> to vector<2x8x8xbf16>
      %178 = vector.extract_strided_slice %144 {offsets = [0, 0, 8], sizes = [2, 8, 8], strides = [1, 1, 1]} : vector<2x8x32xf32> to vector<2x8x8xf32>
      %179 = arith.truncf %178 : vector<2x8x8xf32> to vector<2x8x8xbf16>
      %180 = vector.extract_strided_slice %78 {offsets = [0, 0, 8], sizes = [2, 8, 8], strides = [1, 1, 1]} : vector<2x8x32xf32> to vector<2x8x8xf32>
      %181 = arith.truncf %180 : vector<2x8x8xf32> to vector<2x8x8xbf16>
      "tpu.trace_start"() <{level = 10 : i32, message = "gqd,gkd->gqk"}> : () -> ()
      %cst_74 = arith.constant dense<0.000000e+00> : vector<2x8x8xf32>
      %182 = tpu.matmul %177, %179, %cst_74 {dimension_numbers = #tpu.dot_dimension_numbers<[2], [2], [1], [1], [0, 0, 0, 1, 1, 1], [0], [0]>} : vector<2x8x8xbf16>, vector<2x8x8xbf16>, vector<2x8x8xf32> -> vector<2x8x8xf32>
      "tpu.trace_stop"() : () -> ()
      %cst_75 = arith.constant 0.353553385 : f32
      %183 = vector.broadcast %cst_75 : f32 to vector<2x8x8xf32>
      %184 = arith.mulf %182, %183 : vector<2x8x8xf32>
      %185 = vector.broadcast %146 : vector<2x8x1xf32> to vector<2x8x8xf32>
      %186 = arith.addf %184, %185 : vector<2x8x8xf32>
      %cst_76 = arith.constant dense<0xFF800000> : vector<2x8xf32>
      %187 = vector.multi_reduction <maximumf>, %186, %cst_76 [2] : vector<2x8x8xf32> to vector<2x8xf32>
      %188 = vector.shape_cast %187 : vector<2x8xf32> to vector<2x8x1xf32>
      %189 = vector.broadcast %188 : vector<2x8x1xf32> to vector<2x8x8xf32>
      %190 = arith.subf %186, %189 : vector<2x8x8xf32>
      %191 = math.exp %190 : vector<2x8x8xf32>
      %cst_77 = arith.constant dense<0.000000e+00> : vector<2x8xf32>
      %192 = vector.multi_reduction <add>, %191, %cst_77 [2] : vector<2x8x8xf32> to vector<2x8xf32>
      %193 = vector.shape_cast %192 : vector<2x8xf32> to vector<2x8x1xf32>
      %194 = tpu.reciprocal %193 {approx = true} : vector<2x8x1xf32> -> vector<2x8x1xf32>
      %195 = vector.broadcast %194 : vector<2x8x1xf32> to vector<2x8x8xf32>
      %196 = arith.mulf %191, %195 : vector<2x8x8xf32>
      %197 = arith.truncf %196 : vector<2x8x8xf32> to vector<2x8x8xbf16>
      "tpu.trace_start"() <{level = 10 : i32, message = "gqk,gkd->gqd"}> : () -> ()
      %cst_78 = arith.constant dense<0.000000e+00> : vector<2x8x8xf32>
      %198 = tpu.matmul %197, %181, %cst_78 {dimension_numbers = #tpu.dot_dimension_numbers<[2], [1], [1], [2], [0, 0, 0, 1, 1, 2], [0], [0]>} : vector<2x8x8xbf16>, vector<2x8x8xbf16>, vector<2x8x8xf32> -> vector<2x8x8xf32>
      "tpu.trace_stop"() : () -> ()
      %199 = vector.shape_cast %198 : vector<2x8x8xf32> to vector<16x8xf32>
      %200 = arith.truncf %199 : vector<16x8xf32> to vector<16x8xbf16>
      %c8 = arith.constant 8 : index
      %c0_79 = arith.constant 0 : index
      %201 = vector.load %arg12[%c8, %c0_79] : memref<32x32xbf16, #tpu.memory_space<vmem>>, vector<8x32xbf16>
      %cst_80 = arith.constant dense<0.000000e+00> : vector<16x32xf32>
      %202 = tpu.matmul %200, %201, %cst_80 {dimension_numbers = #tpu.dot_dimension_numbers<[1], [0], [0], [1], [0, 0, 1, 1], [], []>} : vector<16x8xbf16>, vector<8x32xbf16>, vector<16x32xf32> -> vector<16x32xf32>
      %203 = arith.addf %175, %202 : vector<16x32xf32>
      %204 = vector.extract_strided_slice %113 {offsets = [0, 0, 16], sizes = [2, 8, 8], strides = [1, 1, 1]} : vector<2x8x32xf32> to vector<2x8x8xf32>
      %205 = arith.truncf %204 : vector<2x8x8xf32> to vector<2x8x8xbf16>
      %206 = vector.extract_strided_slice %144 {offsets = [0, 0, 16], sizes = [2, 8, 8], strides = [1, 1, 1]} : vector<2x8x32xf32> to vector<2x8x8xf32>
      %207 = arith.truncf %206 : vector<2x8x8xf32> to vector<2x8x8xbf16>
      %208 = vector.extract_strided_slice %78 {offsets = [0, 0, 16], sizes = [2, 8, 8], strides = [1, 1, 1]} : vector<2x8x32xf32> to vector<2x8x8xf32>
      %209 = arith.truncf %208 : vector<2x8x8xf32> to vector<2x8x8xbf16>
      "tpu.trace_start"() <{level = 10 : i32, message = "gqd,gkd->gqk"}> : () -> ()
      %cst_81 = arith.constant dense<0.000000e+00> : vector<2x8x8xf32>
      %210 = tpu.matmul %205, %207, %cst_81 {dimension_numbers = #tpu.dot_dimension_numbers<[2], [2], [1], [1], [0, 0, 0, 1, 1, 1], [0], [0]>} : vector<2x8x8xbf16>, vector<2x8x8xbf16>, vector<2x8x8xf32> -> vector<2x8x8xf32>
      "tpu.trace_stop"() : () -> ()
      %cst_82 = arith.constant 0.353553385 : f32
      %211 = vector.broadcast %cst_82 : f32 to vector<2x8x8xf32>
      %212 = arith.mulf %210, %211 : vector<2x8x8xf32>
      %213 = vector.broadcast %146 : vector<2x8x1xf32> to vector<2x8x8xf32>
      %214 = arith.addf %212, %213 : vector<2x8x8xf32>
      %cst_83 = arith.constant dense<0xFF800000> : vector<2x8xf32>
      %215 = vector.multi_reduction <maximumf>, %214, %cst_83 [2] : vector<2x8x8xf32> to vector<2x8xf32>
      %216 = vector.shape_cast %215 : vector<2x8xf32> to vector<2x8x1xf32>
      %217 = vector.broadcast %216 : vector<2x8x1xf32> to vector<2x8x8xf32>
      %218 = arith.subf %214, %217 : vector<2x8x8xf32>
      %219 = math.exp %218 : vector<2x8x8xf32>
      %cst_84 = arith.constant dense<0.000000e+00> : vector<2x8xf32>
      %220 = vector.multi_reduction <add>, %219, %cst_84 [2] : vector<2x8x8xf32> to vector<2x8xf32>
      %221 = vector.shape_cast %220 : vector<2x8xf32> to vector<2x8x1xf32>
      %222 = tpu.reciprocal %221 {approx = true} : vector<2x8x1xf32> -> vector<2x8x1xf32>
      %223 = vector.broadcast %222 : vector<2x8x1xf32> to vector<2x8x8xf32>
      %224 = arith.mulf %219, %223 : vector<2x8x8xf32>
      %225 = arith.truncf %224 : vector<2x8x8xf32> to vector<2x8x8xbf16>
      "tpu.trace_start"() <{level = 10 : i32, message = "gqk,gkd->gqd"}> : () -> ()
      %cst_85 = arith.constant dense<0.000000e+00> : vector<2x8x8xf32>
      %226 = tpu.matmul %225, %209, %cst_85 {dimension_numbers = #tpu.dot_dimension_numbers<[2], [1], [1], [2], [0, 0, 0, 1, 1, 2], [0], [0]>} : vector<2x8x8xbf16>, vector<2x8x8xbf16>, vector<2x8x8xf32> -> vector<2x8x8xf32>
      "tpu.trace_stop"() : () -> ()
      %227 = vector.shape_cast %226 : vector<2x8x8xf32> to vector<16x8xf32>
      %228 = arith.truncf %227 : vector<16x8xf32> to vector<16x8xbf16>
      %c16 = arith.constant 16 : index
      %c0_86 = arith.constant 0 : index
      %229 = vector.load %arg12[%c16, %c0_86] : memref<32x32xbf16, #tpu.memory_space<vmem>>, vector<8x32xbf16>
      %cst_87 = arith.constant dense<0.000000e+00> : vector<16x32xf32>
      %230 = tpu.matmul %228, %229, %cst_87 {dimension_numbers = #tpu.dot_dimension_numbers<[1], [0], [0], [1], [0, 0, 1, 1], [], []>} : vector<16x8xbf16>, vector<8x32xbf16>, vector<16x32xf32> -> vector<16x32xf32>
      %231 = arith.addf %203, %230 : vector<16x32xf32>
      %232 = vector.extract_strided_slice %113 {offsets = [0, 0, 24], sizes = [2, 8, 8], strides = [1, 1, 1]} : vector<2x8x32xf32> to vector<2x8x8xf32>
      %233 = arith.truncf %232 : vector<2x8x8xf32> to vector<2x8x8xbf16>
      %234 = vector.extract_strided_slice %144 {offsets = [0, 0, 24], sizes = [2, 8, 8], strides = [1, 1, 1]} : vector<2x8x32xf32> to vector<2x8x8xf32>
      %235 = arith.truncf %234 : vector<2x8x8xf32> to vector<2x8x8xbf16>
      %236 = vector.extract_strided_slice %78 {offsets = [0, 0, 24], sizes = [2, 8, 8], strides = [1, 1, 1]} : vector<2x8x32xf32> to vector<2x8x8xf32>
      %237 = arith.truncf %236 : vector<2x8x8xf32> to vector<2x8x8xbf16>
      "tpu.trace_start"() <{level = 10 : i32, message = "gqd,gkd->gqk"}> : () -> ()
      %cst_88 = arith.constant dense<0.000000e+00> : vector<2x8x8xf32>
      %238 = tpu.matmul %233, %235, %cst_88 {dimension_numbers = #tpu.dot_dimension_numbers<[2], [2], [1], [1], [0, 0, 0, 1, 1, 1], [0], [0]>} : vector<2x8x8xbf16>, vector<2x8x8xbf16>, vector<2x8x8xf32> -> vector<2x8x8xf32>
      "tpu.trace_stop"() : () -> ()
      %cst_89 = arith.constant 0.353553385 : f32
      %239 = vector.broadcast %cst_89 : f32 to vector<2x8x8xf32>
      %240 = arith.mulf %238, %239 : vector<2x8x8xf32>
      %241 = vector.broadcast %146 : vector<2x8x1xf32> to vector<2x8x8xf32>
      %242 = arith.addf %240, %241 : vector<2x8x8xf32>
      %cst_90 = arith.constant dense<0xFF800000> : vector<2x8xf32>
      %243 = vector.multi_reduction <maximumf>, %242, %cst_90 [2] : vector<2x8x8xf32> to vector<2x8xf32>
      %244 = vector.shape_cast %243 : vector<2x8xf32> to vector<2x8x1xf32>
      %245 = vector.broadcast %244 : vector<2x8x1xf32> to vector<2x8x8xf32>
      %246 = arith.subf %242, %245 : vector<2x8x8xf32>
      %247 = math.exp %246 : vector<2x8x8xf32>
      %cst_91 = arith.constant dense<0.000000e+00> : vector<2x8xf32>
      %248 = vector.multi_reduction <add>, %247, %cst_91 [2] : vector<2x8x8xf32> to vector<2x8xf32>
      %249 = vector.shape_cast %248 : vector<2x8xf32> to vector<2x8x1xf32>
      %250 = tpu.reciprocal %249 {approx = true} : vector<2x8x1xf32> -> vector<2x8x1xf32>
      %251 = vector.broadcast %250 : vector<2x8x1xf32> to vector<2x8x8xf32>
      %252 = arith.mulf %247, %251 : vector<2x8x8xf32>
      %253 = arith.truncf %252 : vector<2x8x8xf32> to vector<2x8x8xbf16>
      "tpu.trace_start"() <{level = 10 : i32, message = "gqk,gkd->gqd"}> : () -> ()
      %cst_92 = arith.constant dense<0.000000e+00> : vector<2x8x8xf32>
      %254 = tpu.matmul %253, %237, %cst_92 {dimension_numbers = #tpu.dot_dimension_numbers<[2], [1], [1], [2], [0, 0, 0, 1, 1, 2], [0], [0]>} : vector<2x8x8xbf16>, vector<2x8x8xbf16>, vector<2x8x8xf32> -> vector<2x8x8xf32>
      "tpu.trace_stop"() : () -> ()
      %255 = vector.shape_cast %254 : vector<2x8x8xf32> to vector<16x8xf32>
      %256 = arith.truncf %255 : vector<16x8xf32> to vector<16x8xbf16>
      %c24 = arith.constant 24 : index
      %c0_93 = arith.constant 0 : index
      %257 = vector.load %arg12[%c24, %c0_93] : memref<32x32xbf16, #tpu.memory_space<vmem>>, vector<8x32xbf16>
      %cst_94 = arith.constant dense<0.000000e+00> : vector<16x32xf32>
      %258 = tpu.matmul %256, %257, %cst_94 {dimension_numbers = #tpu.dot_dimension_numbers<[1], [0], [0], [1], [0, 0, 1, 1], [], []>} : vector<16x8xbf16>, vector<8x32xbf16>, vector<16x32xf32> -> vector<16x32xf32>
      %259 = arith.addf %231, %258 : vector<16x32xf32>
      %c0_95 = arith.constant 0 : index
      %c0_96 = arith.constant 0 : index
      %260 = vector.load %arg13[%c0_95, %c0_96] : memref<1x32xf32, #tpu.memory_space<vmem>>, vector<1x32xf32>
      %261 = vector.broadcast %260 : vector<1x32xf32> to vector<16x32xf32>
      %262 = arith.addf %259, %261 : vector<16x32xf32>
      %263 = arith.addf %262, %59 : vector<16x32xf32>
      %c0_97 = arith.constant 0 : index
      %c0_98 = arith.constant 0 : index
      %264 = vector.load %arg14[%c0_97, %c0_98] : memref<1x32xf32, #tpu.memory_space<vmem>>, vector<1x32xf32>
      %c0_99 = arith.constant 0 : index
      %c0_100 = arith.constant 0 : index
      %265 = vector.load %arg15[%c0_99, %c0_100] : memref<1x32xf32, #tpu.memory_space<vmem>>, vector<1x32xf32>
      %cst_101 = arith.constant dense<0.000000e+00> : vector<16xf32>
      %266 = vector.multi_reduction <add>, %263, %cst_101 [1] : vector<16x32xf32> to vector<16xf32>
      %267 = vector.shape_cast %266 : vector<16xf32> to vector<16x1xf32>
      %cst_102 = arith.constant 3.200000e+01 : f32
      %268 = vector.broadcast %cst_102 : f32 to vector<16x1xf32>
      %269 = arith.divf %267, %268 : vector<16x1xf32>
      %270 = vector.broadcast %269 : vector<16x1xf32> to vector<16x32xf32>
      %271 = arith.subf %263, %270 : vector<16x32xf32>
      %272 = vector.broadcast %269 : vector<16x1xf32> to vector<16x32xf32>
      %273 = arith.subf %263, %272 : vector<16x32xf32>
      %274 = arith.mulf %271, %273 : vector<16x32xf32>
      %cst_103 = arith.constant dense<0.000000e+00> : vector<16xf32>
      %275 = vector.multi_reduction <add>, %274, %cst_103 [1] : vector<16x32xf32> to vector<16xf32>
      %276 = vector.shape_cast %275 : vector<16xf32> to vector<16x1xf32>
      %cst_104 = arith.constant 3.200000e+01 : f32
      %277 = vector.broadcast %cst_104 : f32 to vector<16x1xf32>
      %278 = arith.divf %276, %277 : vector<16x1xf32>
      %279 = vector.broadcast %269 : vector<16x1xf32> to vector<16x32xf32>
      %280 = arith.subf %263, %279 : vector<16x32xf32>
      %cst_105 = arith.constant 9.99999996E-13 : f32
      %281 = vector.broadcast %cst_105 : f32 to vector<16x1xf32>
      %282 = arith.addf %278, %281 : vector<16x1xf32>
      %283 = math.rsqrt %282 : vector<16x1xf32>
      %284 = vector.broadcast %283 : vector<16x1xf32> to vector<16x32xf32>
      %285 = arith.mulf %280, %284 : vector<16x32xf32>
      %286 = vector.broadcast %264 : vector<1x32xf32> to vector<16x32xf32>
      %287 = arith.mulf %285, %286 : vector<16x32xf32>
      %288 = vector.broadcast %265 : vector<1x32xf32> to vector<16x32xf32>
      %289 = arith.addf %287, %288 : vector<16x32xf32>
      %c0_106 = arith.constant 0 : index
      %c0_107 = arith.constant 0 : index
      %290 = vector.load %arg23[%c0_106, %c0_107] : memref<16x32xf32, #tpu.memory_space<vmem>>, vector<16x32xf32>
      tpu.vector_store %arg23[%c0_106, %c0_107], %289 {strides = array<i32>} : memref<16x32xf32, #tpu.memory_space<vmem>>, vector<16x32xf32>,
      %cst_108 = arith.constant 0.000000e+00 : f32
      %291 = vector.broadcast %cst_108 : f32 to vector<16x32xf32>
      %c0_109 = arith.constant 0 : index
      %c0_110 = arith.constant 0 : index
      %292 = vector.load %arg24[%c0_109, %c0_110] : memref<16x32xf32, #tpu.memory_space<vmem>>, vector<16x32xf32>
      tpu.vector_store %arg24[%c0_109, %c0_110], %291 {strides = array<i32>} : memref<16x32xf32, #tpu.memory_space<vmem>>, vector<16x32xf32>,
    } else {
    }
    %c0 = arith.constant 0 : index
    %c0_1 = arith.constant 0 : index
    %3 = vector.load %arg23[%c0, %c0_1] : memref<16x32xf32, #tpu.memory_space<vmem>>, vector<16x32xf32>
    %4 = arith.truncf %3 : vector<16x32xf32> to vector<16x32xbf16>
    %c0_2 = arith.constant 0 : index
    %c0_3 = arith.constant 0 : index
    %5 = vector.load %arg16[%c0_2, %c0_3] : memref<32x128xbf16, #tpu.memory_space<vmem>>, vector<32x128xbf16>
    %cst = arith.constant dense<0.000000e+00> : vector<16x128xf32>
    %6 = tpu.matmul %4, %5, %cst {dimension_numbers = #tpu.dot_dimension_numbers<[1], [0], [0], [1], [0, 0, 1, 1], [], []>} : vector<16x32xbf16>, vector<32x128xbf16>, vector<16x128xf32> -> vector<16x128xf32>
    %c0_4 = arith.constant 0 : index
    %c0_5 = arith.constant 0 : index
    %7 = vector.load %arg17[%c0_4, %c0_5] : memref<1x128xf32, #tpu.memory_space<vmem>>, vector<1x128xf32>
    %8 = vector.broadcast %7 : vector<1x128xf32> to vector<16x128xf32>
    %9 = arith.addf %6, %8 : vector<16x128xf32>
    %cst_6 = arith.constant 5.000000e-01 : f32
    %10 = vector.broadcast %cst_6 : f32 to vector<16x128xf32>
    %11 = arith.mulf %10, %9 : vector<16x128xf32>
    %cst_7 = arith.constant 0.707106769 : f32
    %12 = vector.broadcast %cst_7 : f32 to vector<16x128xf32>
    %13 = arith.mulf %9, %12 : vector<16x128xf32>
    %cst_8 = arith.constant 0.000000e+00 : f32
    %14 = vector.broadcast %cst_8 : f32 to vector<16x128xf32>
    %15 = arith.cmpf oge, %13, %14 : vector<16x128xf32>
    %cst_9 = arith.constant 1.000000e+00 : f32
    %cst_10 = arith.constant -1.000000e+00 : f32
    %16 = vector.broadcast %cst_9 : f32 to vector<16x128xf32>
    %17 = vector.broadcast %cst_10 : f32 to vector<16x128xf32>
    %18 = arith.select %15, %16, %17 : vector<16x128xi1>, vector<16x128xf32>
    %19 = math.absf %13 : vector<16x128xf32>
    %cst_11 = arith.constant 0.327591091 : f32
    %20 = vector.broadcast %cst_11 : f32 to vector<16x128xf32>
    %21 = arith.mulf %20, %19 : vector<16x128xf32>
    %cst_12 = arith.constant 1.000000e+00 : f32
    %22 = vector.broadcast %cst_12 : f32 to vector<16x128xf32>
    %23 = arith.addf %22, %21 : vector<16x128xf32>
    %24 = tpu.reciprocal %23 {approx = true} : vector<16x128xf32> -> vector<16x128xf32>
    %cst_13 = arith.constant 1.06140542 : f32
    %25 = vector.broadcast %cst_13 : f32 to vector<16x128xf32>
    %26 = arith.mulf %25, %24 : vector<16x128xf32>
    %cst_14 = arith.constant -1.45315206 : f32
    %27 = vector.broadcast %cst_14 : f32 to vector<16x128xf32>
    %28 = arith.addf %26, %27 : vector<16x128xf32>
    %29 = arith.mulf %28, %24 : vector<16x128xf32>
    %cst_15 = arith.constant 1.42141378 : f32
    %30 = vector.broadcast %cst_15 : f32 to vector<16x128xf32>
    %31 = arith.addf %29, %30 : vector<16x128xf32>
    %32 = arith.mulf %31, %24 : vector<16x128xf32>
    %cst_16 = arith.constant -0.284496725 : f32
    %33 = vector.broadcast %cst_16 : f32 to vector<16x128xf32>
    %34 = arith.addf %32, %33 : vector<16x128xf32>
    %35 = arith.mulf %34, %24 : vector<16x128xf32>
    %cst_17 = arith.constant 0.254829586 : f32
    %36 = vector.broadcast %cst_17 : f32 to vector<16x128xf32>
    %37 = arith.addf %35, %36 : vector<16x128xf32>
    %38 = arith.mulf %37, %24 : vector<16x128xf32>
    %cst_18 = arith.constant 0.000000e+00 : f32
    %39 = vector.broadcast %cst_18 : f32 to vector<16x128xf32>
    %40 = arith.subf %39, %19 : vector<16x128xf32>
    %41 = arith.mulf %40, %19 : vector<16x128xf32>
    %42 = math.exp %41 : vector<16x128xf32>
    %43 = arith.mulf %38, %42 : vector<16x128xf32>
    %cst_19 = arith.constant 1.000000e+00 : f32
    %44 = vector.broadcast %cst_19 : f32 to vector<16x128xf32>
    %45 = arith.subf %44, %43 : vector<16x128xf32>
    %46 = arith.mulf %18, %45 : vector<16x128xf32>
    %cst_20 = arith.constant 1.000000e+00 : f32
    %47 = vector.broadcast %cst_20 : f32 to vector<16x128xf32>
    %48 = arith.addf %47, %46 : vector<16x128xf32>
    %49 = arith.mulf %11, %48 : vector<16x128xf32>
    %c0_21 = arith.constant 0 : index
    %c0_22 = arith.constant 0 : index
    %50 = vector.load %arg24[%c0_21, %c0_22] : memref<16x32xf32, #tpu.memory_space<vmem>>, vector<16x32xf32>
    %51 = arith.truncf %49 : vector<16x128xf32> to vector<16x128xbf16>
    %c0_23 = arith.constant 0 : index
    %c0_24 = arith.constant 0 : index
    %52 = vector.load %arg18[%c0_23, %c0_24] : memref<128x32xbf16, #tpu.memory_space<vmem>>, vector<128x32xbf16>
    %cst_25 = arith.constant dense<0.000000e+00> : vector<16x32xf32>
    %53 = tpu.matmul %51, %52, %cst_25 {dimension_numbers = #tpu.dot_dimension_numbers<[1], [0], [0], [1], [0, 0, 1, 1], [], []>} : vector<16x128xbf16>, vector<128x32xbf16>, vector<16x32xf32> -> vector<16x32xf32>
    %54 = arith.addf %50, %53 : vector<16x32xf32>
    %c0_26 = arith.constant 0 : index
    %c0_27 = arith.constant 0 : index
    %55 = vector.load %arg24[%c0_26, %c0_27] : memref<16x32xf32, #tpu.memory_space<vmem>>, vector<16x32xf32>
    tpu.vector_store %arg24[%c0_26, %c0_27], %54 {strides = array<i32>} : memref<16x32xf32, #tpu.memory_space<vmem>>, vector<16x32xf32>,
    %c0_i32_28 = arith.constant 0 : i32
    %56 = arith.cmpi eq, %arg1, %c0_i32_28 : i32
    %57 = arith.extui %56 : i1 to i32
    %c0_i32_29 = arith.constant 0 : i32
    %58 = arith.cmpi ne, %57, %c0_i32_29 : i32
    scf.if %58 {
      %c0_30 = arith.constant 0 : index
      %c0_31 = arith.constant 0 : index
      %59 = vector.load %arg24[%c0_30, %c0_31] : memref<16x32xf32, #tpu.memory_space<vmem>>, vector<16x32xf32>
      %c0_32 = arith.constant 0 : index
      %c0_33 = arith.constant 0 : index
      %60 = vector.load %arg19[%c0_32, %c0_33] : memref<1x32xf32, #tpu.memory_space<vmem>>, vector<1x32xf32>
      %61 = vector.broadcast %60 : vector<1x32xf32> to vector<16x32xf32>
      %62 = arith.addf %59, %61 : vector<16x32xf32>
      %c0_34 = arith.constant 0 : index
      %c0_35 = arith.constant 0 : index
      %63 = vector.load %arg23[%c0_34, %c0_35] : memref<16x32xf32, #tpu.memory_space<vmem>>, vector<16x32xf32>
      %64 = arith.addf %62, %63 : vector<16x32xf32>
      %c0_36 = arith.constant 0 : index
      %c0_37 = arith.constant 0 : index
      %65 = vector.load %arg20[%c0_36, %c0_37] : memref<1x32xf32, #tpu.memory_space<vmem>>, vector<1x32xf32>
      %c0_38 = arith.constant 0 : index
      %c0_39 = arith.constant 0 : index
      %66 = vector.load %arg21[%c0_38, %c0_39] : memref<1x32xf32, #tpu.memory_space<vmem>>, vector<1x32xf32>
      %cst_40 = arith.constant dense<0.000000e+00> : vector<16xf32>
      %67 = vector.multi_reduction <add>, %64, %cst_40 [1] : vector<16x32xf32> to vector<16xf32>
      %68 = vector.shape_cast %67 : vector<16xf32> to vector<16x1xf32>
      %cst_41 = arith.constant 3.200000e+01 : f32
      %69 = vector.broadcast %cst_41 : f32 to vector<16x1xf32>
      %70 = arith.divf %68, %69 : vector<16x1xf32>
      %71 = vector.broadcast %70 : vector<16x1xf32> to vector<16x32xf32>
      %72 = arith.subf %64, %71 : vector<16x32xf32>
      %73 = vector.broadcast %70 : vector<16x1xf32> to vector<16x32xf32>
      %74 = arith.subf %64, %73 : vector<16x32xf32>
      %75 = arith.mulf %72, %74 : vector<16x32xf32>
      %cst_42 = arith.constant dense<0.000000e+00> : vector<16xf32>
      %76 = vector.multi_reduction <add>, %75, %cst_42 [1] : vector<16x32xf32> to vector<16xf32>
      %77 = vector.shape_cast %76 : vector<16xf32> to vector<16x1xf32>
      %cst_43 = arith.constant 3.200000e+01 : f32
      %78 = vector.broadcast %cst_43 : f32 to vector<16x1xf32>
      %79 = arith.divf %77, %78 : vector<16x1xf32>
      %80 = vector.broadcast %70 : vector<16x1xf32> to vector<16x32xf32>
      %81 = arith.subf %64, %80 : vector<16x32xf32>
      %cst_44 = arith.constant 9.99999996E-13 : f32
      %82 = vector.broadcast %cst_44 : f32 to vector<16x1xf32>
      %83 = arith.addf %79, %82 : vector<16x1xf32>
      %84 = math.rsqrt %83 : vector<16x1xf32>
      %85 = vector.broadcast %84 : vector<16x1xf32> to vector<16x32xf32>
      %86 = arith.mulf %81, %85 : vector<16x32xf32>
      %87 = vector.broadcast %65 : vector<1x32xf32> to vector<16x32xf32>
      %88 = arith.mulf %86, %87 : vector<16x32xf32>
      %89 = vector.broadcast %66 : vector<1x32xf32> to vector<16x32xf32>
      %90 = arith.addf %88, %89 : vector<16x32xf32>
      %c0_45 = arith.constant 0 : index
      %c0_46 = arith.constant 0 : index
      %91 = vector.load %arg22[%c0_45, %c0_46] : memref<16x32xf32, #tpu.memory_space<vmem>>, vector<16x32xf32>
      tpu.vector_store %arg22[%c0_45, %c0_46], %90 {strides = array<i32>} : memref<16x32xf32, #tpu.memory_space<vmem>>, vector<16x32xf32>,
    } else {
    }
    return
  }
  func.func @transform_0(%arg0: i32, %arg1: i32) -> (i32, i32) {
    %c0_i32 = arith.constant 0 : i32
    %c0_i32_0 = arith.constant 0 : i32
    return %arg0, %c0_i32 : i32, i32
  }
  func.func @transform_1(%arg0: i32, %arg1: i32) -> (i32, i32) {
    %c0_i32 = arith.constant 0 : i32
    %c0_i32_0 = arith.constant 0 : i32
    return %arg0, %c0_i32 : i32, i32
  }
  func.func @transform_2(%arg0: i32, %arg1: i32) -> (i32, i32) {
    %c0_i32 = arith.constant 0 : i32
    %c0_i32_0 = arith.constant 0 : i32
    %c0_i32_1 = arith.constant 0 : i32
    return %c0_i32, %c0_i32_0 : i32, i32
  }
  func.func @transform_3(%arg0: i32, %arg1: i32) -> (i32, i32) {
    %c0_i32 = arith.constant 0 : i32
    %c0_i32_0 = arith.constant 0 : i32
    %c0_i32_1 = arith.constant 0 : i32
    return %c0_i32, %c0_i32_0 : i32, i32
  }
  func.func @transform_4(%arg0: i32, %arg1: i32) -> (i32, i32) {
    %c0_i32 = arith.constant 0 : i32
    %c0_i32_0 = arith.constant 0 : i32
    %c0_i32_1 = arith.constant 0 : i32
    return %c0_i32, %c0_i32_0 : i32, i32
  }
  func.func @transform_5(%arg0: i32, %arg1: i32) -> (i32, i32) {
    %c0_i32 = arith.constant 0 : i32
    %c0_i32_0 = arith.constant 0 : i32
    %c0_i32_1 = arith.constant 0 : i32
    return %c0_i32, %c0_i32_0 : i32, i32
  }
  func.func @transform_6(%arg0: i32, %arg1: i32) -> (i32, i32) {
    %c0_i32 = arith.constant 0 : i32
    %c0_i32_0 = arith.constant 0 : i32
    %c0_i32_1 = arith.constant 0 : i32
    return %c0_i32, %c0_i32_0 : i32, i32
  }
  func.func @transform_7(%arg0: i32, %arg1: i32) -> (i32, i32) {
    %c0_i32 = arith.constant 0 : i32
    %c0_i32_0 = arith.constant 0 : i32
    %c0_i32_1 = arith.constant 0 : i32
    return %c0_i32, %c0_i32_0 : i32, i32
  }
  func.func @transform_8(%arg0: i32, %arg1: i32) -> (i32, i32) {
    %c0_i32 = arith.constant 0 : i32
    %c0_i32_0 = arith.constant 0 : i32
    %c0_i32_1 = arith.constant 0 : i32
    return %c0_i32, %c0_i32_0 : i32, i32
  }
  func.func @transform_9(%arg0: i32, %arg1: i32) -> (i32, i32) {
    %c0_i32 = arith.constant 0 : i32
    %c0_i32_0 = arith.constant 0 : i32
    %c0_i32_1 = arith.constant 0 : i32
    return %c0_i32, %c0_i32_0 : i32, i32
  }
  func.func @transform_10(%arg0: i32, %arg1: i32) -> (i32, i32) {
    %c0_i32 = arith.constant 0 : i32
    %c0_i32_0 = arith.constant 0 : i32
    %c0_i32_1 = arith.constant 0 : i32
    return %c0_i32, %c0_i32_0 : i32, i32
  }
  func.func @transform_11(%arg0: i32, %arg1: i32) -> (i32, i32) {
    %c0_i32 = arith.constant 0 : i32
    %c0_i32_0 = arith.constant 0 : i32
    %c0_i32_1 = arith.constant 0 : i32
    return %c0_i32, %c0_i32_0 : i32, i32
  }
  func.func @transform_12(%arg0: i32, %arg1: i32) -> (i32, i32) {
    %c0_i32 = arith.constant 0 : i32
    %c0_i32_0 = arith.constant 0 : i32
    %c0_i32_1 = arith.constant 0 : i32
    return %c0_i32, %c0_i32_0 : i32, i32
  }
  func.func @transform_13(%arg0: i32, %arg1: i32) -> (i32, i32) {
    %c0_i32 = arith.constant 0 : i32
    %c0_i32_0 = arith.constant 0 : i32
    %c0_i32_1 = arith.constant 0 : i32
    return %c0_i32, %c0_i32_0 : i32, i32
  }
  func.func @transform_14(%arg0: i32, %arg1: i32) -> (i32, i32) {
    %c0_i32 = arith.constant 0 : i32
    %c0_i32_0 = arith.constant 0 : i32
    return %c0_i32, %arg1 : i32, i32
  }
  func.func @transform_15(%arg0: i32, %arg1: i32) -> (i32, i32) {
    %c0_i32 = arith.constant 0 : i32
    %c0_i32_0 = arith.constant 0 : i32
    return %c0_i32, %arg1 : i32, i32
  }
  func.func @transform_16(%arg0: i32, %arg1: i32) -> (i32, i32) {
    %c0_i32 = arith.constant 0 : i32
    %c0_i32_0 = arith.constant 0 : i32
    return %arg1, %c0_i32 : i32, i32
  }
  func.func @transform_17(%arg0: i32, %arg1: i32) -> (i32, i32) {
    %c0_i32 = arith.constant 0 : i32
    %c0_i32_0 = arith.constant 0 : i32
    %c0_i32_1 = arith.constant 0 : i32
    return %c0_i32, %c0_i32_0 : i32, i32
  }
  func.func @transform_18(%arg0: i32, %arg1: i32) -> (i32, i32) {
    %c0_i32 = arith.constant 0 : i32
    %c0_i32_0 = arith.constant 0 : i32
    %c0_i32_1 = arith.constant 0 : i32
    return %c0_i32, %c0_i32_0 : i32, i32
  }
  func.func @transform_19(%arg0: i32, %arg1: i32) -> (i32, i32) {
    %c0_i32 = arith.constant 0 : i32
    %c0_i32_0 = arith.constant 0 : i32
    %c0_i32_1 = arith.constant 0 : i32
    return %c0_i32, %c0_i32_0 : i32, i32
  }
  func.func @transform_20(%arg0: i32, %arg1: i32) -> (i32, i32) {
    %c0_i32 = arith.constant 0 : i32
    %c0_i32_0 = arith.constant 0 : i32
    return %arg0, %c0_i32 : i32, i32
  }
}

</mosaic_0001>

<bundles_post_ra>
// kernel: remed_forward.4
= control target key start
LH: loop header
LB: loop body
LE: loop exit
PB: predicated region body
PF: predicated region fallthrough
CT: control target
= control target key end

     0   :  { %vm287_vm0 = vcmask 130048   ;;  %vm703_vm1 = vcmask 64512   ;;  %vm1013_vm2 = vcmask 1043456   ;;  %vm1116_vm3 = vcmask 31744   ;;  %s2755_s1 = inlined_call_operand.vmem [shape: bf16[128,16], index: 1, kind: input, shape index: {}]   ;;  %s2756_s0 = inlined_call_operand.vmem [shape: bf16[128,128], index: 0, kind: input, shape index: {}]   ;;  %s2757_s2 = inlined_call_operand.vmem [shape: f32[1,16], index: 2, kind: input, shape index: {}]   ;;  %s2758_s5 = inlined_call_operand.vmem [shape: bf16[16,8], index: 5, kind: input, shape index: {}]   ;;  %s2759_s3 = inlined_call_operand.vmem [shape: f32[1,16], index: 3, kind: input, shape index: {}]   ;;  %s2760_s4 = inlined_call_operand.vmem [shape: f32[1,16], index: 4, kind: input, shape index: {}]   ;;  %s2761_s6 = inlined_call_operand.vmem [shape: f32[1,8], index: 6, kind: input, shape index: {}]   ;;  %s2762_s9 = inlined_call_operand.vmem [shape: bf16[8,4], index: 9, kind: input, shape index: {}]   ;;  %s2763_s7 = inlined_call_operand.vmem [shape: f32[1,8], index: 7, kind: input, shape index: {}]   ;;  %s2764_s8 = inlined_call_operand.vmem [shape: f32[1,8], index: 8, kind: input, shape index: {}]   ;;  %s2765_s10 = inlined_call_operand.vmem [shape: f32[1,4], index: 10, kind: input, shape index: {}]   ;;  %s2766_s14 = inlined_call_operand.<no memory space> [shape: f32[1,1], index: 14, kind: input, shape index: {}]   ;;  %s2767_s11 = inlined_call_operand.vmem [shape: f32[1,4], index: 11, kind: input, shape index: {}]   ;;  %s2768_s12 = inlined_call_operand.vmem [shape: f32[1,4], index: 12, kind: input, shape index: {}]   ;;  %s2769_s13 = inlined_call_operand.vmem [shape: f32[1,4], index: 13, kind: input, shape index: {}]   ;;  %s2770_s15 = inlined_call_operand.vmem [shape: f32[1,1,128], index: 15, kind: output, shape index: {}]  }
   0x1   :  { %v1781_v0 = vld [vmem:[%s2755_s1] sm:$0xff]   ;;  %v1782_v1 = vld [vmem:[%s2755_s1 + $0x8] sm:$0xff]   ;;  %v1783_v2 = vld [vmem:[%s2755_s1 + $0x10] sm:$0xff]   ;;  %vm1899_vm4 = vmmov 0  }
   0x2   :  { %1640 = vmatprep.subr.bf16.mxu0 %v1781_v0  ;;  %v1784_v3 = vld [vmem:[%s2755_s1 + $0x18] sm:$0xff]   ;;  %v1789_v4 = vld [vmem:[%s2756_s0] sm:$0xff]   ;;  %v1786_v6 = vld [vmem:[%s2755_s1 + $0x28] sm:$0xff]  }
   0x3   :  { %1641 = vmatpush3.bf16.msra.mxu0 %v1781_v0  ;;  %1656 = vmatprep.mubr.bf16.mxu0 %v1789_v4  ;;  %v1785_v5 = vld [vmem:[%s2755_s1 + $0x20] sm:$0xff]   ;;  %v1787_v7 = vld [vmem:[%s2755_s1 + $0x30] sm:$0xff]   ;;  %v1788_v8 = vld [vmem:[%s2755_s1 + $0x38] sm:$0xff]  }
   0x4   :  { %1642 = vmatprep.subr.bf16.mxu0 %v1782_v1  ;;  %v1790_v9 = vld [vmem:[%s2756_s0 + $0x8] sm:$0xff]   ;;  %v1791_v10 = vld [vmem:[%s2756_s0 + $0x10] sm:$0xff]   ;;  %v1792_v11 = vld [vmem:[%s2756_s0 + $0x18] sm:$0xff]  }
   0x5   :  { %v1793_v12 = vld [vmem:[%s2756_s0 + $0x20] sm:$0xff]   ;;  %v1794_v13 = vld [vmem:[%s2756_s0 + $0x28] sm:$0xff]   ;;  %v1795_v14 = vld [vmem:[%s2756_s0 + $0x30] sm:$0xff]  }
   0x6   :  { %v1796_v15 = vld [vmem:[%s2756_s0 + $0x38] sm:$0xff]   ;;  %v1529_v16 = vld [vmem:[%s2757_s2] ss:$0 sm:$0xff]  ;;  %vm2683_vm5 = vmpackc.low %vm1116_vm3, %vm1116_vm3 }
   0x7   :  { %1643 = vmatpush3.bf16.msra.mxu0 %v1782_v1 }
   0x8   :  { %1644 = vmatprep.subr.bf16.mxu0 %v1783_v2 }
   0xb   :  { %1645 = vmatpush3.bf16.msra.mxu0 %v1783_v2 }
   0xc   :  { %1646 = vmatprep.subr.bf16.mxu0 %v1784_v3 }
   0xf   :  { %1647 = vmatpush3.bf16.msra.mxu0 %v1784_v3 }
  0x10   :  { %1648 = vmatprep.subr.bf16.mxu0 %v1785_v5 }
  0x13   :  { %1649 = vmatpush3.bf16.msra.mxu0 %v1785_v5 }
  0x14   :  { %1650 = vmatprep.subr.bf16.mxu0 %v1786_v6 }
  0x17   :  { %1651 = vmatpush3.bf16.msra.mxu0 %v1786_v6 }
  0x18   :  { %1652 = vmatprep.subr.bf16.mxu0 %v1787_v7 }
  0x1b   :  { %1653 = vmatpush3.bf16.msra.mxu0 %v1787_v7 }
  0x1c   :  { %1654 = vmatprep.subr.bf16.mxu0 %v1788_v8 }
  0x1f   :  { %1655 = vmatpush3.bf16.msra.mxu0 %v1788_v8 }
  0x22   :  { %1657 = vmatmul.mubr.bf16.vlgmr.msra.gmra.mrb[0].mxu0 %v1790_v9 }
  0x23   :  { %1660 = vmatprep.mubr.bf16.mxu0 %v1791_v10 }
  0x2a   :  { %1661 = vmatmul.mubr.bf16.gmra.mrb[4].mxu0 %v1792_v11 }
  0x2b   :  { %1664 = vmatprep.mubr.bf16.mxu0 %v1793_v12 }
  0x32   :  { %1665 = vmatmul.mubr.bf16.gmra.mrb[8].mxu0 %v1794_v13 }
  0x33   :  { %1668 = vmatprep.mubr.bf16.mxu0 %v1795_v14 }
  0x3a   :  { %1669 = vmatmul.mubr.bf16.gmra.mrb[12].mxu0 %v1796_v15 }
  0xf5   :  { %v1658_v17 = vpop.f32.mrb[0].mxu0 }
  0xf6   :  { %v2033_v18 = vadd.f32 %v1658_v17, %v1529_v16  ;;  %v222_v19 = vpop.f32.mrb[1].mxu0 }
  0xf7   :  { %v2035_v20 = vadd.f32 %v1529_v16, %v222_v19  ;;  %v1659_v21 = vpop.f32.mrb[2].mxu0 }
  0xf8   :  { %v2037_v22 = vadd.f32 %v1659_v21, %v1529_v16  ;;  %v225_v23 = vpop.f32.mrb[3].mxu0  ;;  %v294_v24 = vsel %vm287_vm0, %v2033_v18, 0.0 }
  0xf9   :  { %v2041_v25 = vadd.f32 %v1529_v16, %v225_v23  ;;  %295 = vadd.xlane.f32.xlu1 %v294_v24  ;;  %v288_v26 = vsel %vm287_vm0, %v2035_v20, 0.0 }
  0xfa   :  { %289 = vadd.xlane.f32.xlu0 %v288_v26  ;;  %v297_v27 = vsel %vm287_vm0, %v2037_v22, 0.0 }
  0xfb   :  { %v291_v29 = vsel %vm287_vm0, %v2041_v25, 0.0 }
  0xfd   :  { %298 = vadd.xlane.f32.xlu1 %v297_v27  ;;  %v1662_v28 = vpop.f32.mrb[4].mxu0 }
  0xfe   :  { %v238_v30 = vpop.f32.mrb[5].mxu0  ;;  %292 = vadd.xlane.f32.xlu0 %v291_v29  ;;  %v2049_v31 = vadd.f32 %v1662_v28, %v1529_v16 }
  0xff   :  { %v2051_v32 = vadd.f32 %v1529_v16, %v238_v30  ;;  %v1663_v33 = vpop.f32.mrb[6].mxu0 }
 0x100   :  { %v241_v34 = vpop.f32.mrb[7].mxu0  ;;  %v2053_v35 = vadd.f32 %v1663_v33, %v1529_v16  ;;  %v306_v39 = vsel %vm287_vm0, %v2049_v31, 0.0 }
 0x101   :  { %v2055_v36 = vadd.f32 %v1529_v16, %v241_v34  ;;  %v300_v37 = vsel %vm287_vm0, %v2051_v32, 0.0 }
 0x102   :  { %301 = vadd.xlane.f32.xlu0 %v300_v37  ;;  %v309_v41 = vsel %vm287_vm0, %v2053_v35, 0.0 }
 0x103   :  { %v303_v38 = vsel %vm287_vm0, %v2055_v36, 0.0 }
 0x104   :  { %304 = vadd.xlane.f32.xlu1 %v303_v38 }
 0x105   :  { %v1666_v40 = vpop.f32.mrb[8].mxu0 }
 0x106   :  { %v254_v42 = vpop.f32.mrb[9].mxu0  ;;  %307 = vadd.xlane.f32.xlu0 %v306_v39  ;;  %v2065_v43 = vadd.f32 %v1666_v40, %v1529_v16 }
 0x107   :  { %v2067_v44 = vadd.f32 %v1529_v16, %v254_v42  ;;  %v1667_v45 = vpop.f32.mrb[10].mxu0 }
 0x108   :  { %v257_v46 = vpop.f32.mrb[11].mxu0  ;;  %310 = vadd.xlane.f32.xlu1 %v309_v41  ;;  %v2069_v47 = vadd.f32 %v1667_v45, %v1529_v16  ;;  %v318_v51 = vsel %vm287_vm0, %v2065_v43, 0.0 }
 0x109   :  { %v2071_v48 = vadd.f32 %v1529_v16, %v257_v46  ;;  %v312_v49 = vsel %vm287_vm0, %v2067_v44, 0.0 }
 0x10a   :  { %313 = vadd.xlane.f32.xlu0 %v312_v49  ;;  %v321_v53 = vsel %vm287_vm0, %v2069_v47, 0.0 }
 0x10b   :  { %v315_v50 = vsel %vm287_vm0, %v2071_v48, 0.0 }
 0x10c   :  { %316 = vadd.xlane.f32.xlu1 %v315_v50 }
 0x10d   :  { %v1670_v52 = vpop.f32.mrb[12].mxu0 }
 0x10e   :  { %v270_v54 = vpop.f32.mrb[13].mxu0  ;;  %319 = vadd.xlane.f32.xlu0 %v318_v51  ;;  %v2081_v55 = vadd.f32 %v1670_v52, %v1529_v16 }
 0x10f   :  { %v2083_v56 = vadd.f32 %v1529_v16, %v270_v54  ;;  %v1671_v57 = vpop.f32.mrb[14].mxu0 }
 0x110   :  { %v273_v58 = vpop.f32.mrb[15].mxu0  ;;  %322 = vadd.xlane.f32.xlu1 %v321_v53  ;;  %v2085_v59 = vadd.f32 %v1671_v57, %v1529_v16  ;;  %v330_v63 = vsel %vm287_vm0, %v2081_v55, 0.0 }
 0x111   :  { %v2087_v60 = vadd.f32 %v1529_v16, %v273_v58  ;;  %v324_v61 = vsel %vm287_vm0, %v2083_v56, 0.0 }
 0x112   :  { %325 = vadd.xlane.f32.xlu0 %v324_v61  ;;  %v333_v0 = vsel %vm287_vm0, %v2085_v59, 0.0 }
 0x113   :  { %v327_v62 = vsel %vm287_vm0, %v2087_v60, 0.0 }
 0x114   :  { %328 = vadd.xlane.f32.xlu1 %v327_v62 }
 0x116   :  { %331 = vadd.xlane.f32.xlu0 %v330_v63 }
 0x118   :  { %334 = vadd.xlane.f32.xlu1 %v333_v0 }
 0x186   :  { %v296_v1 = vpop.xlane.xlu1 %295 }
 0x187   :  { %v339_v2 = vmul.f32 0.0625, %v296_v1  ;;  %v290_v3 = vpop.xlane.xlu0 %289 }
 0x188   :  { %v337_v4 = vmul.f32 0.0625, %v290_v3 }
 0x189   :  { %v2098_v5 = vsub.f32 %v2033_v18, %v339_v2 }
 0x18a   :  { %v2101_v6 = vsub.f32 %v2035_v20, %v337_v4  ;;  %v299_v7 = vpop.xlane.xlu1 %298 }
 0x18b   :  { %v340_v8 = vmul.f32 0.0625, %v299_v7  ;;  %v293_v9 = vpop.xlane.xlu0 %292  ;;  %v371_v15 = vmul.f32 %v2098_v5, %v2098_v5 }
 0x18c   :  { %v338_v10 = vmul.f32 0.0625, %v293_v9  ;;  %v369_v11 = vmul.f32 %v2101_v6, %v2101_v6 }
 0x18d   :  { %v2106_v12 = vsub.f32 %v2037_v22, %v340_v8  ;;  %v391_v23 = vsel %vm287_vm0, %v371_v15, 0.0 }
 0x18e   :  { %v2109_v13 = vsub.f32 %v2041_v25, %v338_v10  ;;  %v385_v14 = vsel %vm287_vm0, %v369_v11, 0.0 }
 0x18f   :  { %386 = vadd.xlane.f32.xlu0 %v385_v14  ;;  %v302_v16 = vpop.xlane.xlu0 %301  ;;  %v372_v20 = vmul.f32 %v2106_v12, %v2106_v12 }
 0x190   :  { %v341_v17 = vmul.f32 0.0625, %v302_v16  ;;  %v370_v18 = vmul.f32 %v2109_v13, %v2109_v13 }
 0x191   :  { %v305_v19 = vpop.xlane.xlu1 %304  ;;  %v394_v30 = vsel %vm287_vm0, %v372_v20, 0.0 }
 0x192   :  { %v2119_v21 = vsub.f32 %v2051_v32, %v341_v17  ;;  %v342_v22 = vmul.f32 0.0625, %v305_v19  ;;  %v388_v24 = vsel %vm287_vm0, %v370_v18, 0.0 }
 0x193   :  { %392 = vadd.xlane.f32.xlu0 %v391_v23  ;;  %389 = vadd.xlane.f32.xlu1 %v388_v24  ;;  %v308_v25 = vpop.xlane.xlu0 %307 }
 0x194   :  { %v2124_v26 = vsub.f32 %v2055_v36, %v342_v22  ;;  %v343_v27 = vmul.f32 0.0625, %v308_v25  ;;  %v373_v28 = vmul.f32 %v2119_v21, %v2119_v21 }
 0x195   :  { %v311_v29 = vpop.xlane.xlu1 %310 }
 0x196   :  { %v2130_v32 = vsub.f32 %v2049_v31, %v343_v27  ;;  %v344_v33 = vmul.f32 0.0625, %v311_v29  ;;  %v397_v34 = vsel %vm287_vm0, %v373_v28, 0.0  ;;  %v374_v37 = vmul.f32 %v2124_v26, %v2124_v26 }
 0x197   :  { %395 = vadd.xlane.f32.xlu1 %v394_v30  ;;  %398 = vadd.xlane.f32.xlu0 %v397_v34  ;;  %v314_v36 = vpop.xlane.xlu0 %313 }
 0x198   :  { %v2136_v38 = vsub.f32 %v2053_v35, %v344_v33  ;;  %v345_v39 = vmul.f32 0.0625, %v314_v36  ;;  %v375_v40 = vmul.f32 %v2130_v32, %v2130_v32  ;;  %v400_v31 = vsel %vm287_vm0, %v374_v37, 0.0 }
 0x199   :  { %v317_v41 = vpop.xlane.xlu1 %316 }
 0x19a   :  { %v2142_v42 = vsub.f32 %v2067_v44, %v345_v39  ;;  %v346_v45 = vmul.f32 0.0625, %v317_v41  ;;  %v403_v46 = vsel %vm287_vm0, %v375_v40, 0.0  ;;  %v376_v49 = vmul.f32 %v2136_v38, %v2136_v38 }
 0x19b   :  { %401 = vadd.xlane.f32.xlu1 %v400_v31  ;;  %404 = vadd.xlane.f32.xlu0 %v403_v46  ;;  %v320_v35 = vpop.xlane.xlu0 %319 }
 0x19c   :  { %v2148_v50 = vsub.f32 %v2071_v48, %v346_v45  ;;  %v347_v51 = vmul.f32 0.0625, %v320_v35  ;;  %v377_v52 = vmul.f32 %v2142_v42, %v2142_v42  ;;  %v406_v44 = vsel %vm287_vm0, %v376_v49, 0.0 }
 0x19d   :  { %v323_v53 = vpop.xlane.xlu1 %322 }
 0x19e   :  { %v2154_v54 = vsub.f32 %v2065_v43, %v347_v51  ;;  %v348_v57 = vmul.f32 0.0625, %v323_v53  ;;  %v409_v58 = vsel %vm287_vm0, %v377_v52, 0.0  ;;  %v378_v61 = vmul.f32 %v2148_v50, %v2148_v50 }
 0x19f   :  { %407 = vadd.xlane.f32.xlu1 %v406_v44  ;;  %410 = vadd.xlane.f32.xlu0 %v409_v58  ;;  %v326_v48 = vpop.xlane.xlu0 %325  ;;  %v2199_v44 = vld [vmem:[%s2759_s3] ss:$0 sm:$0xff] }
 0x1a0   :  { %v2160_v62 = vsub.f32 %v2069_v47, %v348_v57  ;;  %v349_v63 = vmul.f32 0.0625, %v326_v48  ;;  %v379_v0 = vmul.f32 %v2154_v54, %v2154_v54  ;;  %v412_v43 = vsel %vm287_vm0, %v378_v61, 0.0 }
 0x1a1   :  { %v329_v1 = vpop.xlane.xlu1 %328 }
 0x1a2   :  { %v2166_v2 = vsub.f32 %v2083_v56, %v349_v63  ;;  %v350_v3 = vmul.f32 0.0625, %v329_v1  ;;  %v415_v4 = vsel %vm287_vm0, %v379_v0, 0.0  ;;  %v380_v7 = vmul.f32 %v2160_v62, %v2160_v62  ;;  %v2205_v0 = vld [vmem:[%s2760_s4] ss:$0 sm:$0xff] }
 0x1a3   :  { %413 = vadd.xlane.f32.xlu1 %v412_v43  ;;  %416 = vadd.xlane.f32.xlu0 %v415_v4  ;;  %v332_v47 = vpop.xlane.xlu0 %331 }
 0x1a4   :  { %v2172_v8 = vsub.f32 %v2087_v60, %v350_v3  ;;  %v351_v9 = vmul.f32 0.0625, %v332_v47  ;;  %v381_v10 = vmul.f32 %v2166_v2, %v2166_v2  ;;  %v418_v56 = vsel %vm287_vm0, %v380_v7, 0.0 }
 0x1a5   :  { %v335_v11 = vpop.xlane.xlu1 %334 }
 0x1a6   :  { %v2178_v14 = vsub.f32 %v2081_v55, %v351_v9  ;;  %v352_v15 = vmul.f32 0.0625, %v335_v11  ;;  %v421_v16 = vsel %vm287_vm0, %v381_v10, 0.0  ;;  %v382_v17 = vmul.f32 %v2172_v8, %v2172_v8 }
 0x1a7   :  { %419 = vadd.xlane.f32.xlu1 %v418_v56  ;;  %422 = vadd.xlane.f32.xlu0 %v421_v16 }
 0x1a8   :  { %v2184_v60 = vsub.f32 %v2085_v59, %v352_v15  ;;  %v383_v18 = vmul.f32 %v2178_v14, %v2178_v14  ;;  %v424_v19 = vsel %vm287_vm0, %v382_v17, 0.0  ;;  %v1797_v59 = vld [vmem:[%s2758_s5] sm:$0xff]  }
 0x1a9   :  { %1672 = vmatprep.subr.bf16.mxu1 %v1797_v59 }
 0x1aa   :  { %v427_v20 = vsel %vm287_vm0, %v383_v18, 0.0  ;;  %v384_v55 = vmul.f32 %v2184_v60, %v2184_v60  ;;  %1673 = vmatpush3.bf16.msra.mxu1 %v1797_v59 }
 0x1ab   :  { %425 = vadd.xlane.f32.xlu1 %v424_v19  ;;  %428 = vadd.xlane.f32.xlu0 %v427_v20 }
 0x1ac   :  { %v430_v22 = vsel %vm287_vm0, %v384_v55, 0.0 }
 0x1af   :  { %431 = vadd.xlane.f32.xlu1 %v430_v22 }
 0x21c   :  { %v387_v23 = vpop.xlane.xlu0 %386 }
 0x21d   :  { %v433_v24 = vmul.f32 0.0625, %v387_v23 }
 0x21f   :  { %v449_v25 = vadd.f32 1e-05, %v433_v24 }
 0x220   :  { %v390_v27 = vpop.xlane.xlu1 %389  ;;  %v393_v28 = vpop.xlane.xlu0 %392 }
 0x221   :  { %1798 = vrsqrt.f32 %v449_v25  ;;  %v434_v29 = vmul.f32 0.0625, %v390_v27  ;;  %v435_v30 = vmul.f32 0.0625, %v393_v28 }
 0x223   :  { %v450_v33 = vadd.f32 1e-05, %v434_v29  ;;  %v451_v34 = vadd.f32 1e-05, %v435_v30 }
 0x224   :  { %v396_v37 = vpop.xlane.xlu1 %395  ;;  %v399_v36 = vpop.xlane.xlu0 %398 }
 0x225   :  { %1800 = vrsqrt.f32 %v450_v33  ;;  %v436_v39 = vmul.f32 0.0625, %v396_v37  ;;  %v437_v40 = vmul.f32 0.0625, %v399_v36 }
 0x226   :  { %1802 = vrsqrt.f32 %v451_v34 }
 0x227   :  { %v452_v41 = vadd.f32 1e-05, %v436_v39  ;;  %v453_v31 = vadd.f32 1e-05, %v437_v40 }
 0x228   :  { %v402_v45 = vpop.xlane.xlu1 %401  ;;  %v405_v46 = vpop.xlane.xlu0 %404 }
 0x229   :  { %1804 = vrsqrt.f32 %v452_v41  ;;  %v438_v49 = vmul.f32 0.0625, %v402_v45  ;;  %v439_v35 = vmul.f32 0.0625, %v405_v46 }
 0x22a   :  { %1806 = vrsqrt.f32 %v453_v31 }
 0x22b   :  { %v1799_v51 = vpop.eup %1798  ;;  %v454_v52 = vadd.f32 1e-05, %v438_v49  ;;  %v455_v53 = vadd.f32 1e-05, %v439_v35 }
 0x22c   :  { %v408_v57 = vpop.xlane.xlu1 %407  ;;  %v411_v58 = vpop.xlane.xlu0 %410  ;;  %v481_v61 = vmul.f32 %v1799_v51, %v2101_v6 }
 0x22d   :  { %1808 = vrsqrt.f32 %v454_v52  ;;  %v440_v48 = vmul.f32 0.0625, %v408_v57  ;;  %v441_v63 = vmul.f32 0.0625, %v411_v58 }
 0x22e   :  { %1810 = vrsqrt.f32 %v455_v53  ;;  %v503_v1 = vmul.f32 %v2199_v44, %v481_v61 }
 0x22f   :  { %v1801_v43 = vpop.eup %1800  ;;  %v456_v3 = vadd.f32 1e-05, %v440_v48  ;;  %v457_v4 = vadd.f32 1e-05, %v441_v63 }
 0x230   :  { %v1803_v7 = vpop.eup %1802  ;;  %v414_v47 = vpop.xlane.xlu1 %413  ;;  %v482_v10 = vmul.f32 %v1801_v43, %v2109_v13  ;;  %v525_v6 = vadd.f32 %v2205_v0, %v503_v1 }
 0x231   :  { %v417_v9 = vpop.xlane.xlu0 %416  ;;  %v483_v11 = vmul.f32 %v1803_v7, %v2098_v5  ;;  %1812 = vrsqrt.f32 %v456_v3  ;;  %v442_v56 = vmul.f32 0.0625, %v414_v47 }
 0x232   :  { %v443_v15 = vmul.f32 0.0625, %v417_v9  ;;  %1814 = vrsqrt.f32 %v457_v4  ;;  %v504_v16 = vmul.f32 %v2199_v44, %v482_v10  ;;  %v541_v24 = vmax.f32 %v525_v6, 0.0 }
 0x233   :  { %v1805_v17 = vpop.eup %1804  ;;  %v458_v18 = vadd.f32 1e-05, %v442_v56  ;;  %v505_v20 = vmul.f32 %v2199_v44, %v483_v11 }
 0x234   :  { %v459_v19 = vadd.f32 1e-05, %v443_v15  ;;  %v1807_v55 = vpop.eup %1806  ;;  %v484_v22 = vmul.f32 %v1805_v17, %v2106_v12  ;;  %v420_v59 = vpop.xlane.xlu1 %419  ;;  %v526_v23 = vadd.f32 %v2205_v0, %v504_v16 }
 0x235   :  { %v423_v13 = vpop.xlane.xlu0 %422  ;;  %v485_v5 = vmul.f32 %v1807_v55, %v2119_v21  ;;  %1816 = vrsqrt.f32 %v458_v18  ;;  %v444_v25 = vmul.f32 0.0625, %v420_v59  ;;  %v527_v30 = vadd.f32 %v2205_v0, %v505_v20 }
 0x236   :  { %v445_v27 = vmul.f32 0.0625, %v423_v13  ;;  %1818 = vrsqrt.f32 %v459_v19  ;;  %v542_v28 = vmax.f32 %v526_v23, 0.0  ;;  %v506_v29 = vmul.f32 %v2199_v44, %v484_v22 }
 0x237   :  { %v1809_v33 = vpop.eup %1808  ;;  %v460_v34 = vadd.f32 1e-05, %v444_v25  ;;  %v507_v12 = vmul.f32 %v2199_v44, %v485_v5  ;;  %v543_v45 = vmax.f32 %v527_v30, 0.0 }
 0x238   :  { %v461_v37 = vadd.f32 1e-05, %v445_v27  ;;  %v1811_v36 = vpop.eup %1810  ;;  %v486_v39 = vmul.f32 %v1809_v33, %v2124_v26  ;;  %v426_v40 = vpop.xlane.xlu1 %425  ;;  %v557_v21 = vpack.c.bf16 %v542_v28, %v541_v24  ;;  %v528_v31 = vadd.f32 %v2205_v0, %v506_v29 }
 0x239   :  { %v429_v41 = vpop.xlane.xlu0 %428  ;;  %v487_v46 = vmul.f32 %v1811_v36, %v2130_v32  ;;  %1820 = vrsqrt.f32 %v460_v34  ;;  %v446_v49 = vmul.f32 0.0625, %v426_v40  ;;  %v529_v53 = vadd.f32 %v2205_v0, %v507_v12 }
 0x23a   :  { %v447_v35 = vmul.f32 0.0625, %v429_v41  ;;  %1822 = vrsqrt.f32 %v461_v37  ;;  %1674 = vmatprep.mubr.msk.bf16.mxu1 %vm287_vm0, %v557_v21  ;;  %v544_v51 = vmax.f32 %v528_v31, 0.0  ;;  %v508_v52 = vmul.f32 %v2199_v44, %v486_v39 }
 0x23b   :  { %v1813_v26 = vpop.eup %1812  ;;  %v462_v57 = vadd.f32 1e-05, %v446_v49  ;;  %v509_v61 = vmul.f32 %v2199_v44, %v487_v46  ;;  %v545_v7 = vmax.f32 %v529_v53, 0.0 }
 0x23c   :  { %v463_v58 = vadd.f32 1e-05, %v447_v35  ;;  %v1815_v48 = vpop.eup %1814  ;;  %v488_v63 = vmul.f32 %v1813_v26, %v2136_v38  ;;  %v432_v32 = vpop.xlane.xlu1 %431  ;;  %v558_v1 = vpack.c.bf16 %v544_v51, %v543_v45  ;;  %v530_v43 = vadd.f32 %v2205_v0, %v508_v52 }
 0x23d   :  { %v489_v3 = vmul.f32 %v1815_v48, %v2142_v42  ;;  %1824 = vrsqrt.f32 %v462_v57  ;;  %v448_v4 = vmul.f32 0.0625, %v432_v32  ;;  %v531_v10 = vadd.f32 %v2205_v0, %v509_v61 }
 0x23e   :  { %1826 = vrsqrt.f32 %v463_v58  ;;  %1675 = vmatmul.mubr.msk.bf16.vlgmr.msra.gmra.mrb[0].mxu1 %vm287_vm0, %v558_v1  ;;  %v546_v47 = vmax.f32 %v530_v43, 0.0  ;;  %v510_v9 = vmul.f32 %v2199_v44, %v488_v63 }
 0x23f   :  { %v1817_v6 = vpop.eup %1816  ;;  %v464_v11 = vadd.f32 1e-05, %v448_v4  ;;  %v511_v38 = vmul.f32 %v2199_v44, %v489_v3  ;;  %v547_v18 = vmax.f32 %v531_v10, 0.0 }
 0x240   :  { %v1819_v56 = vpop.eup %1818  ;;  %v490_v15 = vmul.f32 %v1817_v6, %v2148_v50  ;;  %v559_v16 = vpack.c.bf16 %v546_v47, %v545_v7  ;;  %v532_v42 = vadd.f32 %v2205_v0, %v510_v9 }
 0x241   :  { %v491_v17 = vmul.f32 %v1819_v56, %v2154_v54  ;;  %1828 = vrsqrt.f32 %v464_v11  ;;  %v533_v55 = vadd.f32 %v2205_v0, %v511_v38 }
 0x242   :  { %1678 = vmatprep.mubr.msk.bf16.mxu1 %vm287_vm0, %v559_v16  ;;  %v548_v19 = vmax.f32 %v532_v42, 0.0  ;;  %v512_v20 = vmul.f32 %v2199_v44, %v490_v15 }
 0x243   :  { %v1821_v22 = vpop.eup %1820  ;;  %v513_v59 = vmul.f32 %v2199_v44, %v491_v17  ;;  %v549_v5 = vmax.f32 %v533_v55, 0.0 }
 0x244   :  { %v1823_v13 = vpop.eup %1822  ;;  %v492_v50 = vmul.f32 %v1821_v22, %v2160_v62  ;;  %v560_v23 = vpack.c.bf16 %v548_v19, %v547_v18  ;;  %v534_v24 = vadd.f32 %v2205_v0, %v512_v20 }
 0x245   :  { %v493_v54 = vmul.f32 %v1823_v13, %v2166_v2  ;;  %v535_v28 = vadd.f32 %v2205_v0, %v513_v59 }
 0x246   :  { %1679 = vmatmul.mubr.msk.bf16.gmra.mrb[4].mxu1 %vm287_vm0, %v560_v23  ;;  %v550_v25 = vmax.f32 %v534_v24, 0.0  ;;  %v514_v27 = vmul.f32 %v2199_v44, %v492_v50 }
 0x247   :  { %v1825_v29 = vpop.eup %1824  ;;  %v515_v30 = vmul.f32 %v2199_v44, %v493_v54  ;;  %v551_v2 = vmax.f32 %v535_v28, 0.0 }
 0x248   :  { %v1827_v33 = vpop.eup %1826  ;;  %v494_v34 = vmul.f32 %v1825_v29, %v2172_v8  ;;  %v561_v62 = vpack.c.bf16 %v550_v25, %v549_v5  ;;  %v536_v37 = vadd.f32 %v2205_v0, %v514_v27 }
 0x249   :  { %v495_v12 = vmul.f32 %v1827_v33, %v2178_v14  ;;  %v537_v40 = vadd.f32 %v2205_v0, %v515_v30 }
 0x24a   :  { %1682 = vmatprep.mubr.msk.bf16.mxu1 %vm287_vm0, %v561_v62  ;;  %v552_v36 = vmax.f32 %v536_v37, 0.0  ;;  %v516_v39 = vmul.f32 %v2199_v44, %v494_v34 }
 0x24b   :  { %v1829_v41 = vpop.eup %1828  ;;  %v517_v21 = vmul.f32 %v2199_v44, %v495_v12  ;;  %v553_v46 = vmax.f32 %v537_v40, 0.0  ;;  %v981_v40 = vld [vmem:[%s2762_s9] sm:$0xf] }
 0x24c   :  { %v496_v31 = vmul.f32 %v1829_v41, %v2184_v60  ;;  %v562_v45 = vpack.c.bf16 %v552_v36, %v551_v2  ;;  %v538_v8 = vadd.f32 %v2205_v0, %v516_v39  ;;  %v1548_v60 = vld [vmem:[%s2761_s6] ss:$0 sm:$0xff]  ;;  %1775 = vmatprep.subr.msk.bf16.mxu1 %vm1013_vm2, %v981_v40  ;;  %v1015_v41 = vsel %vm1013_vm2, %v981_v40, 0 }
 0x24d   :  { %v539_v35 = vadd.f32 %v2205_v0, %v517_v21  ;;  %1691 = vmatpush3.bf16.msra.mxu1 %v1015_v41 }
 0x24e   :  { %1683 = vmatmul.mubr.msk.bf16.gmra.mrb[8].mxu1 %vm287_vm0, %v562_v45  ;;  %v554_v14 = vmax.f32 %v538_v8, 0.0  ;;  %v518_v49 = vmul.f32 %v2199_v44, %v496_v31 }
 0x24f   :  { %v555_v53 = vmax.f32 %v539_v35, 0.0 }
 0x250   :  { %v563_v51 = vpack.c.bf16 %v554_v14, %v553_v46  ;;  %v540_v52 = vadd.f32 %v2205_v0, %v518_v49 }
 0x252   :  { %1686 = vmatprep.mubr.msk.bf16.mxu1 %vm287_vm0, %v563_v51  ;;  %v556_v26 = vmax.f32 %v540_v52, 0.0 }
 0x254   :  { %v564_v57 = vpack.c.bf16 %v556_v26, %v555_v53 }
 0x256   :  { %1687 = vmatmul.mubr.msk.bf16.gmra.mrb[12].mxu1 %vm287_vm0, %v564_v57 }
 0x311   :  { %v1676_v58 = vpop.f32.mrb[0].mxu1 }
 0x312   :  { %v638_v61 = vpop.f32.mrb[1].mxu1  ;;  %v2267_v32 = vadd.f32 %v1676_v58, %v1548_v60 }
 0x313   :  { %v2265_v44 = vadd.f32 %v1548_v60, %v638_v61  ;;  %v1677_v48 = vpop.f32.mrb[2].mxu1 }
 0x314   :  { %v641_v63 = vpop.f32.mrb[3].mxu1  ;;  %v2273_v43 = vadd.f32 %v1677_v48, %v1548_v60  ;;  %v710_v7 = vsel %vm703_vm1, %v2267_v32, 0.0 }
 0x315   :  { %v2269_v0 = vadd.f32 %v1548_v60, %v641_v63  ;;  %v704_v1 = vsel %vm703_vm1, %v2265_v44, 0.0 }
 0x316   :  { %705 = vadd.xlane.f32.xlu0 %v704_v1  ;;  %v713_v6 = vsel %vm703_vm1, %v2273_v43, 0.0 }
 0x317   :  { %v707_v3 = vsel %vm703_vm1, %v2269_v0, 0.0 }
 0x318   :  { %708 = vadd.xlane.f32.xlu1 %v707_v3 }
 0x319   :  { %v1680_v4 = vpop.f32.mrb[4].mxu1 }
 0x31a   :  { %711 = vadd.xlane.f32.xlu0 %v710_v7  ;;  %v654_v47 = vpop.f32.mrb[5].mxu1  ;;  %v2283_v38 = vadd.f32 %v1680_v4, %v1548_v60 }
 0x31b   :  { %v2279_v9 = vadd.f32 %v1548_v60, %v654_v47  ;;  %v1681_v10 = vpop.f32.mrb[6].mxu1 }
 0x31c   :  { %714 = vadd.xlane.f32.xlu1 %v713_v6  ;;  %v657_v11 = vpop.f32.mrb[7].mxu1  ;;  %v2289_v16 = vadd.f32 %v1681_v10, %v1548_v60  ;;  %v722_v18 = vsel %vm703_vm1, %v2283_v38, 0.0 }
 0x31d   :  { %v2285_v56 = vadd.f32 %v1548_v60, %v657_v11  ;;  %v716_v15 = vsel %vm703_vm1, %v2279_v9, 0.0 }
 0x31e   :  { %717 = vadd.xlane.f32.xlu0 %v716_v15  ;;  %v725_v22 = vsel %vm703_vm1, %v2289_v16, 0.0 }
 0x31f   :  { %v719_v42 = vsel %vm703_vm1, %v2285_v56, 0.0 }
 0x320   :  { %720 = vadd.xlane.f32.xlu1 %v719_v42 }
 0x321   :  { %v1684_v17 = vpop.f32.mrb[8].mxu1 }
 0x322   :  { %723 = vadd.xlane.f32.xlu0 %v722_v18  ;;  %v670_v19 = vpop.f32.mrb[9].mxu1  ;;  %v2299_v13 = vadd.f32 %v1684_v17, %v1548_v60 }
 0x323   :  { %v2295_v20 = vadd.f32 %v1548_v60, %v670_v19  ;;  %v1685_v55 = vpop.f32.mrb[10].mxu1 }
 0x324   :  { %726 = vadd.xlane.f32.xlu1 %v725_v22  ;;  %v673_v59 = vpop.f32.mrb[11].mxu1  ;;  %v2305_v24 = vadd.f32 %v1685_v55, %v1548_v60  ;;  %v734_v25 = vsel %vm703_vm1, %v2299_v13, 0.0 }
 0x325   :  { %v2301_v50 = vadd.f32 %v1548_v60, %v673_v59  ;;  %v728_v23 = vsel %vm703_vm1, %v2295_v20, 0.0 }
 0x326   :  { %729 = vadd.xlane.f32.xlu0 %v728_v23  ;;  %v737_v30 = vsel %vm703_vm1, %v2305_v24, 0.0 }
 0x327   :  { %v731_v54 = vsel %vm703_vm1, %v2301_v50, 0.0 }
 0x328   :  { %732 = vadd.xlane.f32.xlu1 %v731_v54 }
 0x329   :  { %v1688_v5 = vpop.f32.mrb[12].mxu1 }
 0x32a   :  { %735 = vadd.xlane.f32.xlu0 %v734_v25  ;;  %v686_v27 = vpop.f32.mrb[13].mxu1  ;;  %v2315_v34 = vadd.f32 %v1688_v5, %v1548_v60 }
 0x32b   :  { %v2311_v28 = vadd.f32 %v1548_v60, %v686_v27  ;;  %v1689_v29 = vpop.f32.mrb[14].mxu1 }
 0x32c   :  { %738 = vadd.xlane.f32.xlu1 %v737_v30  ;;  %v689_v33 = vpop.f32.mrb[15].mxu1  ;;  %v2321_v12 = vadd.f32 %v1689_v29, %v1548_v60  ;;  %v746_v36 = vsel %vm703_vm1, %v2315_v34, 0.0 }
 0x32d   :  { %v2317_v62 = vadd.f32 %v1548_v60, %v689_v33  ;;  %v740_v37 = vsel %vm703_vm1, %v2311_v28, 0.0 }
 0x32e   :  { %741 = vadd.xlane.f32.xlu0 %v740_v37  ;;  %v749_v39 = vsel %vm703_vm1, %v2321_v12, 0.0 }
 0x32f   :  { %v743_v2 = vsel %vm703_vm1, %v2317_v62, 0.0 }
 0x330   :  { %744 = vadd.xlane.f32.xlu1 %v743_v2 }
 0x332   :  { %747 = vadd.xlane.f32.xlu0 %v746_v36 }
 0x334   :  { %750 = vadd.xlane.f32.xlu1 %v749_v39 }
 0x3a3   :  { %v706_v21 = vpop.xlane.xlu0 %705 }
 0x3a4   :  { %v753_v31 = vmul.f32 0.125, %v706_v21 }
 0x3a5   :  { %v709_v45 = vpop.xlane.xlu1 %708 }
 0x3a6   :  { %v2333_v8 = vsub.f32 %v2265_v44, %v753_v31  ;;  %v754_v46 = vmul.f32 0.125, %v709_v45 }
 0x3a7   :  { %v712_v14 = vpop.xlane.xlu0 %711 }
 0x3a8   :  { %v2336_v49 = vsub.f32 %v2269_v0, %v754_v46  ;;  %v755_v35 = vmul.f32 0.125, %v712_v14  ;;  %v785_v51 = vmul.f32 %v2333_v8, %v2333_v8 }
 0x3a9   :  { %v715_v52 = vpop.xlane.xlu1 %714 }
 0x3aa   :  { %v2341_v53 = vsub.f32 %v2267_v32, %v755_v35  ;;  %v756_v26 = vmul.f32 0.125, %v715_v52  ;;  %v801_v57 = vsel %vm703_vm1, %v785_v51, 0.0  ;;  %v786_v60 = vmul.f32 %v2336_v49, %v2336_v49 }
 0x3ab   :  { %802 = vadd.xlane.f32.xlu0 %v801_v57  ;;  %v718_v58 = vpop.xlane.xlu0 %717 }
 0x3ac   :  { %v2347_v61 = vsub.f32 %v2273_v43, %v756_v26  ;;  %v757_v44 = vmul.f32 0.125, %v718_v58  ;;  %v804_v48 = vsel %vm703_vm1, %v786_v60, 0.0  ;;  %v787_v63 = vmul.f32 %v2341_v53, %v2341_v53 }
 0x3ad   :  { %v721_v0 = vpop.xlane.xlu1 %720  ;;  %805 = vadd.xlane.f32.xlu1 %v804_v48 }
 0x3ae   :  { %v2353_v32 = vsub.f32 %v2279_v9, %v757_v44  ;;  %v758_v1 = vmul.f32 0.125, %v721_v0  ;;  %v807_v3 = vsel %vm703_vm1, %v787_v63, 0.0  ;;  %v788_v4 = vmul.f32 %v2347_v61, %v2347_v61 }
 0x3af   :  { %808 = vadd.xlane.f32.xlu0 %v807_v3  ;;  %v724_v43 = vpop.xlane.xlu0 %723 }
 0x3b0   :  { %v2359_v7 = vsub.f32 %v2285_v56, %v758_v1  ;;  %v759_v47 = vmul.f32 0.125, %v724_v43  ;;  %v810_v10 = vsel %vm703_vm1, %v788_v4, 0.0  ;;  %v789_v6 = vmul.f32 %v2353_v32, %v2353_v32 }
 0x3b1   :  { %v727_v11 = vpop.xlane.xlu1 %726  ;;  %811 = vadd.xlane.f32.xlu1 %v810_v10 }
 0x3b2   :  { %v2365_v9 = vsub.f32 %v2283_v38, %v759_v47  ;;  %v760_v15 = vmul.f32 0.125, %v727_v11  ;;  %v813_v42 = vsel %vm703_vm1, %v789_v6, 0.0  ;;  %v790_v17 = vmul.f32 %v2359_v7, %v2359_v7 }
 0x3b3   :  { %814 = vadd.xlane.f32.xlu0 %v813_v42  ;;  %v730_v56 = vpop.xlane.xlu0 %729 }
 0x3b4   :  { %v2371_v18 = vsub.f32 %v2289_v16, %v760_v15  ;;  %v761_v19 = vmul.f32 0.125, %v730_v56  ;;  %v816_v55 = vsel %vm703_vm1, %v790_v17, 0.0  ;;  %v791_v22 = vmul.f32 %v2365_v9, %v2365_v9 }
 0x3b5   :  { %v733_v59 = vpop.xlane.xlu1 %732  ;;  %817 = vadd.xlane.f32.xlu1 %v816_v55 }
 0x3b6   :  { %v2377_v38 = vsub.f32 %v2295_v20, %v761_v19  ;;  %v762_v23 = vmul.f32 0.125, %v733_v59  ;;  %v819_v54 = vsel %vm703_vm1, %v791_v22, 0.0  ;;  %v792_v5 = vmul.f32 %v2371_v18, %v2371_v18 }
 0x3b7   :  { %820 = vadd.xlane.f32.xlu0 %v819_v54  ;;  %v736_v16 = vpop.xlane.xlu0 %735 }
 0x3b8   :  { %v2383_v25 = vsub.f32 %v2301_v50, %v762_v23  ;;  %v763_v27 = vmul.f32 0.125, %v736_v16  ;;  %v822_v29 = vsel %vm703_vm1, %v792_v5, 0.0  ;;  %v793_v30 = vmul.f32 %v2377_v38, %v2377_v38 }
 0x3b9   :  { %v739_v33 = vpop.xlane.xlu1 %738  ;;  %823 = vadd.xlane.f32.xlu1 %v822_v29 }
 0x3ba   :  { %v2389_v20 = vsub.f32 %v2299_v13, %v763_v27  ;;  %v764_v37 = vmul.f32 0.125, %v739_v33  ;;  %v825_v2 = vsel %vm703_vm1, %v793_v30, 0.0  ;;  %v794_v36 = vmul.f32 %v2383_v25, %v2383_v25  ;;  %v2431_v30 = vld [vmem:[%s2763_s7] ss:$0 sm:$0xff] }
 0x3bb   :  { %826 = vadd.xlane.f32.xlu0 %v825_v2  ;;  %v742_v50 = vpop.xlane.xlu0 %741 }
 0x3bc   :  { %v2395_v39 = vsub.f32 %v2305_v24, %v764_v37  ;;  %v765_v40 = vmul.f32 0.125, %v742_v50  ;;  %v828_v41 = vsel %vm703_vm1, %v794_v36, 0.0  ;;  %v795_v21 = vmul.f32 %v2389_v20, %v2389_v20 }
 0x3bd   :  { %829 = vadd.xlane.f32.xlu1 %v828_v41  ;;  %v745_v13 = vpop.xlane.xlu1 %744 }
 0x3be   :  { %v2401_v31 = vsub.f32 %v2311_v28, %v765_v40  ;;  %v766_v45 = vmul.f32 0.125, %v745_v13  ;;  %v831_v46 = vsel %vm703_vm1, %v795_v21, 0.0  ;;  %v796_v14 = vmul.f32 %v2395_v39, %v2395_v39  ;;  %v2437_v40 = vld [vmem:[%s2764_s8] ss:$0 sm:$0xff] }
 0x3bf   :  { %832 = vadd.xlane.f32.xlu0 %v831_v46  ;;  %v748_v24 = vpop.xlane.xlu0 %747 }
 0x3c0   :  { %v2407_v35 = vsub.f32 %v2317_v62, %v766_v45  ;;  %v767_v51 = vmul.f32 0.125, %v748_v24  ;;  %v834_v52 = vsel %vm703_vm1, %v796_v14, 0.0  ;;  %v797_v26 = vmul.f32 %v2401_v31, %v2401_v31 }
 0x3c1   :  { %835 = vadd.xlane.f32.xlu1 %v834_v52  ;;  %v751_v28 = vpop.xlane.xlu1 %750 }
 0x3c2   :  { %v2413_v57 = vsub.f32 %v2315_v34, %v767_v51  ;;  %v768_v60 = vmul.f32 0.125, %v751_v28  ;;  %v837_v58 = vsel %vm703_vm1, %v797_v26, 0.0  ;;  %v798_v44 = vmul.f32 %v2407_v35, %v2407_v35 }
 0x3c3   :  { %838 = vadd.xlane.f32.xlu0 %v837_v58 }
 0x3c4   :  { %v2419_v62 = vsub.f32 %v2321_v12, %v768_v60  ;;  %v840_v48 = vsel %vm703_vm1, %v798_v44, 0.0  ;;  %v799_v63 = vmul.f32 %v2413_v57, %v2413_v57 }
 0x3c5   :  { %841 = vadd.xlane.f32.xlu1 %v840_v48 }
 0x3c6   :  { %v843_v0 = vsel %vm703_vm1, %v799_v63, 0.0  ;;  %v800_v34 = vmul.f32 %v2419_v62, %v2419_v62 }
 0x3c7   :  { %844 = vadd.xlane.f32.xlu0 %v843_v0 }
 0x3c8   :  { %v846_v1 = vsel %vm703_vm1, %v800_v34, 0.0 }
 0x3c9   :  { %847 = vadd.xlane.f32.xlu1 %v846_v1 }
 0x438   :  { %v803_v3 = vpop.xlane.xlu0 %802 }
 0x439   :  { %v849_v4 = vmul.f32 0.125, %v803_v3 }
 0x43a   :  { %v806_v43 = vpop.xlane.xlu1 %805 }
 0x43b   :  { %v865_v12 = vadd.f32 1e-05, %v849_v4  ;;  %v850_v47 = vmul.f32 0.125, %v806_v43 }
 0x43c   :  { %v809_v10 = vpop.xlane.xlu0 %808 }
 0x43d   :  { %1830 = vrsqrt.f32 %v865_v12  ;;  %v866_v6 = vadd.f32 1e-05, %v850_v47  ;;  %v851_v11 = vmul.f32 0.125, %v809_v10 }
 0x43e   :  { %v812_v15 = vpop.xlane.xlu1 %811 }
 0x43f   :  { %1832 = vrsqrt.f32 %v866_v6  ;;  %v867_v42 = vadd.f32 1e-05, %v851_v11  ;;  %v852_v17 = vmul.f32 0.125, %v812_v15 }
 0x440   :  { %v815_v56 = vpop.xlane.xlu0 %814 }
 0x441   :  { %1834 = vrsqrt.f32 %v867_v42  ;;  %v868_v19 = vadd.f32 1e-05, %v852_v17  ;;  %v853_v55 = vmul.f32 0.125, %v815_v56 }
 0x442   :  { %v818_v22 = vpop.xlane.xlu1 %817 }
 0x443   :  { %1836 = vrsqrt.f32 %v868_v19  ;;  %v869_v59 = vadd.f32 1e-05, %v853_v55  ;;  %v854_v23 = vmul.f32 0.125, %v818_v22 }
 0x444   :  { %v821_v54 = vpop.xlane.xlu0 %820 }
 0x445   :  { %1838 = vrsqrt.f32 %v869_v59  ;;  %v870_v5 = vadd.f32 1e-05, %v854_v23  ;;  %v855_v16 = vmul.f32 0.125, %v821_v54 }
 0x446   :  { %v824_v27 = vpop.xlane.xlu1 %823 }
 0x447   :  { %v1831_v29 = vpop.eup %1830  ;;  %1840 = vrsqrt.f32 %v870_v5  ;;  %v871_v33 = vadd.f32 1e-05, %v855_v16  ;;  %v856_v37 = vmul.f32 0.125, %v824_v27 }
 0x448   :  { %v897_v2 = vmul.f32 %v1831_v29, %v2333_v8  ;;  %v827_v36 = vpop.xlane.xlu0 %826 }
 0x449   :  { %v1833_v50 = vpop.eup %1832  ;;  %1842 = vrsqrt.f32 %v871_v33  ;;  %v872_v41 = vadd.f32 1e-05, %v856_v37  ;;  %v857_v21 = vmul.f32 0.125, %v827_v36 }
 0x44a   :  { %v898_v13 = vmul.f32 %v1833_v50, %v2336_v49  ;;  %v830_v45 = vpop.xlane.xlu1 %829  ;;  %v919_v46 = vmul.f32 %v2431_v30, %v897_v2 }
 0x44b   :  { %v1835_v14 = vpop.eup %1834  ;;  %1844 = vrsqrt.f32 %v872_v41  ;;  %v873_v24 = vadd.f32 1e-05, %v857_v21  ;;  %v858_v51 = vmul.f32 0.125, %v830_v45 }
 0x44c   :  { %v899_v8 = vmul.f32 %v1835_v14, %v2341_v53  ;;  %v833_v52 = vpop.xlane.xlu0 %832  ;;  %v920_v26 = vmul.f32 %v2431_v30, %v898_v13  ;;  %v941_v28 = vadd.f32 %v2437_v40, %v919_v46 }
 0x44d   :  { %v1837_v60 = vpop.eup %1836  ;;  %1846 = vrsqrt.f32 %v873_v24  ;;  %v874_v58 = vadd.f32 1e-05, %v858_v51  ;;  %v859_v44 = vmul.f32 0.125, %v833_v52 }
 0x44e   :  { %v921_v49 = vmul.f32 %v2431_v30, %v899_v8  ;;  %v900_v48 = vmul.f32 %v1837_v60, %v2347_v61  ;;  %v836_v63 = vpop.xlane.xlu1 %835  ;;  %v942_v0 = vadd.f32 %v2437_v40, %v920_v26  ;;  %v957_v3 = vmax.f32 %v941_v28, 0.0 }
 0x44f   :  { %v1839_v34 = vpop.eup %1838  ;;  %1848 = vrsqrt.f32 %v874_v58  ;;  %v875_v1 = vadd.f32 1e-05, %v859_v44  ;;  %v860_v53 = vmul.f32 0.125, %v836_v63 }
 0x450   :  { %v943_v4 = vadd.f32 %v2437_v40, %v921_v49  ;;  %v922_v43 = vmul.f32 %v2431_v30, %v900_v48  ;;  %v901_v12 = vmul.f32 %v1839_v34, %v2353_v32  ;;  %v839_v47 = vpop.xlane.xlu0 %838  ;;  %v958_v10 = vmax.f32 %v942_v0, 0.0 }
 0x451   :  { %v1841_v6 = vpop.eup %1840  ;;  %1850 = vrsqrt.f32 %v875_v1  ;;  %v876_v11 = vadd.f32 1e-05, %v860_v53  ;;  %v861_v61 = vmul.f32 0.125, %v839_v47 }
 0x452   :  { %v944_v15 = vadd.f32 %v2437_v40, %v922_v43  ;;  %v902_v42 = vmul.f32 %v1841_v6, %v2359_v7  ;;  %v842_v17 = vpop.xlane.xlu1 %841  ;;  %v973_v56 = vpack.c.bf16 %v958_v10, %v957_v3  ;;  %v923_v59 = vmul.f32 %v2431_v30, %v901_v12 }
 0x453   :  { %v1843_v19 = vpop.eup %1842  ;;  %1852 = vrsqrt.f32 %v876_v11  ;;  %v877_v55 = vadd.f32 1e-05, %v861_v61  ;;  %v862_v22 = vmul.f32 0.125, %v842_v17  ;;  %v959_v23 = vmax.f32 %v943_v4, 0.0 }
 0x454   :  { %v960_v32 = vmax.f32 %v944_v15, 0.0  ;;  %v903_v54 = vmul.f32 %v1843_v19, %v2365_v9  ;;  %1692 = vmatprep.mubr.msk.bf16.mxu1 %vm703_vm1, %v973_v56  ;;  %v845_v5 = vpop.xlane.xlu0 %844  ;;  %v924_v16 = vmul.f32 %v2431_v30, %v902_v42  ;;  %v945_v33 = vadd.f32 %v2437_v40, %v923_v59 }
 0x455   :  { %v1845_v27 = vpop.eup %1844  ;;  %1854 = vrsqrt.f32 %v877_v55  ;;  %v878_v7 = vadd.f32 1e-05, %v862_v22  ;;  %v863_v29 = vmul.f32 0.125, %v845_v5 }
 0x456   :  { %v904_v37 = vmul.f32 %v1845_v27, %v2371_v18  ;;  %v848_v2 = vpop.xlane.xlu1 %847  ;;  %v974_v36 = vpack.c.bf16 %v960_v32, %v959_v23  ;;  %v946_v50 = vadd.f32 %v2437_v40, %v924_v16  ;;  %v925_v41 = vmul.f32 %v2431_v30, %v903_v54 }
 0x457   :  { %v1847_v9 = vpop.eup %1846  ;;  %1856 = vrsqrt.f32 %v878_v7  ;;  %v879_v21 = vadd.f32 1e-05, %v863_v29  ;;  %v864_v13 = vmul.f32 0.125, %v848_v2  ;;  %v961_v45 = vmax.f32 %v945_v33, 0.0  ;;  %v1560_v33 = vld [vmem:[%s2765_s10] ss:$0 sm:$0xff] }
 0x458   :  { %v905_v46 = vmul.f32 %v1847_v9, %v2377_v38  ;;  %1693 = vmatmul.mubr.msk.bf16.vlgmr.msra.gmra.mrb[16].mxu1 %vm703_vm1, %v974_v36  ;;  %v962_v14 = vmax.f32 %v946_v50, 0.0  ;;  %v926_v24 = vmul.f32 %v2431_v30, %v904_v37  ;;  %v947_v18 = vadd.f32 %v2437_v40, %v925_v41 }
 0x459   :  { %v1849_v51 = vpop.eup %1848  ;;  %1858 = vrsqrt.f32 %v879_v21  ;;  %v880_v8 = vadd.f32 1e-05, %v864_v13 }
 0x45a   :  { %v906_v52 = vmul.f32 %v1849_v51, %v2383_v25  ;;  %v975_v26 = vpack.c.bf16 %v962_v14, %v961_v45  ;;  %v948_v28 = vadd.f32 %v2437_v40, %v926_v24  ;;  %v927_v58 = vmul.f32 %v2431_v30, %v905_v46 }
 0x45b   :  { %v1851_v60 = vpop.eup %1850  ;;  %1860 = vrsqrt.f32 %v880_v8  ;;  %v963_v44 = vmax.f32 %v947_v18, 0.0 }
 0x45c   :  { %v907_v38 = vmul.f32 %v1851_v60, %v2389_v20  ;;  %1696 = vmatprep.mubr.msk.bf16.mxu1 %vm703_vm1, %v975_v26  ;;  %v964_v49 = vmax.f32 %v948_v28, 0.0  ;;  %v928_v48 = vmul.f32 %v2431_v30, %v906_v52  ;;  %v949_v0 = vadd.f32 %v2437_v40, %v927_v58 }
 0x45d   :  { %v1853_v63 = vpop.eup %1852 }
 0x45e   :  { %v908_v25 = vmul.f32 %v1853_v63, %v2395_v39  ;;  %v976_v34 = vpack.c.bf16 %v964_v49, %v963_v44  ;;  %v950_v1 = vadd.f32 %v2437_v40, %v928_v48  ;;  %v929_v53 = vmul.f32 %v2431_v30, %v907_v38 }
 0x45f   :  { %v1855_v3 = vpop.eup %1854  ;;  %v965_v4 = vmax.f32 %v949_v0, 0.0 }
 0x460   :  { %v909_v20 = vmul.f32 %v1855_v3, %v2401_v31  ;;  %1697 = vmatmul.mubr.msk.bf16.gmra.mrb[20].mxu1 %vm703_vm1, %v976_v34  ;;  %v966_v43 = vmax.f32 %v950_v1, 0.0  ;;  %v930_v12 = vmul.f32 %v2431_v30, %v908_v25  ;;  %v951_v47 = vadd.f32 %v2437_v40, %v929_v53 }
 0x461   :  { %v1857_v10 = vpop.eup %1856 }
 0x462   :  { %v910_v6 = vmul.f32 %v1857_v10, %v2407_v35  ;;  %v977_v39 = vpack.c.bf16 %v966_v43, %v965_v4  ;;  %v952_v11 = vadd.f32 %v2437_v40, %v930_v12  ;;  %v931_v15 = vmul.f32 %v2431_v30, %v909_v20 }
 0x463   :  { %v1859_v61 = vpop.eup %1858  ;;  %v967_v31 = vmax.f32 %v951_v47, 0.0 }
 0x464   :  { %v911_v42 = vmul.f32 %v1859_v61, %v2413_v57  ;;  %1700 = vmatprep.mubr.msk.bf16.mxu1 %vm703_vm1, %v977_v39  ;;  %v968_v17 = vmax.f32 %v952_v11, 0.0  ;;  %v932_v56 = vmul.f32 %v2431_v30, %v910_v6  ;;  %v953_v55 = vadd.f32 %v2437_v40, %v931_v15 }
 0x465   :  { %v1861_v19 = vpop.eup %1860 }
 0x466   :  { %v912_v22 = vmul.f32 %v1861_v19, %v2419_v62  ;;  %v978_v35 = vpack.c.bf16 %v968_v17, %v967_v31  ;;  %v954_v59 = vadd.f32 %v2437_v40, %v932_v56  ;;  %v933_v23 = vmul.f32 %v2431_v30, %v911_v42 }
 0x467   :  { %v969_v32 = vmax.f32 %v953_v55, 0.0 }
 0x468   :  { %1701 = vmatmul.mubr.msk.bf16.gmra.mrb[24].mxu1 %vm703_vm1, %v978_v35  ;;  %v970_v57 = vmax.f32 %v954_v59, 0.0  ;;  %v934_v54 = vmul.f32 %v2431_v30, %v912_v22  ;;  %v955_v5 = vadd.f32 %v2437_v40, %v933_v23 }
 0x46a   :  { %v979_v16 = vpack.c.bf16 %v970_v57, %v969_v32  ;;  %v956_v27 = vadd.f32 %v2437_v40, %v934_v54  ;;  %v971_v7 = vmax.f32 %v955_v5, 0.0 }
 0x46c   :  { %1704 = vmatprep.mubr.msk.bf16.mxu1 %vm703_vm1, %v979_v16  ;;  %v972_v62 = vmax.f32 %v956_v27, 0.0 }
 0x46e   :  { %v980_v29 = vpack.c.bf16 %v972_v62, %v971_v7 }
 0x470   :  { %1705 = vmatmul.mubr.msk.bf16.gmra.mrb[28].mxu1 %vm703_vm1, %v980_v29 }
 0x52b   :  { %v1694_v37 = vpop.f32.mrb[16].mxu1 }
 0x52c   :  { %v1051_v2 = vpop.f32.mrb[17].mxu1  ;;  %v2499_v41 = vadd.f32 %v1694_v37, %v1560_v33 }
 0x52d   :  { %v2497_v30 = vadd.f32 %v1560_v33, %v1051_v2  ;;  %v1695_v36 = vpop.f32.mrb[18].mxu1 }
 0x52e   :  { %v1054_v50 = vpop.f32.mrb[19].mxu1  ;;  %v2505_v21 = vadd.f32 %v1695_v36, %v1560_v33  ;;  %v1123_v46 = vsel %vm1116_vm3, %v2499_v41, 0.0 }
 0x52f   :  { %v2501_v40 = vadd.f32 %v1560_v33, %v1054_v50  ;;  %v1117_v9 = vsel %vm1116_vm3, %v2497_v30, 0.0 }
 0x530   :  { %1118 = vadd.xlane.f32.xlu0 %v1117_v9  ;;  %v1126_v51 = vsel %vm1116_vm3, %v2505_v21, 0.0 }
 0x531   :  { %v1120_v13 = vsel %vm1116_vm3, %v2501_v40, 0.0 }
 0x532   :  { %1121 = vadd.xlane.f32.xlu1 %v1120_v13 }
 0x533   :  { %v1698_v45 = vpop.f32.mrb[20].mxu1 }
 0x534   :  { %1124 = vadd.xlane.f32.xlu0 %v1123_v46  ;;  %v1067_v14 = vpop.f32.mrb[21].mxu1  ;;  %v2515_v52 = vadd.f32 %v1698_v45, %v1560_v33 }
 0x535   :  { %v2511_v24 = vadd.f32 %v1560_v33, %v1067_v14  ;;  %v1699_v18 = vpop.f32.mrb[22].mxu1 }
 0x536   :  { %1127 = vadd.xlane.f32.xlu1 %v1126_v51  ;;  %v1070_v8 = vpop.f32.mrb[23].mxu1  ;;  %v2521_v60 = vadd.f32 %v1699_v18, %v1560_v33  ;;  %v1135_v44 = vsel %vm1116_vm3, %v2515_v52, 0.0 }
 0x537   :  { %v2517_v26 = vadd.f32 %v1560_v33, %v1070_v8  ;;  %v1129_v28 = vsel %vm1116_vm3, %v2511_v24, 0.0 }
 0x538   :  { %1130 = vadd.xlane.f32.xlu0 %v1129_v28  ;;  %v1138_v0 = vsel %vm1116_vm3, %v2521_v60, 0.0 }
 0x539   :  { %v1132_v58 = vsel %vm1116_vm3, %v2517_v26, 0.0 }
 0x53a   :  { %1133 = vadd.xlane.f32.xlu1 %v1132_v58 }
 0x53b   :  { %v1702_v38 = vpop.f32.mrb[24].mxu1 }
 0x53c   :  { %1136 = vadd.xlane.f32.xlu0 %v1135_v44  ;;  %v1083_v49 = vpop.f32.mrb[25].mxu1  ;;  %v2531_v34 = vadd.f32 %v1702_v38, %v1560_v33 }
 0x53d   :  { %v2527_v48 = vadd.f32 %v1560_v33, %v1083_v49  ;;  %v1703_v63 = vpop.f32.mrb[26].mxu1 }
 0x53e   :  { %1139 = vadd.xlane.f32.xlu1 %v1138_v0  ;;  %v1086_v25 = vpop.f32.mrb[27].mxu1  ;;  %v2537_v3 = vadd.f32 %v1703_v63, %v1560_v33  ;;  %v1147_v43 = vsel %vm1116_vm3, %v2531_v34, 0.0 }
 0x53f   :  { %v2533_v1 = vadd.f32 %v1560_v33, %v1086_v25  ;;  %v1141_v53 = vsel %vm1116_vm3, %v2527_v48, 0.0 }
 0x540   :  { %1142 = vadd.xlane.f32.xlu0 %v1141_v53  ;;  %v1150_v6 = vsel %vm1116_vm3, %v2537_v3, 0.0 }
 0x541   :  { %v1144_v4 = vsel %vm1116_vm3, %v2533_v1, 0.0 }
 0x542   :  { %1145 = vadd.xlane.f32.xlu1 %v1144_v4 }
 0x543   :  { %v1706_v20 = vpop.f32.mrb[28].mxu1 }
 0x544   :  { %1148 = vadd.xlane.f32.xlu0 %v1147_v43  ;;  %v1099_v12 = vpop.f32.mrb[29].mxu1  ;;  %v2547_v11 = vadd.f32 %v1706_v20, %v1560_v33 }
 0x545   :  { %v2543_v47 = vadd.f32 %v1560_v33, %v1099_v12  ;;  %v1707_v10 = vpop.f32.mrb[30].mxu1 }
 0x546   :  { %1151 = vadd.xlane.f32.xlu1 %v1150_v6  ;;  %v1102_v39 = vpop.f32.mrb[31].mxu1  ;;  %v2553_v42 = vadd.f32 %v1707_v10, %v1560_v33  ;;  %v1159_v17 = vsel %vm1116_vm3, %v2547_v11, 0.0 }
 0x547   :  { %v2549_v61 = vadd.f32 %v1560_v33, %v1102_v39  ;;  %v1153_v15 = vsel %vm1116_vm3, %v2543_v47, 0.0 }
 0x548   :  { %1154 = vadd.xlane.f32.xlu0 %v1153_v15  ;;  %v1162_v56 = vsel %vm1116_vm3, %v2553_v42, 0.0 }
 0x549   :  { %v1156_v31 = vsel %vm1116_vm3, %v2549_v61, 0.0 }
 0x54a   :  { %1157 = vadd.xlane.f32.xlu1 %v1156_v31 }
 0x54c   :  { %1160 = vadd.xlane.f32.xlu0 %v1159_v17 }
 0x54e   :  { %1163 = vadd.xlane.f32.xlu1 %v1162_v56 }
 0x5bd   :  { %v1119_v19 = vpop.xlane.xlu0 %1118 }
 0x5be   :  { %v1166_v55 = vmul.f32 0.25, %v1119_v19 }
 0x5bf   :  { %v1122_v22 = vpop.xlane.xlu1 %1121 }
 0x5c0   :  { %v2562_v35 = vsub.f32 %v2497_v30, %v1166_v55  ;;  %v1167_v59 = vmul.f32 0.25, %v1122_v22 }
 0x5c1   :  { %v1125_v23 = vpop.xlane.xlu0 %1124 }
 0x5c2   :  { %v2565_v32 = vsub.f32 %v2501_v40, %v1167_v59  ;;  %v1168_v57 = vmul.f32 0.25, %v1125_v23  ;;  %v1198_v54 = vmul.f32 %v2562_v35, %v2562_v35 }
 0x5c3   :  { %v1128_v5 = vpop.xlane.xlu1 %1127 }
 0x5c4   :  { %v2570_v16 = vsub.f32 %v2499_v41, %v1168_v57  ;;  %v1169_v27 = vmul.f32 0.25, %v1128_v5  ;;  %v1214_v7 = vsel %vm1116_vm3, %v1198_v54, 0.0  ;;  %v1199_v62 = vmul.f32 %v2565_v32, %v2565_v32 }
 0x5c5   :  { %1215 = vadd.xlane.f32.xlu0 %v1214_v7  ;;  %v1131_v29 = vpop.xlane.xlu0 %1130 }
 0x5c6   :  { %v2576_v33 = vsub.f32 %v2505_v21, %v1169_v27  ;;  %v1170_v37 = vmul.f32 0.25, %v1131_v29  ;;  %v1217_v2 = vsel %vm1116_vm3, %v1199_v62, 0.0  ;;  %v1200_v30 = vmul.f32 %v2570_v16, %v2570_v16 }
 0x5c7   :  { %v1134_v36 = vpop.xlane.xlu1 %1133  ;;  %1218 = vadd.xlane.f32.xlu1 %v1217_v2 }
 0x5c8   :  { %v2582_v50 = vsub.f32 %v2511_v24, %v1170_v37  ;;  %v1171_v41 = vmul.f32 0.25, %v1134_v36  ;;  %v1220_v40 = vsel %vm1116_vm3, %v1200_v30, 0.0  ;;  %v1201_v9 = vmul.f32 %v2576_v33, %v2576_v33 }
 0x5c9   :  { %1221 = vadd.xlane.f32.xlu0 %v1220_v40  ;;  %v1137_v21 = vpop.xlane.xlu0 %1136  ;;  %v1898_v40 = vmov 0.0|0.0  }
 0x5ca   :  { %v2588_v13 = vsub.f32 %v2517_v26, %v1171_v41  ;;  %v1172_v45 = vmul.f32 0.25, %v1137_v21  ;;  %v1223_v46 = vsel %vm1116_vm3, %v1201_v9, 0.0  ;;  %v1202_v14 = vmul.f32 %v2582_v50, %v2582_v50  ;;  %1743 = vmatprep.subr.bf16.mxu0 %v1898_v40 }
 0x5cb   :  { %v1140_v18 = vpop.xlane.xlu1 %1139  ;;  %1224 = vadd.xlane.f32.xlu1 %v1223_v46  ;;  %v1901_v9 = vmov 0   ;;  %v20_v21 = vstv %s2766_s14 }
 0x5cc   :  { %v2594_v24 = vsub.f32 %v2515_v52, %v1172_v45  ;;  %v1173_v51 = vmul.f32 0.25, %v1140_v18  ;;  %v1226_v8 = vsel %vm1116_vm3, %v1202_v14, 0.0  ;;  %v1203_v28 = vmul.f32 %v2588_v13, %v2588_v13  ;;  %1780 = vset.pattern.permute.xlu0 %v1901_v9  ;;  %21 = vst [vmem:[#allocation2] sm:$0x1] %v20_v21 }
 0x5cd   :  { %1227 = vadd.xlane.f32.xlu0 %v1226_v8  ;;  %v1143_v26 = vpop.xlane.xlu0 %1142 }
 0x5ce   :  { %v2600_v58 = vsub.f32 %v2521_v60, %v1173_v51  ;;  %v1174_v38 = vmul.f32 0.25, %v1143_v26  ;;  %v1229_v44 = vsel %vm1116_vm3, %v1203_v28, 0.0  ;;  %v1204_v49 = vmul.f32 %v2594_v24, %v2594_v24 }
 0x5cf   :  { %v1146_v63 = vpop.xlane.xlu1 %1145  ;;  %1230 = vadd.xlane.f32.xlu1 %v1229_v44 }
 0x5d0   :  { %v2606_v52 = vsub.f32 %v2527_v48, %v1174_v38  ;;  %v1175_v0 = vmul.f32 0.25, %v1146_v63  ;;  %v1232_v25 = vsel %vm1116_vm3, %v1204_v49, 0.0  ;;  %v1205_v53 = vmul.f32 %v2600_v58, %v2600_v58 }
 0x5d1   :  { %1233 = vadd.xlane.f32.xlu0 %v1232_v25  ;;  %v1149_v60 = vpop.xlane.xlu0 %1148 }
 0x5d2   :  { %v2612_v4 = vsub.f32 %v2533_v1, %v1175_v0  ;;  %v1176_v20 = vmul.f32 0.25, %v1149_v60  ;;  %v1235_v43 = vsel %vm1116_vm3, %v1205_v53, 0.0  ;;  %v1206_v12 = vmul.f32 %v2606_v52, %v2606_v52 }
 0x5d3   :  { %v1152_v10 = vpop.xlane.xlu1 %1151  ;;  %1236 = vadd.xlane.f32.xlu1 %v1235_v43  ;;  %v1387_v45 = vld [vmem:[#allocation2] sm:$0x1] }
 0x5d4   :  { %v2618_v48 = vsub.f32 %v2531_v34, %v1176_v20  ;;  %v1177_v6 = vmul.f32 0.25, %v1152_v10  ;;  %v1238_v39 = vsel %vm1116_vm3, %v1206_v12, 0.0  ;;  %v1207_v15 = vmul.f32 %v2612_v4, %v2612_v4 }
 0x5d5   :  { %1239 = vadd.xlane.f32.xlu0 %v1238_v39  ;;  %v1155_v1 = vpop.xlane.xlu0 %1154 }
 0x5d6   :  { %v2624_v31 = vsub.f32 %v2537_v3, %v1177_v6  ;;  %v1178_v17 = vmul.f32 0.25, %v1155_v1  ;;  %v1241_v56 = vsel %vm1116_vm3, %v1207_v15, 0.0  ;;  %v1208_v19 = vmul.f32 %v2618_v48, %v2618_v48  ;;  %v2664_v15 = vld [vmem:[%s2767_s11] ss:$0 sm:$0xff] }
 0x5d7   :  { %1242 = vadd.xlane.f32.xlu1 %v1241_v56  ;;  %v1158_v34 = vpop.xlane.xlu1 %1157 }
 0x5d8   :  { %v2630_v55 = vsub.f32 %v2543_v47, %v1178_v17  ;;  %v1179_v22 = vmul.f32 0.25, %v1158_v34  ;;  %v1244_v59 = vsel %vm1116_vm3, %v1208_v19, 0.0  ;;  %v1209_v23 = vmul.f32 %v2624_v31, %v2624_v31 }
 0x5d9   :  { %1245 = vadd.xlane.f32.xlu0 %v1244_v59  ;;  %v1161_v3 = vpop.xlane.xlu0 %1160 }
 0x5da   :  { %v2636_v57 = vsub.f32 %v2549_v61, %v1179_v22  ;;  %v1180_v54 = vmul.f32 0.25, %v1161_v3  ;;  %v1247_v5 = vsel %vm1116_vm3, %v1209_v23, 0.0  ;;  %v1210_v27 = vmul.f32 %v2630_v55, %v2630_v55  ;;  %v2670_v22 = vld [vmem:[%s2768_s12] ss:$0 sm:$0xff] }
 0x5db   :  { %1248 = vadd.xlane.f32.xlu1 %v1247_v5  ;;  %v1164_v47 = vpop.xlane.xlu1 %1163 }
 0x5dc   :  { %v2642_v7 = vsub.f32 %v2547_v11, %v1180_v54  ;;  %v1181_v62 = vmul.f32 0.25, %v1164_v47  ;;  %v1250_v29 = vsel %vm1116_vm3, %v1210_v27, 0.0  ;;  %v1211_v37 = vmul.f32 %v2636_v57, %v2636_v57 }
 0x5dd   :  { %1251 = vadd.xlane.f32.xlu0 %v1250_v29 }
 0x5de   :  { %v2648_v61 = vsub.f32 %v2553_v42, %v1181_v62  ;;  %v1253_v2 = vsel %vm1116_vm3, %v1211_v37, 0.0  ;;  %v1212_v30 = vmul.f32 %v2642_v7, %v2642_v7  ;;  %v1900_v42 = vmov 0.0  }
 0x5df   :  { %1254 = vadd.xlane.f32.xlu1 %v1253_v2  ;;  %1740 = vmatprep.mubr.msk.f32.mxu0 %vm1899_vm4, %v1900_v42 }
 0x5e0   :  { %v1256_v36 = vsel %vm1116_vm3, %v1212_v30, 0.0  ;;  %v1213_v11 = vmul.f32 %v2648_v61, %v2648_v61 }
 0x5e1   :  { %1257 = vadd.xlane.f32.xlu0 %v1256_v36 }
 0x5e2   :  { %v1259_v41 = vsel %vm1116_vm3, %v1213_v11, 0.0 }
 0x5e3   :  { %1260 = vadd.xlane.f32.xlu1 %v1259_v41 }
 0x5f7   :  { %1390 = vperm.xlu0 %1780, %v1387_v45  }
 0x652   :  { %v1216_v46 = vpop.xlane.xlu0 %1215 }
 0x653   :  { %v1262_v14 = vmul.f32 0.25, %v1216_v46 }
 0x654   :  { %v1219_v18 = vpop.xlane.xlu1 %1218 }
 0x655   :  { %v1278_v51 = vadd.f32 1e-05, %v1262_v14  ;;  %v1263_v8 = vmul.f32 0.25, %v1219_v18 }
 0x656   :  { %v1222_v28 = vpop.xlane.xlu0 %1221 }
 0x657   :  { %1862 = vrsqrt.f32 %v1278_v51  ;;  %v1279_v26 = vadd.f32 1e-05, %v1263_v8  ;;  %v1264_v38 = vmul.f32 0.25, %v1222_v28 }
 0x658   :  { %v1225_v44 = vpop.xlane.xlu1 %1224 }
 0x659   :  { %1864 = vrsqrt.f32 %v1279_v26  ;;  %v1280_v49 = vadd.f32 1e-05, %v1264_v38  ;;  %v1265_v63 = vmul.f32 0.25, %v1225_v44 }
 0x65a   :  { %v1228_v0 = vpop.xlane.xlu0 %1227 }
 0x65b   :  { %1866 = vrsqrt.f32 %v1280_v49  ;;  %v1281_v25 = vadd.f32 1e-05, %v1265_v63  ;;  %v1266_v53 = vmul.f32 0.25, %v1228_v0 }
 0x65c   :  { %v1231_v60 = vpop.xlane.xlu1 %1230 }
 0x65d   :  { %1868 = vrsqrt.f32 %v1281_v25  ;;  %v1282_v20 = vadd.f32 1e-05, %v1266_v53  ;;  %v1267_v43 = vmul.f32 0.25, %v1231_v60 }
 0x65e   :  { %v1234_v12 = vpop.xlane.xlu0 %1233 }
 0x65f   :  { %v1283_v10 = vadd.f32 1e-05, %v1267_v43  ;;  %1870 = vrsqrt.f32 %v1282_v20  ;;  %v1268_v1 = vmul.f32 0.25, %v1234_v12 }
 0x660   :  { %v1237_v6 = vpop.xlane.xlu1 %1236 }
 0x661   :  { %v1863_v39 = vpop.eup %1862  ;;  %1872 = vrsqrt.f32 %v1283_v10  ;;  %v1269_v17 = vmul.f32 0.25, %v1237_v6  ;;  %v1284_v5 = vadd.f32 1e-05, %v1268_v1 }
 0x662   :  { %v1310_v56 = vmul.f32 %v1863_v39, %v2562_v35  ;;  %v1240_v62 = vpop.xlane.xlu0 %1239 }
 0x663   :  { %v1865_v19 = vpop.eup %1864  ;;  %v1285_v34 = vadd.f32 1e-05, %v1269_v17  ;;  %v1270_v36 = vmul.f32 0.25, %v1240_v62 }
 0x664   :  { %v1332_v59 = vmul.f32 %v2664_v15, %v1310_v56  ;;  %v1311_v23 = vmul.f32 %v1865_v19, %v2565_v32  ;;  %v1243_v3 = vpop.xlane.xlu1 %1242 }
 0x665   :  { %v1867_v54 = vpop.eup %1866  ;;  %1874 = vrsqrt.f32 %v1285_v34  ;;  %v1271_v37 = vmul.f32 0.25, %v1243_v3  ;;  %v1286_v51 = vadd.f32 1e-05, %v1270_v36 }
 0x666   :  { %v1333_v27 = vmul.f32 %v2664_v15, %v1311_v23  ;;  %v1312_v47 = vmul.f32 %v1867_v54, %v2570_v16  ;;  %v1354_v35 = vadd.f32 %v2670_v22, %v1332_v59  ;;  %1876 = vrsqrt.f32 %v1284_v5  ;;  %v1246_v28 = vpop.xlane.xlu0 %1245 }
 0x667   :  { %v1869_v29 = vpop.eup %1868  ;;  %v1287_v21 = vadd.f32 1e-05, %v1271_v37  ;;  %v1272_v63 = vmul.f32 0.25, %v1246_v28 }
 0x668   :  { %v1313_v2 = vmul.f32 %v1869_v29, %v2576_v33  ;;  %v1355_v30 = vadd.f32 %v2670_v22, %v1333_v27  ;;  %v1334_v11 = vmul.f32 %v2664_v15, %v1312_v47  ;;  %v1370_v42 = vmax.f32 %v1354_v35, 0.0  ;;  %v1249_v46 = vpop.xlane.xlu1 %1248 }
 0x669   :  { %v1871_v32 = vpop.eup %1870  ;;  %1878 = vrsqrt.f32 %v1287_v21  ;;  %v1273_v38 = vmul.f32 0.25, %v1249_v46  ;;  %v1288_v10 = vadd.f32 1e-05, %v1272_v63 }
 0x66a   :  { %v1335_v41 = vmul.f32 %v2664_v15, %v1313_v2  ;;  %v1371_v9 = vmax.f32 %v1355_v30, 0.0  ;;  %v1314_v8 = vmul.f32 %v1871_v32, %v2582_v50  ;;  %v1356_v26 = vadd.f32 %v2670_v22, %v1334_v11  ;;  %v1252_v39 = vpop.xlane.xlu0 %1251 }
 0x66b   :  { %v1873_v16 = vpop.eup %1872  ;;  %1880 = vrsqrt.f32 %v1286_v51  ;;  %v1289_v53 = vadd.f32 1e-05, %v1273_v38  ;;  %v1274_v34 = vmul.f32 0.25, %v1252_v39 }
 0x66c   :  { %v1315_v33 = vmul.f32 %v1873_v16, %v2588_v13  ;;  %v1744_v14 = vpack.c.bf16 %v1371_v9, %v1370_v42  ;;  %v1357_v18 = vadd.f32 %v2670_v22, %v1335_v41  ;;  %v1336_v0 = vmul.f32 %v2664_v15, %v1314_v8  ;;  %v1255_v20 = vpop.xlane.xlu1 %1254 }
 0x66d   :  { %v1372_v25 = vmax.f32 %v1356_v26, 0.0  ;;  %1882 = vrsqrt.f32 %v1289_v53  ;;  %v1275_v17 = vmul.f32 0.25, %v1255_v20  ;;  %v1290_v62 = vadd.f32 1e-05, %v1274_v34 }
 0x66e   :  { %1746 = vmatpush3.bf16.xpose.msk.msra.mxu0 %vm2683_vm5, %v1744_v14  ;;  %v1337_v44 = vmul.f32 %v2664_v15, %v1315_v33  ;;  %v1373_v13 = vmax.f32 %v1357_v18, 0.0  ;;  %v1358_v1 = vadd.f32 %v2670_v22, %v1336_v0  ;;  %1884 = vrsqrt.f32 %v1288_v10  ;;  %v1258_v29 = vpop.xlane.xlu0 %1257 }
 0x66f   :  { %1747 = vmatprep.subr.bf16.mxu0 %v1898_v40  ;;  %v1875_v49 = vpop.eup %1874  ;;  %v1291_v3 = vadd.f32 1e-05, %v1275_v17  ;;  %v1276_v32 = vmul.f32 0.25, %v1258_v29  ;;  %v1393_v34 = vlaneseq }
 0x670   :  { %v1877_v50 = vpop.eup %1876  ;;  %v1317_v60 = vmul.f32 %v1875_v49, %v2600_v58  ;;  %v1748_v43 = vpack.c.bf16 %v1373_v13, %v1372_v25  ;;  %v1359_v12 = vadd.f32 %v2670_v22, %v1337_v44  ;;  %v1374_v23 = vmax.f32 %v1358_v1, 0.0  ;;  %v1261_v5 = vpop.xlane.xlu1 %1260 }
 0x671   :  { %v1316_v6 = vmul.f32 %v1877_v50, %v2594_v24  ;;  %1886 = vrsqrt.f32 %v1291_v3  ;;  %v1277_v2 = vmul.f32 0.25, %v1261_v5  ;;  %v1292_v33 = vadd.f32 1e-05, %v1276_v32 }
 0x672   :  { %v1339_v56 = vmul.f32 %v2664_v15, %v1317_v60  ;;  %v1375_v58 = vmax.f32 %v1359_v12, 0.0  ;;  %1888 = vrsqrt.f32 %v1290_v62 }
 0x673   :  { %v1879_v19 = vpop.eup %1878  ;;  %v1338_v59 = vmul.f32 %v2664_v15, %v1316_v6  ;;  %v1293_v42 = vadd.f32 1e-05, %v1277_v2 }
 0x674   :  { %v1319_v54 = vmul.f32 %v1879_v19, %v2612_v4  ;;  %v1752_v27 = vpack.c.bf16 %v1375_v58, %v1374_v23  ;;  %v1361_v47 = vadd.f32 %v2670_v22, %v1339_v56 }
 0x675   :  { %v1881_v24 = vpop.eup %1880  ;;  %v1360_v37 = vadd.f32 %v2670_v22, %v1338_v59  ;;  %1890 = vrsqrt.f32 %v1293_v42  ;;  %v1394_v59 = vshrl.u32 %v1393_v34, 7 }
 0x676   :  { %1750 = vmatpush3.bf16.xpose.msk.msra.mxu0 %vm2683_vm5, %v1748_v43  ;;  %v1318_v35 = vmul.f32 %v1881_v24, %v2606_v52  ;;  %v1341_v30 = vmul.f32 %v2664_v15, %v1319_v54  ;;  %v1377_v4 = vmax.f32 %v1361_v47, 0.0  ;;  %1892 = vrsqrt.f32 %v1292_v33  ;;  %v1391_v24 = vpop.permute.xlu0 %1390 }
 0x677   :  { %1751 = vmatprep.subr.bf16.mxu0 %v1898_v40  ;;  %v1883_v36 = vpop.eup %1882  ;;  %v1376_v41 = vmax.f32 %v1360_v37, 0.0  ;;  %v1395_v23 = vsub.s32 0, %v1394_v59 }
 0x678   :  { %v1340_v11 = vmul.f32 %v2664_v15, %v1318_v35  ;;  %v1885_v52 = vpop.eup %1884  ;;  %v1321_v9 = vmul.f32 %v1883_v36, %v2624_v31  ;;  %v1363_v21 = vadd.f32 %v2670_v22, %v1341_v30 }
 0x679   :  { %v1756_v16 = vpack.c.bf16 %v1377_v4, %v1376_v41  ;;  %v1320_v46 = vmul.f32 %v1885_v52, %v2618_v48  ;;  %v1396_v3 = vrot.slane %v1391_v24, %v1395_v23 }
 0x67a   :  { %v1362_v14 = vadd.f32 %v2670_v22, %v1340_v11  ;;  %v1343_v18 = vmul.f32 %v2664_v15, %v1321_v9  ;;  %v1379_v51 = vmax.f32 %v1363_v21, 0.0 }
 0x67b   :  { %v1887_v8 = vpop.eup %1886  ;;  %v1342_v31 = vmul.f32 %v2664_v15, %v1320_v46 }
 0x67c   :  { %v1378_v28 = vmax.f32 %v1362_v14, 0.0  ;;  %v1889_v26 = vpop.eup %1888  ;;  %v1323_v38 = vmul.f32 %v1887_v8, %v2636_v57  ;;  %v1365_v44 = vadd.f32 %v2670_v22, %v1343_v18 }
 0x67d   :  { %v1322_v13 = vmul.f32 %v1889_v26, %v2630_v55  ;;  %v1364_v49 = vadd.f32 %v2670_v22, %v1342_v31 }
 0x67e   :  { %1754 = vmatpush3.bf16.xpose.msk.msra.mxu0 %vm2683_vm5, %v1752_v27  ;;  %v1760_v48 = vpack.c.bf16 %v1379_v51, %v1378_v28  ;;  %v1345_v63 = vmul.f32 %v2664_v15, %v1323_v38  ;;  %v1381_v0 = vmax.f32 %v1365_v44, 0.0 }
 0x67f   :  { %1755 = vmatprep.subr.bf16.mxu0 %v1898_v40  ;;  %v1891_v25 = vpop.eup %1890  ;;  %v1344_v50 = vmul.f32 %v2664_v15, %v1322_v13  ;;  %v1380_v53 = vmax.f32 %v1364_v49, 0.0 }
 0x680   :  { %v1893_v57 = vpop.eup %1892  ;;  %v1325_v60 = vmul.f32 %v1891_v25, %v2648_v61  ;;  %v1367_v55 = vadd.f32 %v2670_v22, %v1345_v63 }
 0x681   :  { %v1764_v20 = vpack.c.bf16 %v1381_v0, %v1380_v53  ;;  %v1324_v43 = vmul.f32 %v1893_v57, %v2642_v7  ;;  %v1366_v12 = vadd.f32 %v2670_v22, %v1344_v50 }
 0x682   :  { %v1347_v10 = vmul.f32 %v2664_v15, %v1325_v60  ;;  %v1383_v6 = vmax.f32 %v1367_v55, 0.0 }
 0x683   :  { %v1346_v39 = vmul.f32 %v2664_v15, %v1324_v43  ;;  %v1382_v1 = vmax.f32 %v1366_v12, 0.0  ;;  %v1386_v15 = vld [vmem:[%s2769_s13] sm:$0x1] }
 0x684   :  { %v1369_v61 = vadd.f32 %v2670_v22, %v1347_v10 }
 0x685   :  { %v1768_v17 = vpack.c.bf16 %v1383_v6, %v1382_v1  ;;  %v1368_v7 = vadd.f32 %v2670_v22, %v1346_v39 }
 0x686   :  { %1758 = vmatpush3.bf16.xpose.msk.msra.mxu0 %vm2683_vm5, %v1756_v16  ;;  %v1385_v56 = vmax.f32 %v1369_v61, 0.0 }
 0x687   :  { %1759 = vmatprep.subr.bf16.mxu0 %v1898_v40  ;;  %v1384_v58 = vmax.f32 %v1368_v7, 0.0 }
 0x689   :  { %v1772_v19 = vpack.c.bf16 %v1385_v56, %v1384_v58 }
 0x68e   :  { %1762 = vmatpush3.bf16.xpose.msk.msra.mxu0 %vm2683_vm5, %v1760_v48 }
 0x68f   :  { %1763 = vmatprep.subr.bf16.mxu0 %v1898_v40 }
 0x696   :  { %1766 = vmatpush3.bf16.xpose.msk.msra.mxu0 %vm2683_vm5, %v1764_v20 }
 0x697   :  { %1767 = vmatprep.subr.bf16.mxu0 %v1898_v40 }
 0x69e   :  { %1770 = vmatpush3.bf16.xpose.msk.msra.mxu0 %vm2683_vm5, %v1768_v17 }
 0x69f   :  { %1771 = vmatprep.subr.bf16.mxu0 %v1898_v40 }
 0x6a6   :  { %1774 = vmatpush3.bf16.xpose.msk.msra.mxu0 %vm2683_vm5, %v1772_v19 }
 0x6ad   :  { %1741 = vmatmul.mubr.msk.f32.vlgmr.msra.gmra.mrb[16].mxu0 %vm1116_vm3, %v1386_v15 }
 0x780   :  { %v1514_v22 = vpop.f32.mrb[16].mxu0 }
 0x781   :  { %v1515_v54 = vadd.f32 %v1514_v22, %v1396_v3  ;;  %v1742_v40 = vpop.f32.mrb[17].mxu0 }
 0x783   :  { %v1588_v5 = vmul.f32 -1.442695, %v1515_v54 }
 0x785   :  { %1894 = vpow2.f32 %v1588_v5 }
 0x78f   :  { %v1895_v27 = vpop.eup %1894 }
 0x790   :  { %v1521_v47 = vadd.f32 1.0, %v1895_v27 }
 0x792   :  { %1896 = vrcp.f32 %v1521_v47 }
 0x79c   :  { %v1897_v45 = vpop.eup %1896 }
 0x79d   :  { %1524 = vst [vmem:[%s2770_s15] sm:$0x1] %v1897_v45 }

// kernel: tile.11
= control target key start
LH: loop header
LB: loop body
LE: loop exit
PB: predicated region body
PF: predicated region fallthrough
CT: control target
= control target key end

     0   :  { %vm42_vm0 = vcmask 1047556   ;;  %vm44_vm1 = vcmask 64512   ;;  %s93_s22 = smov 8   ;;  %s94_s25 = smov 16   ;;  %vm54_vm2 = vcmask 261312   ;;  %vm64_vm3 = vcmask 195712   ;;  %s146_s0 = inlined_call_operand.vmem [shape: f32[8,4,8], index: 0, kind: input, shape index: {}]   ;;  %s147_s1 = inlined_call_operand.vmem [shape: f32[8,32], index: 1, kind: output, shape index: {}]  }
   0x1   :  { %v82_v0 = vld [vmem:[%s146_s0 + $0x1c] sm:$0xf]  ;;  %v83_v1 = vld [vmem:[%s146_s0 + $0x18] sm:$0xf]  ;;  %v84_v2 = vld [vmem:[%s146_s0 + $0x14] sm:$0xf] }
   0x2   :  { %8 = vst [vmem:[#allocation0 + $0x38] sm:$0xf] %v82_v0  ;;  %13 = vst [vmem:[#allocation0 + $0x30] sm:$0xf] %v83_v1  ;;  %v85_v3 = vld [vmem:[%s146_s0 + $0x10] sm:$0xf] }
   0x3   :  { %18 = vst [vmem:[#allocation0 + $0x28] sm:$0xf] %v84_v2  ;;  %v86_v4 = vld [vmem:[%s146_s0 + $0xc] sm:$0xf]  ;;  %v87_v5 = vld [vmem:[%s146_s0 + $0x8] sm:$0xf] }
   0x4   :  { %23 = vst [vmem:[#allocation0 + $0x20] sm:$0xf] %v85_v3  ;;  %28 = vst [vmem:[#allocation0 + $0x18] sm:$0xf] %v86_v4  ;;  %v88_v6 = vld [vmem:[%s146_s0 + $0x4] sm:$0xf] }
   0x5   :  { %33 = vst [vmem:[#allocation0 + $0x10] sm:$0xf] %v87_v5  ;;  %v38_v7 = vld [vmem:[%s146_s0] sm:$0xf]  ;;  %37 = vst [vmem:[#allocation0 + $0x8] sm:$0xf] %v88_v6 }
   0x6   :  { %39 = vst [vmem:[#allocation0] sm:$0xf] %v38_v7  ;;  %s92_s0 = smov 24   ;;  %vm74_vm4 = vcmask 130112  }
   0xb   :  { %v49_v8 = vld [vmem:[#allocation0 + $0x3] ss:$8 sm:$0xf0]   ;;  %v59_v9 = vld [vmem:[#allocation0 + $0x2] ss:$8 sm:$0xf0]  }
   0xc   :  { %v69_v14 = vld [vmem:[#allocation0 + $0x1] ss:$8 sm:$0xf0]   ;;  %v41_v17 = vld [vmem:[#allocation0] ss:$8 sm:$0xf0]  }
   0xd   :  { %v47_v10 = vld [vmem:[#allocation0 + $0x3] ss:$8 sm:$0xf]   ;;  %v57_v11 = vld [vmem:[#allocation0 + $0x2] ss:$8 sm:$0xf]  }
   0xe   :  { %v51_v12 = vsel %vm42_vm0, %v49_v8, %v47_v10  ;;  %v67_v13 = vld [vmem:[#allocation0 + $0x1] ss:$8 sm:$0xf]   ;;  %v40_v16 = vld [vmem:[#allocation0] ss:$8 sm:$0xf]   ;;  %v61_v18 = vsel %vm42_vm0, %v59_v9, %v57_v11 }
   0xf   :  { %52 = vrot.lane.b32.xlu0 %v51_v12, %s92_s0  ;;  %v71_v15 = vsel %vm42_vm0, %v69_v14, %v67_v13  ;;  %v43_v19 = vsel %vm42_vm0, %v41_v17, %v40_v16 }
  0x10   :  { %72 = vrot.lane.b32.xlu1 %v71_v15, %s93_s22  ;;  %45 = vst.msk [vmem:[%s147_s1] sm:$0xff] %vm44_vm1, %v43_v19  }
  0x13   :  { %62 = vrot.lane.b32.xlu0 %v61_v18, %s94_s25 }
  0x81   :  { %v53_v20 = vpop.permute.xlu0 %52  }
  0x82   :  { %55 = vst.msk [vmem:[%s147_s1] sm:$0xff] %vm54_vm2, %v53_v20   ;;  %v73_v21 = vpop.permute.xlu1 %72  }
  0x85   :  { %v63_v22 = vpop.permute.xlu0 %62  }
  0x86   :  { %65 = vst.msk [vmem:[%s147_s1] sm:$0xff] %vm64_vm3, %v63_v22  }
  0x87   :  { %75 = vst.msk [vmem:[%s147_s1] sm:$0xff] %vm74_vm4, %v73_v21  }

// kernel: remed_forward.7
= control target key start
LH: loop header
LB: loop body
LE: loop exit
PB: predicated region body
PF: predicated region fallthrough
CT: control target
= control target key end

     0   :  { %s288_s0 = inlined_call_operand.vmem [shape: f32[16,32], index: 0, kind: input, shape index: {}]   ;;  %s289_s1 = inlined_call_operand.vmem [shape: f32[1,32], index: 1, kind: input, shape index: {}]   ;;  %s290_s2 = inlined_call_operand.<no memory space> [shape: f32[1,1], index: 2, kind: input, shape index: {}]   ;;  %s291_s3 = inlined_call_operand.hbm [shape: f32[1,1,2], index: 3, kind: output, shape index: {}]  }
   0x1   :  { %v8_v0 = vstv %s290_s2 }
   0x2   :  { %9 = vst [vmem:[#allocation2] sm:$0x1] %v8_v0 }
   0x3   :  { %v17_v1 = vld [vmem:[%s288_s0] sm:$0xff]  ;;  %vm25_vm0 = vcmask 261120   ;;  %v18_v2 = vld [vmem:[%s288_s0 + $0x8] sm:$0xff] }
   0x4   :  { %10 = vsyncpa [#allocation4], 0  ;;  %vm19_vm1 = vcmp.ne.f32.partialorder %v17_v1, 0.0  ;;  %vm20_vm2 = vcmp.ne.f32.partialorder %v18_v2, 0.0  ;;  %v234_v3 = vmov 0.0   ;;  %vm235_vm3 = vmmov 0  }
   0x5   :  { %191 = vmatprep.subr.mxu0 %v234_v3  ;;  %v182_v4 = vsel %vm19_vm1, 1.0, %v234_v3  ;;  %v183_v5 = vsel %vm20_vm2, 1.0, %v234_v3  ;;  %193 = vmatprep.mubr.msk.f32.mxu0 %vm235_vm3, %v234_v3  ;;  %v236_v9 = vmov 0   ;;  %vm83_vm6 = vcmask 1041409   ;;  %v70_v47 = vld [vmem:[%s289_s1] sm:$0x1] }
   0x6   :  { %v26_v6 = vsel %vm25_vm0, %v182_v4, 0.0  ;;  %v29_v7 = vsel %vm25_vm0, %v183_v5, 0.0  ;;  %200 = vset.pattern.permute.xlu1 %v236_v9  ;;  %201 = vset.pattern.permute.xlu0 %v236_v9  ;;  %v77_v48 = vlaneseq  ;;  %s237_s18 = smov [#allocation3]   ;;  %vm166_vm7 = vcmask 8192  }
   0x7   :  { %27 = vadd.xlane.f32.xlu0 %v26_v6  ;;  %s174_s19 = sshll.u32 %s237_s18, 4  ;;  %s175_s19 = int_to_ptr.vmem [resolvable:$true] %s174_s19 }
   0x8   :  { %v78_v49 = vshrl.u32 %v77_v48, 7  ;;  %s210_s1 = scalar_lea.vmem %s175_s19, 16  ;;  %s214_s20 = scalar_lea.vmem %s175_s19, 32 }
   0x9   :  { %v71_v8 = vld [vmem:[#allocation2] sm:$0x1]  ;;  %p211_p0 = scmp.ne.s32.totalorder %s175_s19, %s210_s1  ;;  %p215_p1 = scmp.lt.s32.totalorder %s175_s19, %s175_s19 }
   0xa   :  { %74 = vperm.xlu1 %200, %v71_v8   ;;  %v79_v50 = vsub.s32 0, %v78_v49  ;;  %p216_p2 = scmp.lt.s32.totalorder %s214_s20, %s210_s1 }
   0xb   :  { %30 = vadd.xlane.f32.xlu0 %v29_v7 }
   0xc   :  { %p217_p3 = por %p216_p2, %p215_p1 }
   0xe   :  { %p218_p4 = pnand %p217_p3, %p211_p0 }
  0x89   :  { %v75_v51 = vpop.permute.xlu1 %74 }
  0x8a   :  { %v80_v52 = vrot.slane %v75_v51, %v79_v50 }
  0x94   :  { %v28_v10 = vpop.xlane.xlu0 %27 }
  0x95   :  { %vm32_vm4 = vcmp.gt.f32.partialorder %v28_v10, 0.0 }
  0x96   :  { %v184_v11 = vsel %vm32_vm4, 1.0, %v234_v3 }
  0x97   :  { %v38_v12 = vmul.f32 %v184_v11, %v17_v1  ;;  %v54_v13 = vrot.slane %v184_v11, 4 }
  0x98   :  { %v31_v14 = vpop.xlane.xlu0 %30 }
  0x99   :  { %v40_v15 = vsel %vm25_vm0, %v38_v12, 0.0  ;;  %v55_v16 = vadd.f32 %v184_v11, %v54_v13  ;;  %vm33_vm5 = vcmp.gt.f32.partialorder %v31_v14, 0.0 }
  0x9a   :  { %v185_v17 = vsel %vm33_vm5, 1.0, %v234_v3  ;;  %v41_v21 = vrot.slane %v40_v15, 4 }
  0x9b   :  { %v56_v18 = vrot.slane %v55_v16, 2  ;;  %v39_v19 = vmul.f32 %v185_v17, %v18_v2  ;;  %v60_v20 = vrot.slane %v185_v17, 4 }
  0x9c   :  { %v42_v28 = vadd.f32 %v41_v21, %v40_v15 }
  0x9d   :  { %v57_v22 = vadd.f32 %v56_v18, %v55_v16  ;;  %v47_v23 = vsel %vm25_vm0, %v39_v19, 0.0  ;;  %v61_v24 = vadd.f32 %v185_v17, %v60_v20 }
  0x9e   :  { %v48_v25 = vrot.slane %v47_v23, 4  ;;  %v43_v33 = vrot.slane %v42_v28, 2 }
  0x9f   :  { %v58_v26 = vrot.slane %v57_v22, 1  ;;  %v62_v27 = vrot.slane %v61_v24, 2 }
  0xa0   :  { %v49_v29 = vadd.f32 %v48_v25, %v47_v23  ;;  %v44_v36 = vadd.f32 %v43_v33, %v42_v28 }
  0xa1   :  { %v59_v30 = vadd.f32 %v58_v26, %v57_v22  ;;  %v63_v31 = vadd.f32 %v62_v27, %v61_v24 }
  0xa2   :  { %v50_v34 = vrot.slane %v49_v29, 2  ;;  %v45_v39 = vrot.slane %v44_v36, 1 }
  0xa3   :  { %v64_v32 = vrot.slane %v63_v31, 1  ;;  %202 = vrcp.f32 %v59_v30 }
  0xa4   :  { %v51_v37 = vadd.f32 %v50_v34, %v49_v29  ;;  %v46_v41 = vadd.f32 %v45_v39, %v44_v36 }
  0xa5   :  { %v65_v35 = vadd.f32 %v64_v32, %v63_v31 }
  0xa6   :  { %v52_v38 = vrot.slane %v51_v37, 1 }
  0xa7   :  { %204 = vrcp.f32 %v65_v35 }
  0xa8   :  { %v53_v42 = vadd.f32 %v52_v38, %v51_v37 }
  0xad   :  { %v203_v40 = vpop.eup %202 }
  0xae   :  { %v67_v44 = vmul.f32 %v203_v40, %v46_v41 }
  0xb1   :  { %v205_v43 = vpop.eup %204 }
  0xb2   :  { %v69_v45 = vmul.f32 %v205_v43, %v53_v42 }
  0xb4   :  { %v84_v46 = vsel %vm83_vm6, %v69_v45, %v67_v44 }
  0xb5   :  { %192 = vmatpush3.xpose.msk.msra.mxu0 %vm25_vm0, %v84_v46 }
  0xb8   :  { %194 = vmatmul.mubr.msk.f32.vlgmr.msra.gmra.mrb[0].mxu0 %vm25_vm0, %v70_v47 }
 0x18b   :  { %v156_v53 = vpop.f32.mrb[0].mxu0 }
 0x18c   :  { %v157_v54 = vadd.f32 %v156_v53, %v80_v52  ;;  %v195_v55 = vpop.f32.mrb[1].mxu0 }
 0x18e   :  { %v188_v56 = vmul.f32 -1.442695, %v157_v54 }
 0x190   :  { %206 = vpow2.f32 %v188_v56 }
 0x19a   :  { %v207_v57 = vpop.eup %206 }
 0x19b   :  { %v163_v58 = vadd.f32 1.0, %v207_v57 }
 0x19d   :  { %208 = vrcp.f32 %v163_v58 }
 0x1a7   :  { %v209_v59 = vpop.eup %208 }
 0x1a8   :  { %167 = vst.msk [vmem:[#allocation3] sm:$0x1] %vm166_vm7, %v209_v59 }
 0x1a9   :  { %221 = shalt.err (!%p218_p4)
}
 0x1aa   :  { %s222_s23 = scalar_lea.hbm %s291_s3, 16 }
 0x1ab   :  { %p223_p5 = scmp.ne.s32.totalorder %s291_s3, %s222_s23  ;;  %p226_p6 = scmp.lt.u32.totalorder %s222_s23, %s291_s3 }
 0x1ad   :  { %p228_p7 = pnand %p226_p6, %p223_p5 }
 0x1af   :  { %231 = shalt.err (!%p228_p7)
}
 0x1b0   :  { %177 = dma.vmem_to_hbm [thread:$0]  %s175_s19, 16, %s291_s3, [#allocation4]  }
 0x1b1   :  { %232 = dma.done.wait [#allocation4], 16  }
 0x1b2   :  { %233 = vsyncadd [#allocation4], 4294967280 }
 0x1b3   :  { %181 = vsyncpa [#allocation4], 1 }

// kernel: remed_forward.5
= control target key start
LH: loop header
LB: loop body
LE: loop exit
PB: predicated region body
PF: predicated region fallthrough
CT: control target
= control target key end

     0   :  { %vm96_vm0 = vcmask 261120   ;;  %v2199_v0 = vmov 0.0   ;;  %vm2200_vm1 = vmmov 0   ;;  %v2205_v24 = vmov 0   ;;  %s2729_s4 = inlined_call_operand.vmem [shape: bf16[32,32], index: 4, kind: input, shape index: {}]   ;;  %s2730_s0 = inlined_call_operand.vmem [shape: f32[16,32], index: 0, kind: input, shape index: {}]   ;;  %s2731_s6 = inlined_call_operand.vmem [shape: bf16[32,32], index: 6, kind: input, shape index: {}]   ;;  %s2732_s5 = inlined_call_operand.vmem [shape: f32[1,32], index: 5, kind: input, shape index: {}]   ;;  %s2733_s8 = inlined_call_operand.vmem [shape: bf16[32,32], index: 8, kind: input, shape index: {}]   ;;  %s2734_s7 = inlined_call_operand.vmem [shape: f32[1,32], index: 7, kind: input, shape index: {}]   ;;  %s2735_s1 = inlined_call_operand.vmem [shape: f32[16,1], index: 1, kind: input, shape index: {}]   ;;  %s2736_s3 = inlined_call_operand.vmem [shape: f32[8,32], index: 3, kind: input, shape index: {}]   ;;  %s2737_s2 = inlined_call_operand.vmem [shape: f32[8,32], index: 2, kind: input, shape index: {}]   ;;  %s2738_s9 = inlined_call_operand.vmem [shape: f32[1,32], index: 9, kind: input, shape index: {}]   ;;  %s2739_s10 = inlined_call_operand.vmem [shape: bf16[32,32], index: 10, kind: input, shape index: {}]   ;;  %s2740_s11 = inlined_call_operand.vmem [shape: f32[1,32], index: 11, kind: input, shape index: {}]   ;;  %s2741_s14 = inlined_call_operand.vmem [shape: bf16[32,128], index: 14, kind: input, shape index: {}]   ;;  %s2742_s12 = inlined_call_operand.vmem [shape: f32[1,32], index: 12, kind: input, shape index: {}]   ;;  %s2743_s13 = inlined_call_operand.vmem [shape: f32[1,32], index: 13, kind: input, shape index: {}]   ;;  %s2744_s16 = inlined_call_operand.vmem [shape: bf16[128,32], index: 16, kind: input, shape index: {}]   ;;  %s2745_s15 = inlined_call_operand.vmem [shape: f32[1,128], index: 15, kind: input, shape index: {}]   ;;  %s2746_s17 = inlined_call_operand.vmem [shape: f32[1,32], index: 17, kind: input, shape index: {}]   ;;  %s2747_s18 = inlined_call_operand.vmem [shape: f32[1,32], index: 18, kind: input, shape index: {}]   ;;  %s2748_s19 = inlined_call_operand.vmem [shape: f32[1,32], index: 19, kind: input, shape index: {}]   ;;  %s2749_s20 = inlined_call_operand.vmem [shape: f32[16,32], index: 20, kind: output, shape index: {}]  }
   0x1   :  { %2754 = sst [smem:[#allocation4_spill]] %s2729_s4  ;;  %1949 = vmatprep.subr.bf16.mxu1 %v2199_v0  ;;  %1953 = vmatprep.mubr.msk.bf16.mxu1 %vm2200_vm1, %v2199_v0  ;;  %1532 = vst.msk [vmem:[#allocation3] sm:$0xff] %vm96_vm0, %v2199_v0  ;;  %1533 = vst.msk [vmem:[#allocation3 + $0x8] sm:$0xff] %vm96_vm0, %v2199_v0  ;;  %v1842_v17 = vld [vmem:[%s2734_s7] ss:$0 sm:$0xff]  ;;  %s2203_s7 = smov 97   ;;  %v305_v29 = vlaneseq }
   0x2   :  { %2755 = sst [smem:[#allocation5_spill]] %s2730_s0  ;;  %s2759_s23 = sld [smem:[#allocation4_spill]]  ;;  %1979 = vmatprep.subr.bf16.mxu0 %v2199_v0  ;;  %1981 = vmatprep.mubr.msk.bf16.mxu0 %vm2200_vm1, %v2199_v0  ;;  %v364_v25 = vld [vmem:[%s2735_s1] sm:$0xff]  ;;  %v365_v26 = vld [vmem:[%s2735_s1 + $0x8] sm:$0xff]  ;;  %vm302_vm2 = vcmask 7168   ;;  %vm287_vm4 = vcmask 252928  }
   0x3   :  { %2756 = sst [smem:[#allocation6_spill]] %s2731_s6  ;;  %s2760_s26 = sld [smem:[#allocation5_spill]]  ;;  %2132 = vset.pattern.permute.xlu0 %v2205_v24  ;;  %2133 = vset.pattern.permute.xlu1 %v2205_v24  ;;  %v306_v32 = vand.u32 127, %v305_v29  ;;  %v270_v39 = vld [vmem:[%s2736_s3] sm:$0xff]  ;;  %vm372_vm5 = vcmask 64512   ;;  %vm506_vm6 = vcmask 1043456  }
   0x4   :  { %2757 = sst [smem:[#allocation7_spill]] %s2732_s5  ;;  %s2761_s30 = sld [smem:[#allocation6_spill]]  ;;  %v269_v43 = vld [vmem:[%s2737_s2] sm:$0xff] }
   0x5   :  { %2758 = sst [smem:[#allocation8_spill]] %s2733_s8  ;;  %s2201_s5 = smov 127   ;;  %v311_v35 = vand.u32 1, %v306_v32 }
   0x6   :  { %s2763_s25 = sld [smem:[#allocation8_spill]]  ;;  %s2204_s4 = smov 1  }
   0x7   :  { %vm2391_vm3 = vcmp.eq.s32.totalorder %v311_v35, 0 }
   0x8   :  { %v2134_v1 = vld [vmem:[%s2759_s23] sm:$0xff]   ;;  %v2135_v2 = vld [vmem:[%s2759_s23 + $0x8] sm:$0xff]   ;;  %s2762_s23 = sld [smem:[#allocation7_spill]] }
   0x9   :  { %1950 = vmatpush3.bf16.msra.mxu1 %v2134_v1  ;;  %v2334_v3 = vld [vmem:[%s2760_s26] sm:$0xff]  ;;  %v71_v4 = vld [vmem:[%s2760_s26 + $0x8] sm:$0xff] }
   0xa   :  { %1951 = vmatprep.subr.bf16.mxu1 %v2199_v0  ;;  %v72_v5 = vpack.c.bf16 %v71_v4, %v2334_v3  ;;  %v2136_v6 = vld [vmem:[%s2761_s30] sm:$0xff]   ;;  %v2137_v7 = vld [vmem:[%s2761_s30 + $0x8] sm:$0xff]   ;;  %s2202_s30 = smov 31  }
   0xc   :  { %v2138_v10 = vld [vmem:[%s2763_s25] sm:$0xff]   ;;  %v2139_v16 = vld [vmem:[%s2763_s25 + $0x8] sm:$0xff]  }
   0xd   :  { %1952 = vmatpush3.bf16.msra.mxu1 %v2135_v2 }
   0xe   :  { %1957 = vmatprep.subr.bf16.mxu1 %v2199_v0  ;;  %v1838_v8 = vld [vmem:[%s2762_s23] ss:$0 sm:$0xff] }
  0x10   :  { %1954 = vmatmul.mubr.msk.bf16.vlgmr.msra.gmra.mrb[0].mxu1 %vm96_vm0, %v72_v5 }
  0x11   :  { %1958 = vmatpush3.bf16.msra.mxu1 %v2136_v6  ;;  %1961 = vmatprep.mubr.msk.bf16.mxu1 %vm2200_vm1, %v2199_v0 }
  0x12   :  { %1959 = vmatprep.subr.bf16.mxu1 %v2199_v0 }
  0x15   :  { %1960 = vmatpush3.bf16.msra.mxu1 %v2137_v7 }
  0x16   :  { %1965 = vmatprep.subr.bf16.mxu1 %v2199_v0 }
  0x18   :  { %1962 = vmatmul.mubr.msk.bf16.vlgmr.msra.gmra.mrb[4].mxu1 %vm96_vm0, %v72_v5 }
  0x19   :  { %1969 = vmatprep.mubr.msk.bf16.mxu1 %vm2200_vm1, %v2199_v0  ;;  %1966 = vmatpush3.bf16.msra.mxu1 %v2138_v10 }
  0x1a   :  { %1967 = vmatprep.subr.bf16.mxu1 %v2199_v0 }
  0x1d   :  { %1968 = vmatpush3.bf16.msra.mxu1 %v2139_v16 }
  0x1e   :  { %1973 = vmatprep.subr.bf16.mxu1 %v2199_v0 }
  0x20   :  { %1970 = vmatmul.mubr.msk.bf16.vlgmr.msra.gmra.mrb[8].mxu1 %vm96_vm0, %v72_v5 }
  0x21   :  { %1975 = vmatprep.mubr.msk.bf16.mxu1 %vm2200_vm1, %v2199_v0 }
  0xe3   :  { %v134_v9 = vpop.f32.mrb[0].mxu1 }
  0xe4   :  { %v2362_v11 = vadd.f32 %v1838_v8, %v134_v9  ;;  %v1955_v12 = vpop.f32.mrb[1].mxu1 }
  0xe5   :  { %v137_v13 = vpop.f32.mrb[2].mxu1 }
  0xe6   :  { %v2364_v14 = vadd.f32 %v1838_v8, %v137_v13  ;;  %275 = vrot.lane.b32.xlu0 %v2362_v11, %s2201_s5  ;;  %v1956_v15 = vpop.f32.mrb[3].mxu1  ;;  %v271_v2 = vmul.f32 %v269_v43, %v2362_v11 }
  0xe8   :  { %277 = vrot.lane.b32.xlu1 %v2364_v14, %s2201_s5  ;;  %v272_v13 = vmul.f32 %v269_v43, %v2364_v14 }
  0xea   :  { %281 = vrot.lane.b32.xlu0 %v2362_v11, %s2202_s30 }
  0xeb   :  { %v198_v18 = vpop.f32.mrb[4].mxu1 }
  0xec   :  { %v199_v19 = vadd.f32 %v1842_v17, %v198_v18  ;;  %283 = vrot.lane.b32.xlu1 %v2364_v14, %s2202_s30  ;;  %v1963_v20 = vpop.f32.mrb[5].mxu1 }
  0xed   :  { %v201_v21 = vpop.f32.mrb[6].mxu1 }
  0xee   :  { %330 = vrot.lane.b32.xlu0 %v199_v19, %s2201_s5  ;;  %v1964_v22 = vpop.f32.mrb[7].mxu1  ;;  %v202_v23 = vadd.f32 %v1842_v17, %v201_v21  ;;  %v326_v46 = vmul.f32 %v269_v43, %v199_v19  ;;  %v1846_v21 = vld [vmem:[%s2738_s9] ss:$0 sm:$0xff]  ;;  %s2206_s9 = smov 120  }
  0xf0   :  { %336 = vrot.lane.b32.xlu1 %v199_v19, %s2202_s30  ;;  %v327_v56 = vmul.f32 %v269_v43, %v202_v23 }
  0xf2   :  { %344 = vrot.lane.b32.xlu0 %v199_v19, %s2203_s7 }
  0xf4   :  { %338 = vrot.lane.b32.xlu1 %v202_v23, %s2202_s30  ;;  %s2208_s30 = smov 104  }
  0xf6   :  { %350 = vrot.lane.b32.xlu0 %v199_v19, %s2204_s4 }
  0xf8   :  { %346 = vrot.lane.b32.xlu1 %v202_v23, %s2203_s7 }
  0xfa   :  { %332 = vrot.lane.b32.xlu0 %v202_v23, %s2201_s5  ;;  %s2207_s5 = smov 112  }
  0xfc   :  { %352 = vrot.lane.b32.xlu1 %v202_v23, %s2204_s4 }
  0xfe   :  { %290 = vrot.lane.b32.xlu0 %v2362_v11, %s2203_s7 }
 0x100   :  { %292 = vrot.lane.b32.xlu1 %v2364_v14, %s2203_s7 }
 0x102   :  { %296 = vrot.lane.b32.xlu0 %v2362_v11, %s2204_s4 }
 0x104   :  { %298 = vrot.lane.b32.xlu1 %v2364_v14, %s2204_s4  ;;  %v262_v14 = vpop.f32.mrb[8].mxu1 }
 0x105   :  { %v1971_v18 = vpop.f32.mrb[9].mxu1  ;;  %v263_v22 = vadd.f32 %v1846_v21, %v262_v14 }
 0x106   :  { %469 = vperm.xlu0 %2132, %v364_v25   ;;  %v265_v19 = vpop.f32.mrb[10].mxu1 }
 0x107   :  { %v1972_v20 = vpop.f32.mrb[11].mxu1  ;;  %v266_v23 = vadd.f32 %v1846_v21, %v265_v19  ;;  %v2444_v24 = vpack.c.bf16 %v263_v22, %v263_v22 }
 0x108   :  { %474 = vperm.xlu1 %2133, %v365_v26  }
 0x109   :  { %v2446_v25 = vpack.c.bf16 %v266_v23, %v266_v23  ;;  %v508_v26 = vsel %vm506_vm6, %v2444_v24, 0 }
 0x158   :  { %v276_v27 = vpop.permute.xlu0 %275 }
 0x15a   :  { %v278_v28 = vpop.permute.xlu1 %277 }
 0x15c   :  { %v282_v30 = vpop.permute.xlu0 %281 }
 0x15d   :  { %v288_v62 = vsel %vm287_vm4, %v276_v27, %v282_v30  ;;  %v554_v27 = vsel %vm506_vm6, %v2446_v25, 0 }
 0x15e   :  { %v284_v31 = vpop.permute.xlu1 %283 }
 0x15f   :  { %v289_v6 = vsel %vm287_vm4, %v278_v28, %v284_v31 }
 0x160   :  { %v331_v33 = vpop.permute.xlu0 %330 }
 0x162   :  { %v337_v34 = vpop.permute.xlu1 %336 }
 0x163   :  { %v342_v41 = vsel %vm287_vm4, %v331_v33, %v337_v34 }
 0x164   :  { %v345_v36 = vpop.permute.xlu0 %344 }
 0x166   :  { %v339_v37 = vpop.permute.xlu1 %338 }
 0x168   :  { %v351_v40 = vpop.permute.xlu0 %350 }
 0x169   :  { %v356_v42 = vsel %vm302_vm2, %v345_v36, %v351_v40 }
 0x16a   :  { %v358_v44 = vsel %vm2391_vm3, %v342_v41, %v356_v42  ;;  %v347_v45 = vpop.permute.xlu1 %346 }
 0x16b   :  { %v360_v47 = vmul.f32 %v358_v44, %v270_v39 }
 0x16c   :  { %v333_v48 = vpop.permute.xlu0 %332 }
 0x16d   :  { %v362_v49 = vadd.f32 %v360_v47, %v326_v46  ;;  %v343_v52 = vsel %vm287_vm4, %v333_v48, %v339_v37 }
 0x16e   :  { %v353_v50 = vpop.permute.xlu1 %352 }
 0x16f   :  { %v2405_v51 = vpack.c.bf16 %v362_v49, %v362_v49  ;;  %v357_v53 = vsel %vm302_vm2, %v347_v45, %v353_v50 }
 0x170   :  { %v359_v54 = vsel %vm2391_vm3, %v343_v52, %v357_v53  ;;  %v291_v55 = vpop.permute.xlu0 %290 }
 0x171   :  { %v361_v57 = vmul.f32 %v359_v54, %v270_v39  ;;  %v377_v58 = vsel %vm372_vm5, %v2405_v51, 0 }
 0x172   :  { %1974 = vmatpush3.bf16.xpose.msra.mxu1 %v377_v58  ;;  %v293_v59 = vpop.permute.xlu1 %292 }
 0x173   :  { %v363_v60 = vadd.f32 %v361_v57, %v327_v56  ;;  %1985 = vmatprep.subr.bf16.mxu1 %v2199_v0 }
 0x174   :  { %v297_v61 = vpop.permute.xlu0 %296 }
 0x175   :  { %v2415_v63 = vpack.c.bf16 %v363_v60, %v363_v60  ;;  %v303_v1 = vsel %vm302_vm2, %v291_v55, %v297_v61 }
 0x176   :  { %v320_v4 = vsel %vm2391_vm3, %v288_v62, %v303_v1  ;;  %v299_v5 = vpop.permute.xlu1 %298 }
 0x177   :  { %v322_v7 = vmul.f32 %v320_v4, %v270_v39  ;;  %v304_v8 = vsel %vm302_vm2, %v293_v59, %v299_v5  ;;  %v423_v9 = vsel %vm372_vm5, %v2415_v63, 0 }
 0x178   :  { %v321_v10 = vsel %vm2391_vm3, %v289_v6, %v304_v8  ;;  %1980 = vmatpush3.bf16.xpose.msra.mxu0 %v423_v9 }
 0x179   :  { %v324_v12 = vadd.f32 %v322_v7, %v271_v2  ;;  %v323_v11 = vmul.f32 %v321_v10, %v270_v39  ;;  %1991 = vmatprep.subr.bf16.mxu0 %v2199_v0 }
 0x17b   :  { %v2429_v15 = vpack.c.bf16 %v324_v12, %v324_v12  ;;  %v325_v16 = vadd.f32 %v323_v11, %v272_v13 }
 0x17d   :  { %1976 = vmatmul.mubr.msk.bf16.vlgmr.msra.gmra.mrb[12].mxu1 %vm372_vm5, %v2429_v15  ;;  %v2433_v17 = vpack.c.bf16 %v325_v16, %v325_v16 }
 0x17e   :  { %1987 = vmatprep.mubr.msk.bf16.mxu1 %vm2200_vm1, %v2199_v0  ;;  %1986 = vmatpush3.bf16.msra.mxu1 %v508_v26 }
 0x17f   :  { %1982 = vmatmul.mubr.msk.bf16.vlgmr.msra.gmra.mrb[0].mxu0 %vm372_vm5, %v2433_v17  ;;  %1997 = vmatprep.subr.bf16.mxu1 %v2199_v0 }
 0x180   :  { %1993 = vmatprep.mubr.msk.bf16.mxu0 %vm2200_vm1, %v2199_v0  ;;  %1992 = vmatpush3.bf16.msra.mxu0 %v554_v27 }
 0x181   :  { %2003 = vmatprep.subr.bf16.mxu0 %v2199_v0 }
 0x185   :  { %v2454_v29 = vpop.permute.xlu0 %469 }
 0x187   :  { %v2456_v32 = vpop.permute.xlu1 %474 }
 0x250   :  { %v413_v28 = vpop.f32.mrb[12].mxu1 }
 0x251   :  { %v465_v30 = vmul.f32 0.35355338, %v413_v28  ;;  %v1977_v31 = vpop.f32.mrb[13].mxu1 }
 0x252   :  { %v416_v33 = vpop.f32.mrb[14].mxu1  ;;  %v459_v34 = vpop.f32.mrb[0].mxu0 }
 0x253   :  { %v466_v35 = vmul.f32 0.35355338, %v459_v34  ;;  %v1978_v36 = vpop.f32.mrb[15].mxu1  ;;  %v1983_v37 = vpop.f32.mrb[1].mxu0  ;;  %v477_v38 = vadd.f32 %v2454_v29, %v465_v30 }
 0x254   :  { %v462_v39 = vpop.f32.mrb[2].mxu0 }
 0x255   :  { %v1984_v40 = vpop.f32.mrb[3].mxu0  ;;  %v479_v41 = vsel %vm372_vm5, %v477_v38, -inf  ;;  %v478_v42 = vadd.f32 %v2456_v32, %v466_v35 }
 0x256   :  { %480 = vmax.xlane.f32.xlu1 %v479_v41 }
 0x257   :  { %v482_v43 = vsel %vm372_vm5, %v478_v42, -inf }
 0x258   :  { %483 = vmax.xlane.f32.xlu0 %v482_v43 }
 0x2e3   :  { %v481_v44 = vpop.xlane.xlu1 %480 }
 0x2e4   :  { %v485_v45 = vsub.f32 %v477_v38, %v481_v44 }
 0x2e5   :  { %v484_v46 = vpop.xlane.xlu0 %483 }
 0x2e6   :  { %v487_v47 = vmul.f32 1.442695, %v485_v45  ;;  %v486_v48 = vsub.f32 %v478_v42, %v484_v46 }
 0x2e8   :  { %2150 = vpow2.f32 %v487_v47  ;;  %v489_v49 = vmul.f32 1.442695, %v486_v48 }
 0x2ea   :  { %2152 = vpow2.f32 %v489_v49 }
 0x2f2   :  { %v2151_v50 = vpop.eup %2150 }
 0x2f3   :  { %v491_v52 = vsel %vm372_vm5, %v2151_v50, 0.0 }
 0x2f4   :  { %v2153_v53 = vpop.eup %2152  ;;  %492 = vadd.xlane.f32.xlu0 %v491_v52 }
 0x2f5   :  { %v494_v54 = vsel %vm372_vm5, %v2153_v53, 0.0 }
 0x2f6   :  { %495 = vadd.xlane.f32.xlu1 %v494_v54 }
 0x307   :  { %654 = vrot.lane.b32.xlu1 %v2415_v63, %s2206_s9 }
 0x30a   :  { %602 = vrot.lane.b32.xlu0 %v2405_v51, %s2206_s9 }
 0x30b   :  { %599 = vrot.lane.b32.xlu1 %v2429_v15, %s2206_s9 }
 0x30e   :  { %651 = vrot.lane.b32.xlu0 %v2433_v17, %s2206_s9 }
 0x381   :  { %v493_v55 = vpop.xlane.xlu0 %492 }
 0x382   :  { %2154 = vrcp.f32 %v493_v55  ;;  %v829_v55 = vld [vmem:[%s2739_s10 + $0x4] sm:$0xf] }
 0x383   :  { %v496_v56 = vpop.xlane.xlu1 %495 }
 0x384   :  { %2156 = vrcp.f32 %v496_v56 }
 0x385   :  { %v603_v60 = vpop.permute.xlu0 %602 }
 0x386   :  { %v608_v2 = vsel %vm372_vm5, %v603_v60, 0 }
 0x387   :  { %v655_v1 = vpop.permute.xlu1 %654 }
 0x388   :  { %v660_v5 = vsel %vm372_vm5, %v655_v1, 0 }
 0x389   :  { %v652_v7 = vpop.permute.xlu0 %651 }
 0x38b   :  { %v600_v6 = vpop.permute.xlu1 %599 }
 0x38c   :  { %v2155_v57 = vpop.eup %2154 }
 0x38d   :  { %v499_v58 = vmul.f32 %v2155_v57, %v2151_v50 }
 0x38e   :  { %v2157_v59 = vpop.eup %2156 }
 0x38f   :  { %v500_v61 = vmul.f32 %v2157_v59, %v2153_v53  ;;  %v501_v62 = vpack.c.bf16 %v499_v58, %v499_v58  ;;  %v597_v58 = vld [vmem:[%s2739_s10] sm:$0xf] }
 0x390   :  { %v881_v1 = vsel %vm506_vm6, %v597_v58, 0 }
 0x391   :  { %1988 = vmatmul.mubr.msk.bf16.vlgmr.msra.gmra.mrb[16].mxu1 %vm372_vm5, %v501_v62  ;;  %v502_v4 = vpack.c.bf16 %v500_v61, %v500_v61  ;;  %v834_v61 = vsel %vm506_vm6, %v829_v55, 0 }
 0x392   :  { %1998 = vmatpush3.bf16.xpose.msra.mxu1 %v608_v2  ;;  %1999 = vmatprep.mubr.msk.bf16.mxu1 %vm2200_vm1, %v2199_v0 }
 0x393   :  { %1994 = vmatmul.mubr.msk.bf16.vlgmr.msra.gmra.mrb[4].mxu0 %vm372_vm5, %v502_v4  ;;  %2009 = vmatprep.subr.bf16.mxu1 %v2199_v0 }
 0x394   :  { %2004 = vmatpush3.bf16.xpose.msra.mxu0 %v660_v5  ;;  %2005 = vmatprep.mubr.msk.bf16.mxu0 %vm2200_vm1, %v2199_v0 }
 0x395   :  { %2015 = vmatprep.subr.bf16.mxu0 %v2199_v0 }
 0x399   :  { %2000 = vmatmul.mubr.msk.bf16.vlgmr.msra.gmra.mrb[20].mxu1 %vm372_vm5, %v600_v6 }
 0x39a   :  { %2011 = vmatprep.mubr.msk.bf16.mxu1 %vm2200_vm1, %v2199_v0 }
 0x39b   :  { %2006 = vmatmul.mubr.msk.bf16.vlgmr.msra.gmra.mrb[8].mxu0 %vm372_vm5, %v652_v7 }
 0x39c   :  { %2017 = vmatprep.mubr.msk.bf16.mxu0 %vm2200_vm1, %v2199_v0 }
 0x464   :  { %v2488_v8 = vpop.f32.mrb[16].mxu1 }
 0x465   :  { %v1989_v9 = vpop.f32.mrb[17].mxu1 }
 0x466   :  { %v547_v10 = vpop.f32.mrb[18].mxu1  ;;  %v2490_v12 = vpop.f32.mrb[4].mxu0 }
 0x467   :  { %v596_v13 = vpack.c.bf16 %v2490_v12, %v2488_v8  ;;  %v1990_v11 = vpop.f32.mrb[19].mxu1  ;;  %v1995_v16 = vpop.f32.mrb[5].mxu0 }
 0x468   :  { %v593_v14 = vpop.f32.mrb[6].mxu0 }
 0x469   :  { %v1996_v18 = vpop.f32.mrb[7].mxu0 }
 0x46c   :  { %v644_v19 = vpop.f32.mrb[20].mxu1 }
 0x46d   :  { %v702_v20 = vmul.f32 0.35355338, %v644_v19  ;;  %v2001_v21 = vpop.f32.mrb[21].mxu1 }
 0x46e   :  { %v647_v22 = vpop.f32.mrb[22].mxu1  ;;  %v696_v23 = vpop.f32.mrb[8].mxu0 }
 0x46f   :  { %v703_v26 = vmul.f32 0.35355338, %v696_v23  ;;  %v2002_v27 = vpop.f32.mrb[23].mxu1  ;;  %v2007_v28 = vpop.f32.mrb[9].mxu0  ;;  %v704_v30 = vadd.f32 %v702_v20, %v2454_v29 }
 0x470   :  { %v699_v31 = vpop.f32.mrb[10].mxu0 }
 0x471   :  { %v2008_v33 = vpop.f32.mrb[11].mxu0  ;;  %v706_v34 = vsel %vm372_vm5, %v704_v30, -inf  ;;  %v705_v35 = vadd.f32 %v703_v26, %v2456_v32 }
 0x472   :  { %707 = vmax.xlane.f32.xlu1 %v706_v34 }
 0x473   :  { %v709_v36 = vsel %vm372_vm5, %v705_v35, -inf }
 0x474   :  { %710 = vmax.xlane.f32.xlu0 %v709_v36 }
 0x4ff   :  { %v708_v37 = vpop.xlane.xlu1 %707 }
 0x500   :  { %v712_v38 = vsub.f32 %v704_v30, %v708_v37 }
 0x501   :  { %v711_v39 = vpop.xlane.xlu0 %710 }
 0x502   :  { %v714_v40 = vmul.f32 1.442695, %v712_v38  ;;  %v713_v41 = vsub.f32 %v705_v35, %v711_v39 }
 0x504   :  { %2158 = vpow2.f32 %v714_v40  ;;  %v716_v42 = vmul.f32 1.442695, %v713_v41 }
 0x506   :  { %2160 = vpow2.f32 %v716_v42 }
 0x50e   :  { %v2159_v43 = vpop.eup %2158 }
 0x50f   :  { %v718_v44 = vsel %vm372_vm5, %v2159_v43, 0.0 }
 0x510   :  { %v2161_v45 = vpop.eup %2160  ;;  %719 = vadd.xlane.f32.xlu0 %v718_v44 }
 0x511   :  { %v721_v46 = vsel %vm372_vm5, %v2161_v45, 0.0 }
 0x512   :  { %722 = vadd.xlane.f32.xlu1 %v721_v46 }
 0x523   :  { %780 = vrot.lane.b32.xlu1 %v2446_v25, %s2206_s9 }
 0x526   :  { %731 = vrot.lane.b32.xlu0 %v2444_v24, %s2206_s9 }
 0x527   :  { %926 = vrot.lane.b32.xlu1 %v2405_v51, %s2207_s5 }
 0x52a   :  { %976 = vrot.lane.b32.xlu0 %v2415_v63, %s2207_s5 }
 0x52b   :  { %924 = vrot.lane.b32.xlu1 %v2429_v15, %s2207_s5 }
 0x52e   :  { %974 = vrot.lane.b32.xlu0 %v2433_v17, %s2207_s5 }
 0x59d   :  { %v720_v47 = vpop.xlane.xlu0 %719 }
 0x59e   :  { %2162 = vrcp.f32 %v720_v47 }
 0x59f   :  { %v723_v48 = vpop.xlane.xlu1 %722 }
 0x5a0   :  { %2164 = vrcp.f32 %v723_v48 }
 0x5a1   :  { %v732_v49 = vpop.permute.xlu0 %731 }
 0x5a2   :  { %v737_v50 = vsel %vm506_vm6, %v732_v49, 0 }
 0x5a3   :  { %2010 = vmatpush3.bf16.msra.mxu1 %v737_v50  ;;  %v781_v52 = vpop.permute.xlu1 %780 }
 0x5a4   :  { %v786_v53 = vsel %vm506_vm6, %v781_v52, 0  ;;  %2021 = vmatprep.subr.bf16.mxu1 %v2199_v0 }
 0x5a5   :  { %2016 = vmatpush3.bf16.msra.mxu0 %v786_v53  ;;  %v977_v2 = vpop.permute.xlu0 %976 }
 0x5a6   :  { %2027 = vmatprep.subr.bf16.mxu0 %v2199_v0  ;;  %v982_v4 = vsel %vm372_vm5, %v977_v2, 0 }
 0x5a7   :  { %v927_v7 = vpop.permute.xlu1 %926 }
 0x5a8   :  { %v2163_v54 = vpop.eup %2162  ;;  %v932_v14 = vsel %vm372_vm5, %v927_v7, 0 }
 0x5a9   :  { %v726_v56 = vmul.f32 %v2163_v54, %v2159_v43  ;;  %v975_v5 = vpop.permute.xlu0 %974 }
 0x5aa   :  { %v2165_v57 = vpop.eup %2164 }
 0x5ab   :  { %v727_v59 = vmul.f32 %v2165_v57, %v2161_v45  ;;  %v728_v60 = vpack.c.bf16 %v726_v56, %v726_v56  ;;  %v925_v21 = vpop.permute.xlu1 %924 }
 0x5ad   :  { %2012 = vmatmul.mubr.msk.bf16.vlgmr.msra.gmra.mrb[24].mxu1 %vm372_vm5, %v728_v60  ;;  %v729_v62 = vpack.c.bf16 %v727_v59, %v727_v59 }
 0x5ae   :  { %2022 = vmatpush3.bf16.msra.mxu1 %v834_v61  ;;  %2023 = vmatprep.mubr.msk.bf16.mxu1 %vm2200_vm1, %v2199_v0 }
 0x5af   :  { %2018 = vmatmul.mubr.msk.bf16.vlgmr.msra.gmra.mrb[12].mxu0 %vm372_vm5, %v729_v62  ;;  %2033 = vmatprep.subr.bf16.mxu1 %v2199_v0 }
 0x5b0   :  { %2028 = vmatpush3.bf16.msra.mxu0 %v881_v1  ;;  %2029 = vmatprep.mubr.msk.bf16.mxu0 %vm2200_vm1, %v2199_v0 }
 0x5b1   :  { %2039 = vmatprep.subr.bf16.mxu0 %v2199_v0 }
 0x5b7   :  { %2030 = vmatmul.mubr.msk.bf16.vlgmr.msra.gmra.mrb[16].mxu0 %vm372_vm5, %v596_v13 }
 0x5b8   :  { %2041 = vmatprep.mubr.msk.bf16.mxu0 %vm2200_vm1, %v2199_v0 }
 0x5b9   :  { %2040 = vmatpush3.bf16.xpose.msra.mxu0 %v982_v4 }
 0x5ba   :  { %2051 = vmatprep.subr.bf16.mxu0 %v2199_v0 }
 0x5c0   :  { %2042 = vmatmul.mubr.msk.bf16.vlgmr.msra.gmra.mrb[20].mxu0 %vm372_vm5, %v975_v5 }
 0x5c1   :  { %2053 = vmatprep.mubr.msk.bf16.mxu0 %vm2200_vm1, %v2199_v0 }
 0x680   :  { %v773_v6 = vpop.f32.mrb[24].mxu1 }
 0x681   :  { %v2013_v9 = vpop.f32.mrb[25].mxu1 }
 0x682   :  { %v776_v8 = vpop.f32.mrb[26].mxu1  ;;  %v822_v10 = vpop.f32.mrb[12].mxu0 }
 0x683   :  { %v828_v12 = vpack.c.bf16 %v822_v10, %v773_v6  ;;  %v2014_v13 = vpop.f32.mrb[27].mxu1  ;;  %v2019_v11 = vpop.f32.mrb[13].mxu0  ;;  %v1149_v8 = vld [vmem:[%s2739_s10 + $0x8] sm:$0xf] }
 0x684   :  { %v825_v16 = vpop.f32.mrb[14].mxu0 }
 0x685   :  { %v2020_v18 = vpop.f32.mrb[15].mxu0  ;;  %2024 = vmatmul.mubr.msk.bf16.vlgmr.msra.gmra.mrb[28].mxu1 %vm372_vm5, %v828_v12 }
 0x686   :  { %2034 = vmatpush3.bf16.xpose.msra.mxu1 %v932_v14  ;;  %2035 = vmatprep.mubr.msk.bf16.mxu1 %vm2200_vm1, %v2199_v0 }
 0x687   :  { %2045 = vmatprep.subr.bf16.mxu1 %v2199_v0 }
 0x68a   :  { %v917_v19 = vpop.f32.mrb[16].mxu0 }
 0x68b   :  { %v2031_v20 = vpop.f32.mrb[17].mxu0 }
 0x68c   :  { %v920_v22 = vpop.f32.mrb[18].mxu0 }
 0x68d   :  { %v2032_v23 = vpop.f32.mrb[19].mxu0  ;;  %2036 = vmatmul.mubr.msk.bf16.vlgmr.msra.gmra.mrb[32].mxu1 %vm372_vm5, %v925_v21 }
 0x68e   :  { %2047 = vmatprep.mubr.msk.bf16.mxu1 %vm2200_vm1, %v2199_v0 }
 0x693   :  { %v1018_v26 = vpop.f32.mrb[20].mxu0 }
 0x694   :  { %v1025_v27 = vmul.f32 0.35355338, %v1018_v26  ;;  %v2043_v28 = vpop.f32.mrb[21].mxu0 }
 0x695   :  { %v1021_v30 = vpop.f32.mrb[22].mxu0 }
 0x696   :  { %v2044_v31 = vpop.f32.mrb[23].mxu0  ;;  %v1027_v33 = vadd.f32 %v1025_v27, %v2456_v32 }
 0x698   :  { %v1031_v34 = vsel %vm372_vm5, %v1027_v33, -inf }
 0x699   :  { %1032 = vmax.xlane.f32.xlu0 %v1031_v34 }
 0x726   :  { %v1033_v35 = vpop.xlane.xlu0 %1032 }
 0x727   :  { %v1035_v36 = vsub.f32 %v1027_v33, %v1033_v35 }
 0x729   :  { %v1038_v37 = vmul.f32 1.442695, %v1035_v36 }
 0x72b   :  { %2166 = vpow2.f32 %v1038_v37 }
 0x735   :  { %v2167_v52 = vpop.eup %2166 }
 0x736   :  { %v1043_v53 = vsel %vm372_vm5, %v2167_v52, 0.0 }
 0x758   :  { %v870_v38 = vpop.f32.mrb[28].mxu1 }
 0x759   :  { %v2553_v39 = vadd.f32 %v917_v19, %v870_v38  ;;  %v2025_v40 = vpop.f32.mrb[29].mxu1 }
 0x75a   :  { %v873_v41 = vpop.f32.mrb[30].mxu1 }
 0x75b   :  { %v2555_v42 = vadd.f32 %v920_v22, %v873_v41  ;;  %v2026_v43 = vpop.f32.mrb[31].mxu1 }
 0x760   :  { %v968_v44 = vpop.f32.mrb[32].mxu1 }
 0x761   :  { %v1024_v45 = vmul.f32 0.35355338, %v968_v44  ;;  %v2037_v46 = vpop.f32.mrb[33].mxu1 }
 0x762   :  { %v971_v47 = vpop.f32.mrb[34].mxu1 }
 0x763   :  { %v2038_v48 = vpop.f32.mrb[35].mxu1  ;;  %v1026_v49 = vadd.f32 %v1024_v45, %v2454_v29 }
 0x765   :  { %v1028_v50 = vsel %vm372_vm5, %v1026_v49, -inf }
 0x766   :  { %1029 = vmax.xlane.f32.xlu1 %v1028_v50 }
 0x76a   :  { %1044 = vadd.xlane.f32.xlu1 %v1043_v53 }
 0x77b   :  { %1100 = vrot.lane.b32.xlu1 %v2446_v25, %s2207_s5 }
 0x77f   :  { %1201 = vrot.lane.b32.xlu1 %v2405_v51, %s2208_s30 }
 0x783   :  { %1199 = vrot.lane.b32.xlu1 %v2429_v15, %s2208_s30 }
 0x7f3   :  { %v1030_v54 = vpop.xlane.xlu1 %1029 }
 0x7f4   :  { %v1034_v55 = vsub.f32 %v1026_v49, %v1030_v54 }
 0x7f6   :  { %v1036_v56 = vmul.f32 1.442695, %v1034_v55 }
 0x7f7   :  { %v1045_v57 = vpop.xlane.xlu1 %1044 }
 0x7f8   :  { %2168 = vpow2.f32 %v1036_v56 }
 0x7f9   :  { %2170 = vrcp.f32 %v1045_v57 }
 0x7fb   :  { %v1101_v58 = vpop.permute.xlu1 %1100 }
 0x7fc   :  { %v1106_v59 = vsel %vm506_vm6, %v1101_v58, 0 }
 0x7fd   :  { %2052 = vmatpush3.bf16.msra.mxu0 %v1106_v59 }
 0x7fe   :  { %2063 = vmatprep.subr.bf16.mxu0 %v2199_v0 }
 0x7ff   :  { %v1202_v1 = vpop.permute.xlu1 %1201 }
 0x800   :  { %v1207_v2 = vsel %vm372_vm5, %v1202_v1, 0 }
 0x802   :  { %v2169_v60 = vpop.eup %2168 }
 0x803   :  { %v2171_v61 = vpop.eup %2170  ;;  %v1040_v62 = vsel %vm372_vm5, %v2169_v60, 0.0  ;;  %v1200_v4 = vpop.permute.xlu1 %1199 }
 0x804   :  { %v1049_v51 = vmul.f32 %v2171_v61, %v2167_v52  ;;  %1041 = vadd.xlane.f32.xlu0 %v1040_v62 }
 0x806   :  { %v1051_v15 = vpack.c.bf16 %v1049_v51, %v1049_v51 }
 0x808   :  { %2054 = vmatmul.mubr.msk.bf16.vlgmr.msra.gmra.mrb[24].mxu0 %vm372_vm5, %v1051_v15 }
 0x809   :  { %2064 = vmatpush3.bf16.xpose.msra.mxu0 %v1207_v2  ;;  %2065 = vmatprep.mubr.msk.bf16.mxu0 %vm2200_vm1, %v2199_v0 }
 0x80a   :  { %2075 = vmatprep.subr.bf16.mxu0 %v2199_v0 }
 0x810   :  { %2066 = vmatmul.mubr.msk.bf16.vlgmr.msra.gmra.mrb[28].mxu0 %vm372_vm5, %v1200_v4 }
 0x811   :  { %2077 = vmatprep.mubr.msk.bf16.mxu0 %vm2200_vm1, %v2199_v0 }
 0x81a   :  { %1052 = vrot.lane.b32.xlu0 %v2444_v24, %s2207_s5 }
 0x81e   :  { %1251 = vrot.lane.b32.xlu0 %v2415_v63, %s2208_s30  ;;  %v1154_v63 = vsel %vm506_vm6, %v1149_v8, 0 }
 0x822   :  { %1249 = vrot.lane.b32.xlu0 %v2433_v17, %s2208_s30 }
 0x891   :  { %v1042_v5 = vpop.xlane.xlu0 %1041 }
 0x892   :  { %2172 = vrcp.f32 %v1042_v5 }
 0x895   :  { %v1053_v6 = vpop.permute.xlu0 %1052 }
 0x896   :  { %v1058_v7 = vsel %vm506_vm6, %v1053_v6, 0 }
 0x897   :  { %2046 = vmatpush3.bf16.msra.mxu1 %v1058_v7 }
 0x898   :  { %2057 = vmatprep.subr.bf16.mxu1 %v2199_v0 }
 0x899   :  { %v1252_v26 = vpop.permute.xlu0 %1251 }
 0x89a   :  { %v1257_v33 = vsel %vm372_vm5, %v1252_v26, 0 }
 0x89c   :  { %v2173_v9 = vpop.eup %2172 }
 0x89d   :  { %v1048_v10 = vmul.f32 %v2173_v9, %v2169_v60 }
 0x89f   :  { %v1050_v12 = vpack.c.bf16 %v1048_v10, %v1048_v10 }
 0x8a1   :  { %2048 = vmatmul.mubr.msk.bf16.vlgmr.msra.gmra.mrb[36].mxu1 %vm372_vm5, %v1050_v12 }
 0x8a2   :  { %2058 = vmatpush3.bf16.msra.mxu1 %v1154_v63  ;;  %2059 = vmatprep.mubr.msk.bf16.mxu1 %vm2200_vm1, %v2199_v0 }
 0x8a3   :  { %2069 = vmatprep.subr.bf16.mxu1 %v2199_v0 }
 0x8db   :  { %v1142_v17 = vpop.f32.mrb[24].mxu0 }
 0x8dc   :  { %v2055_v13 = vpop.f32.mrb[25].mxu0 }
 0x8dd   :  { %v1145_v11 = vpop.f32.mrb[26].mxu0 }
 0x8de   :  { %v2056_v16 = vpop.f32.mrb[27].mxu0 }
 0x8e3   :  { %v1243_v14 = vpop.f32.mrb[28].mxu0 }
 0x8e4   :  { %v1299_v18 = vmul.f32 0.35355338, %v1243_v14  ;;  %v2067_v19 = vpop.f32.mrb[29].mxu0  ;;  %v1870_v14 = vld [vmem:[%s2740_s11] ss:$0 sm:$0xff] }
 0x8e5   :  { %v1246_v20 = vpop.f32.mrb[30].mxu0 }
 0x8e6   :  { %v2068_v21 = vpop.f32.mrb[31].mxu0  ;;  %v1301_v22 = vadd.f32 %v1299_v18, %v2454_v29  ;;  %v1250_v29 = vpop.permute.xlu0 %1249 }
 0x8e8   :  { %v1303_v23 = vsel %vm372_vm5, %v1301_v22, -inf }
 0x8e9   :  { %1304 = vmax.xlane.f32.xlu1 %v1303_v23 }
 0x974   :  { %v1094_v27 = vpop.f32.mrb[36].mxu1 }
 0x975   :  { %v1148_v28 = vpack.c.bf16 %v1142_v17, %v1094_v27  ;;  %v2049_v30 = vpop.f32.mrb[37].mxu1 }
 0x976   :  { %v1097_v31 = vpop.f32.mrb[38].mxu1  ;;  %v1305_v35 = vpop.xlane.xlu1 %1304  ;;  %v2198_v30 = vld [vmem:[%s2760_s26 + $0x8] sm:$0xff] }
 0x977   :  { %v2050_v34 = vpop.f32.mrb[39].mxu1  ;;  %2060 = vmatmul.mubr.msk.bf16.vlgmr.msra.gmra.mrb[40].mxu1 %vm372_vm5, %v1148_v28  ;;  %v1309_v36 = vsub.f32 %v1301_v22, %v1305_v35 }
 0x978   :  { %2070 = vmatpush3.bf16.xpose.msra.mxu1 %v1257_v33  ;;  %2071 = vmatprep.mubr.msk.bf16.mxu1 %vm2200_vm1, %v2199_v0 }
 0x979   :  { %2081 = vmatprep.subr.bf16.mxu1 %v2199_v0  ;;  %v1311_v37 = vmul.f32 1.442695, %v1309_v36 }
 0x97b   :  { %2174 = vpow2.f32 %v1311_v37 }
 0x97f   :  { %2072 = vmatmul.mubr.msk.bf16.vlgmr.msra.gmra.mrb[44].mxu1 %vm372_vm5, %v1250_v29 }
 0x980   :  { %2083 = vmatprep.mubr.msk.bf16.mxu1 %vm2200_vm1, %v2199_v0 }
 0x985   :  { %v2175_v54 = vpop.eup %2174 }
 0xa4a   :  { %v1190_v38 = vpop.f32.mrb[40].mxu1 }
 0xa4b   :  { %v2604_v40 = vadd.f32 %v1190_v38, %v2553_v39  ;;  %v2061_v41 = vpop.f32.mrb[41].mxu1  ;;  %v1315_v39 = vsel %vm372_vm5, %v2175_v54, 0.0 }
 0xa4c   :  { %v1193_v43 = vpop.f32.mrb[42].mxu1 }
 0xa4d   :  { %v2607_v44 = vadd.f32 %v1193_v43, %v2555_v42  ;;  %v2062_v45 = vpop.f32.mrb[43].mxu1 }
 0xa4e   :  { %v2141_v45 = vld [vmem:[%s2741_s14 + $0x8] sm:$0xff]  }
 0xa52   :  { %v1293_v46 = vpop.f32.mrb[44].mxu1 }
 0xa53   :  { %v1300_v47 = vmul.f32 0.35355338, %v1293_v46  ;;  %v2073_v48 = vpop.f32.mrb[45].mxu1 }
 0xa54   :  { %v1296_v49 = vpop.f32.mrb[46].mxu1 }
 0xa55   :  { %v2074_v50 = vpop.f32.mrb[47].mxu1  ;;  %v1302_v52 = vadd.f32 %v1300_v47, %v2456_v32 }
 0xa57   :  { %v1306_v53 = vsel %vm372_vm5, %v1302_v52, -inf }
 0xa58   :  { %1307 = vmax.xlane.f32.xlu0 %v1306_v53 }
 0xa5c   :  { %1316 = vadd.xlane.f32.xlu0 %v1315_v39 }
 0xa72   :  { %1327 = vrot.lane.b32.xlu0 %v2444_v24, %s2208_s30  ;;  %v1424_v24 = vld [vmem:[%s2739_s10 + $0xc] sm:$0xf] }
 0xa73   :  { %v1429_v1 = vsel %vm506_vm6, %v1424_v24, 0  ;;  %v2143_v24 = vld [vmem:[%s2744_s16 + $0x8] sm:$0xff]  }
 0xae5   :  { %v1308_v42 = vpop.xlane.xlu0 %1307 }
 0xae6   :  { %v1310_v55 = vsub.f32 %v1302_v52, %v1308_v42 }
 0xae8   :  { %v1313_v56 = vmul.f32 1.442695, %v1310_v55  ;;  %v1872_v55 = vld [vmem:[%s2743_s13] ss:$0 sm:$0xff] }
 0xae9   :  { %v1317_v57 = vpop.xlane.xlu0 %1316 }
 0xaea   :  { %2176 = vpow2.f32 %v1313_v56 }
 0xaeb   :  { %2178 = vrcp.f32 %v1317_v57 }
 0xaed   :  { %v1328_v58 = vpop.permute.xlu0 %1327 }
 0xaee   :  { %v1333_v59 = vsel %vm506_vm6, %v1328_v58, 0 }
 0xaef   :  { %2076 = vmatpush3.bf16.msra.mxu0 %v1333_v59 }
 0xaf0   :  { %2087 = vmatprep.subr.bf16.mxu0 %v2199_v0 }
 0xaf4   :  { %v2177_v32 = vpop.eup %2176 }
 0xaf5   :  { %v2179_v60 = vpop.eup %2178  ;;  %v1318_v61 = vsel %vm372_vm5, %v2177_v32, 0.0 }
 0xaf6   :  { %v1323_v62 = vmul.f32 %v2179_v60, %v2175_v54  ;;  %1319 = vadd.xlane.f32.xlu1 %v1318_v61  ;;  %v1871_v54 = vld [vmem:[%s2742_s12] ss:$0 sm:$0xff] }
 0xaf8   :  { %v1325_v51 = vpack.c.bf16 %v1323_v62, %v1323_v62 }
 0xafa   :  { %2078 = vmatmul.mubr.msk.bf16.vlgmr.msra.gmra.mrb[32].mxu0 %vm372_vm5, %v1325_v51  ;;  %v2142_v51 = vld [vmem:[%s2744_s16] sm:$0xff]  }
 0xafb   :  { %2089 = vmatprep.mubr.msk.bf16.mxu0 %vm2200_vm1, %v2199_v0  ;;  %2088 = vmatpush3.bf16.msra.mxu0 %v1429_v1  ;;  %v2144_v1 = vld [vmem:[%s2744_s16 + $0x10] sm:$0xff]  }
 0xafc   :  { %2101 = vmatprep.subr.bf16.mxu0 %v2199_v0 }
 0xb07   :  { %1375 = vrot.lane.b32.xlu1 %v2446_v25, %s2208_s30 }
 0xb83   :  { %v1320_v15 = vpop.xlane.xlu1 %1319 }
 0xb84   :  { %2180 = vrcp.f32 %v1320_v15  ;;  %v2145_v15 = vld [vmem:[%s2744_s16 + $0x18] sm:$0xff]  }
 0xb87   :  { %v1376_v2 = vpop.permute.xlu1 %1375 }
 0xb88   :  { %v1381_v4 = vsel %vm506_vm6, %v1376_v2, 0  ;;  %v2146_v2 = vld [vmem:[%s2744_s16 + $0x20] sm:$0xff]  }
 0xb89   :  { %2082 = vmatpush3.bf16.msra.mxu1 %v1381_v4  ;;  %v2147_v4 = vld [vmem:[%s2744_s16 + $0x28] sm:$0xff]  }
 0xb8a   :  { %2093 = vmatprep.subr.bf16.mxu1 %v2199_v0 }
 0xb8e   :  { %v2181_v5 = vpop.eup %2180 }
 0xb8f   :  { %v1324_v6 = vmul.f32 %v2181_v5, %v2177_v32  ;;  %v2148_v5 = vld [vmem:[%s2744_s16 + $0x30] sm:$0xff]  }
 0xb91   :  { %v1326_v25 = vpack.c.bf16 %v1324_v6, %v1324_v6  ;;  %v2149_v6 = vld [vmem:[%s2744_s16 + $0x38] sm:$0xff]  }
 0xb93   :  { %2084 = vmatmul.mubr.msk.bf16.vlgmr.msra.gmra.mrb[48].mxu1 %vm372_vm5, %v1326_v25  ;;  %v1873_v25 = vld [vmem:[%s2745_s15] ss:$0 sm:$0xff] }
 0xb94   :  { %2097 = vmatprep.mubr.msk.bf16.mxu1 %vm2200_vm1, %v2199_v0 }
 0xbcd   :  { %v1369_v7 = vpop.f32.mrb[32].mxu0 }
 0xbce   :  { %v2079_v9 = vpop.f32.mrb[33].mxu0 }
 0xbcf   :  { %v1372_v8 = vpop.f32.mrb[34].mxu0 }
 0xbd0   :  { %v2080_v10 = vpop.f32.mrb[35].mxu0 }
 0xc66   :  { %v1417_v12 = vpop.f32.mrb[48].mxu1 }
 0xc67   :  { %v1423_v63 = vpack.c.bf16 %v1417_v12, %v1369_v7  ;;  %v2085_v17 = vpop.f32.mrb[49].mxu1 }
 0xc68   :  { %v1420_v13 = vpop.f32.mrb[50].mxu1 }
 0xc69   :  { %v2086_v11 = vpop.f32.mrb[51].mxu1  ;;  %2090 = vmatmul.mubr.msk.bf16.vlgmr.msra.gmra.mrb[36].mxu0 %vm372_vm5, %v1423_v63 }
 0xc6a   :  { %2117 = vmatprep.mubr.msk.bf16.mxu0 %vm2200_vm1, %v2199_v0  ;;  %2102 = vmatpush3.bf16.msra.mxu0 %v2142_v51 }
 0xc6b   :  { %2103 = vmatprep.subr.bf16.mxu0 %v2199_v0 }
 0xc6e   :  { %2104 = vmatpush3.bf16.msra.mxu0 %v2143_v24 }
 0xc6f   :  { %2105 = vmatprep.subr.bf16.mxu0 %v2199_v0 }
 0xc72   :  { %2106 = vmatpush3.bf16.msra.mxu0 %v2144_v1 }
 0xc73   :  { %2107 = vmatprep.subr.bf16.mxu0 %v2199_v0 }
 0xc76   :  { %2108 = vmatpush3.bf16.msra.mxu0 %v2145_v15 }
 0xc77   :  { %2109 = vmatprep.subr.bf16.mxu0 %v2199_v0 }
 0xc7a   :  { %2110 = vmatpush3.bf16.msra.mxu0 %v2146_v2 }
 0xc7b   :  { %2111 = vmatprep.subr.bf16.mxu0 %v2199_v0 }
 0xc7e   :  { %2112 = vmatpush3.bf16.msra.mxu0 %v2147_v4  ;;  %v1657_v4 = vld [vmem:[#allocation3] sm:$0xff] }
 0xc7f   :  { %2113 = vmatprep.subr.bf16.mxu0 %v2199_v0 }
 0xc82   :  { %2114 = vmatpush3.bf16.msra.mxu0 %v2148_v5 }
 0xc83   :  { %2115 = vmatprep.subr.bf16.mxu0 %v2199_v0 }
 0xc86   :  { %2116 = vmatpush3.bf16.msra.mxu0 %v2149_v6  ;;  %v1658_v6 = vld [vmem:[#allocation3 + $0x8] sm:$0xff] }
 0xd3c   :  { %v1465_v16 = vpop.f32.mrb[36].mxu0 }
 0xd3d   :  { %v1472_v18 = vadd.f32 %v1465_v16, %v2604_v40  ;;  %v2091_v19 = vpop.f32.mrb[37].mxu0 }
 0xd3e   :  { %v1468_v20 = vpop.f32.mrb[38].mxu0 }
 0xd3f   :  { %v1481_v21 = vadd.f32 %v1870_v14, %v1472_v18  ;;  %v1473_v22 = vadd.f32 %v1468_v20, %v2607_v44  ;;  %v2092_v23 = vpop.f32.mrb[39].mxu0  ;;  %v2140_v44 = vld [vmem:[%s2741_s14] sm:$0xff]  }
 0xd40   :  { %2094 = vmatpush3.bf16.msra.mxu1 %v2140_v44 }
 0xd41   :  { %v1482_v26 = vadd.f32 %v1870_v14, %v1473_v22  ;;  %v1483_v27 = vadd.f32 %v1481_v21, %v2334_v3  ;;  %2095 = vmatprep.subr.bf16.mxu1 %v2199_v0 }
 0xd43   :  { %v1487_v28 = vsel %vm96_vm0, %v1483_v27, 0.0  ;;  %v1484_v31 = vadd.f32 %v2198_v30, %v1482_v26 }
 0xd44   :  { %1488 = vadd.xlane.f32.xlu1 %v1487_v28  ;;  %2096 = vmatpush3.bf16.msra.mxu1 %v2141_v45 }
 0xd45   :  { %v1490_v33 = vsel %vm96_vm0, %v1484_v31, 0.0 }
 0xd46   :  { %1491 = vadd.xlane.f32.xlu0 %v1490_v33 }
 0xdd1   :  { %v1489_v34 = vpop.xlane.xlu1 %1488 }
 0xdd2   :  { %v1494_v29 = vmul.f32 0.03125, %v1489_v34 }
 0xdd3   :  { %v1492_v35 = vpop.xlane.xlu0 %1491 }
 0xdd4   :  { %v1496_v36 = vsub.f32 %v1483_v27, %v1494_v29  ;;  %v1495_v37 = vmul.f32 0.03125, %v1492_v35 }
 0xdd6   :  { %v1497_v38 = vsub.f32 %v1484_v31, %v1495_v37  ;;  %v1498_v40 = vmul.f32 %v1496_v36, %v1496_v36 }
 0xdd8   :  { %v1500_v3 = vsel %vm96_vm0, %v1498_v40, 0.0  ;;  %v1499_v41 = vmul.f32 %v1497_v38, %v1497_v38 }
 0xdd9   :  { %1501 = vadd.xlane.f32.xlu0 %v1500_v3 }
 0xdda   :  { %v1503_v43 = vsel %vm96_vm0, %v1499_v41, 0.0 }
 0xddb   :  { %1504 = vadd.xlane.f32.xlu1 %v1503_v43 }
 0xe66   :  { %v1502_v46 = vpop.xlane.xlu0 %1501 }
 0xe67   :  { %v1506_v47 = vmul.f32 0.03125, %v1502_v46 }
 0xe68   :  { %v1505_v48 = vpop.xlane.xlu1 %1504 }
 0xe69   :  { %v1508_v49 = vadd.f32 1e-12, %v1506_v47  ;;  %v1507_v50 = vmul.f32 0.03125, %v1505_v48 }
 0xe6b   :  { %2182 = vrsqrt.f32 %v1508_v49  ;;  %v1509_v52 = vadd.f32 1e-12, %v1507_v50 }
 0xe6d   :  { %2184 = vrsqrt.f32 %v1509_v52 }
 0xe75   :  { %v2183_v53 = vpop.eup %2182 }
 0xe76   :  { %v1512_v39 = vmul.f32 %v2183_v53, %v1496_v36 }
 0xe77   :  { %v2185_v42 = vpop.eup %2184 }
 0xe78   :  { %v1520_v56 = vmul.f32 %v1871_v54, %v1512_v39  ;;  %v1513_v57 = vmul.f32 %v2185_v42, %v1497_v38  ;;  %v2209_v39 = vmov -1.0  }
 0xe7a   :  { %v1528_v58 = vadd.f32 %v1872_v55, %v1520_v56  ;;  %v1521_v59 = vmul.f32 %v1871_v54, %v1513_v57 }
 0xe7c   :  { %1530 = vst.msk [vmem:[#allocation2] sm:$0xff] %vm96_vm0, %v1528_v58  ;;  %v1529_v32 = vadd.f32 %v1872_v55, %v1521_v59 }
 0xe7e   :  { %1531 = vst.msk [vmem:[#allocation2 + $0x8] sm:$0xff] %vm96_vm0, %v1529_v32 }
 0xe83   :  { %v2663_v60 = vld [vmem:[#allocation2] sm:$0xff] }
 0xe85   :  { %v2665_v61 = vld [vmem:[#allocation2 + $0x8] sm:$0xff] }
 0xe86   :  { %v1536_v62 = vpack.c.bf16 %v2665_v61, %v2663_v60 }
 0xe88   :  { %2098 = vmatmul.mubr.msk.bf16.vlgmr.msra.gmra.mrb[52].mxu1 %vm96_vm0, %v1536_v62 }
 0xf5b   :  { %v1598_v7 = vpop.f32.mrb[52].mxu1 }
 0xf5c   :  { %v1599_v9 = vadd.f32 %v1873_v25, %v1598_v7  ;;  %v2099_v8 = vpop.f32.mrb[53].mxu1 }
 0xf5d   :  { %v1601_v10 = vpop.f32.mrb[54].mxu1 }
 0xf5e   :  { %v1607_v12 = vmul.f32 0.70710677, %v1599_v9  ;;  %v1602_v63 = vadd.f32 %v1873_v25, %v1601_v10  ;;  %v2100_v17 = vpop.f32.mrb[55].mxu1  ;;  %v1605_v62 = vmul.f32 0.5, %v1599_v9  ;;  %v1885_v9 = vld [vmem:[%s2746_s17] ss:$0 sm:$0xff] }
 0xf60   :  { %v1613_v13 = vand.u32 2147483647, %v1607_v12  ;;  %v1608_v11 = vmul.f32 0.70710677, %v1602_v63  ;;  %vm1609_vm7 = vcmp.ge.f32.partialorder %v1607_v12, 0.0  ;;  %v1606_v51 = vmul.f32 0.5, %v1602_v63 }
 0xf61   :  { %v1611_v42 = vsel %vm1609_vm7, 1.0, %v2209_v39 }
 0xf62   :  { %v1615_v16 = vmul.f32 0.3275911, %v1613_v13  ;;  %v1614_v0 = vand.u32 2147483647, %v1608_v11  ;;  %v1639_v20 = vsub.f32 0.0, %v1613_v13  ;;  %vm1610_vm8 = vcmp.ge.f32.partialorder %v1608_v11, 0.0 }
 0xf63   :  { %v1612_v58 = vsel %vm1610_vm8, 1.0, %v2209_v39 }
 0xf64   :  { %v1617_v14 = vadd.f32 1.0, %v1615_v16  ;;  %v1616_v18 = vmul.f32 0.3275911, %v1614_v0  ;;  %v1640_v21 = vsub.f32 0.0, %v1614_v0  ;;  %v1641_v23 = vmul.f32 %v1639_v20, %v1613_v13 }
 0xf66   :  { %2186 = vrcp.f32 %v1617_v14  ;;  %v1618_v19 = vadd.f32 1.0, %v1616_v18  ;;  %v1642_v30 = vmul.f32 %v1640_v21, %v1614_v0  ;;  %v1643_v31 = vmul.f32 1.442695, %v1641_v23 }
 0xf68   :  { %2188 = vrcp.f32 %v1618_v19  ;;  %v1645_v36 = vmul.f32 1.442695, %v1642_v30 }
 0xf69   :  { %2190 = vpow2.f32 %v1643_v31 }
 0xf6a   :  { %2192 = vpow2.f32 %v1645_v36 }
 0xf70   :  { %v2187_v22 = vpop.eup %2186 }
 0xf71   :  { %v1621_v26 = vmul.f32 1.0614054, %v2187_v22 }
 0xf72   :  { %v2189_v27 = vpop.eup %2188 }
 0xf73   :  { %v1623_v28 = vadd.f32 -1.4531521, %v1621_v26  ;;  %v1622_v33 = vmul.f32 1.0614054, %v2189_v27  ;;  %v2191_v48 = vpop.eup %2190 }
 0xf74   :  { %v2193_v53 = vpop.eup %2192 }
 0xf75   :  { %v1625_v34 = vmul.f32 %v2187_v22, %v1623_v28  ;;  %v1624_v29 = vadd.f32 -1.4531521, %v1622_v33 }
 0xf77   :  { %v1627_v35 = vadd.f32 1.4214138, %v1625_v34  ;;  %v1626_v37 = vmul.f32 %v2189_v27, %v1624_v29 }
 0xf79   :  { %v1629_v38 = vmul.f32 %v2187_v22, %v1627_v35  ;;  %v1628_v40 = vadd.f32 1.4214138, %v1626_v37  ;;  %v1886_v37 = vld [vmem:[%s2747_s18] ss:$0 sm:$0xff] }
 0xf7b   :  { %v1631_v3 = vadd.f32 -0.28449672, %v1629_v38  ;;  %v1630_v41 = vmul.f32 %v2189_v27, %v1628_v40 }
 0xf7d   :  { %v1633_v43 = vmul.f32 %v2187_v22, %v1631_v3  ;;  %v1632_v44 = vadd.f32 -0.28449672, %v1630_v41  ;;  %v1887_v3 = vld [vmem:[%s2748_s19] ss:$0 sm:$0xff] }
 0xf7f   :  { %v1635_v45 = vadd.f32 0.2548296, %v1633_v43  ;;  %v1634_v46 = vmul.f32 %v2189_v27, %v1632_v44 }
 0xf81   :  { %v1637_v47 = vmul.f32 %v2187_v22, %v1635_v45  ;;  %v1636_v49 = vadd.f32 0.2548296, %v1634_v46 }
 0xf83   :  { %v1647_v50 = vmul.f32 %v2191_v48, %v1637_v47  ;;  %v1638_v52 = vmul.f32 %v2189_v27, %v1636_v49 }
 0xf85   :  { %v1649_v54 = vsub.f32 1.0, %v1647_v50  ;;  %v1648_v55 = vmul.f32 %v2193_v53, %v1638_v52 }
 0xf87   :  { %v1651_v56 = vmul.f32 %v1649_v54, %v1611_v42  ;;  %v1650_v57 = vsub.f32 1.0, %v1648_v55 }
 0xf89   :  { %v1653_v59 = vadd.f32 1.0, %v1651_v56  ;;  %v1652_v32 = vmul.f32 %v1650_v57, %v1612_v58 }
 0xf8b   :  { %v1654_v24 = vadd.f32 1.0, %v1652_v32  ;;  %v1655_v1 = vmul.f32 %v1653_v59, %v1605_v62 }
 0xf8d   :  { %v1656_v15 = vmul.f32 %v1654_v24, %v1606_v51 }
 0xf8f   :  { %v1659_v2 = vpack.c.bf16 %v1656_v15, %v1655_v1 }
 0xf91   :  { %2118 = vmatmul.mubr.bf16.vlgmr.msra.gmra.mrb[40].mxu0 %v1659_v2 }
0x1064   :  { %v1758_v5 = vpop.f32.mrb[40].mxu0 }
0x1065   :  { %v1765_v25 = vadd.f32 %v1758_v5, %v1657_v4  ;;  %v2119_v7 = vpop.f32.mrb[41].mxu0 }
0x1066   :  { %v1761_v8 = vpop.f32.mrb[42].mxu0 }
0x1067   :  { %1767 = vst.msk [vmem:[#allocation3] sm:$0xff] %vm96_vm0, %v1765_v25  ;;  %v1766_v10 = vadd.f32 %v1761_v8, %v1658_v6  ;;  %v2120_v12 = vpop.f32.mrb[43].mxu0 }
0x1069   :  { %1768 = vst.msk [vmem:[#allocation3 + $0x8] sm:$0xff] %vm96_vm0, %v1766_v10 }
0x106e   :  { %v1772_v63 = vld [vmem:[#allocation3] sm:$0xff] }
0x106f   :  { %v1781_v17 = vadd.f32 %v1885_v9, %v1772_v63 }
0x1070   :  { %v1773_v13 = vld [vmem:[#allocation3 + $0x8] sm:$0xff] }
0x1071   :  { %v1785_v11 = vadd.f32 %v1781_v17, %v2663_v60  ;;  %v1782_v16 = vadd.f32 %v1885_v9, %v1773_v13 }
0x1073   :  { %v1789_v0 = vsel %vm96_vm0, %v1785_v11, 0.0  ;;  %v1786_v14 = vadd.f32 %v1782_v16, %v2665_v61 }
0x1074   :  { %1790 = vadd.xlane.f32.xlu0 %v1789_v0 }
0x1075   :  { %v1792_v18 = vsel %vm96_vm0, %v1786_v14, 0.0 }
0x1076   :  { %1793 = vadd.xlane.f32.xlu1 %v1792_v18 }
0x1101   :  { %v1791_v19 = vpop.xlane.xlu0 %1790 }
0x1102   :  { %v1796_v20 = vmul.f32 0.03125, %v1791_v19 }
0x1103   :  { %v1794_v21 = vpop.xlane.xlu1 %1793 }
0x1104   :  { %v1798_v22 = vsub.f32 %v1785_v11, %v1796_v20  ;;  %v1797_v23 = vmul.f32 0.03125, %v1794_v21 }
0x1106   :  { %v1799_v26 = vsub.f32 %v1786_v14, %v1797_v23  ;;  %v1800_v27 = vmul.f32 %v1798_v22, %v1798_v22 }
0x1108   :  { %v1802_v28 = vsel %vm96_vm0, %v1800_v27, 0.0  ;;  %v1801_v30 = vmul.f32 %v1799_v26, %v1799_v26 }
0x1109   :  { %1803 = vadd.xlane.f32.xlu0 %v1802_v28 }
0x110a   :  { %v1805_v60 = vsel %vm96_vm0, %v1801_v30, 0.0 }
0x110b   :  { %1806 = vadd.xlane.f32.xlu1 %v1805_v60 }
0x1196   :  { %v1804_v31 = vpop.xlane.xlu0 %1803 }
0x1197   :  { %v1808_v61 = vmul.f32 0.03125, %v1804_v31 }
0x1198   :  { %v1807_v33 = vpop.xlane.xlu1 %1806 }
0x1199   :  { %v1810_v34 = vadd.f32 1e-12, %v1808_v61  ;;  %v1809_v29 = vmul.f32 0.03125, %v1807_v33 }
0x119b   :  { %2194 = vrsqrt.f32 %v1810_v34  ;;  %v1811_v35 = vadd.f32 1e-12, %v1809_v29 }
0x119d   :  { %2196 = vrsqrt.f32 %v1811_v35 }
0x11a5   :  { %v2195_v36 = vpop.eup %2194 }
0x11a6   :  { %v1814_v38 = vmul.f32 %v2195_v36, %v1798_v22 }
0x11a7   :  { %v2197_v40 = vpop.eup %2196 }
0x11a8   :  { %v1822_v41 = vmul.f32 %v1886_v37, %v1814_v38  ;;  %v1815_v43 = vmul.f32 %v2197_v40, %v1799_v26 }
0x11aa   :  { %v1830_v44 = vadd.f32 %v1887_v3, %v1822_v41  ;;  %v1823_v45 = vmul.f32 %v1886_v37, %v1815_v43 }
0x11ac   :  { %1832 = vst.msk [vmem:[%s2749_s20] sm:$0xff] %vm96_vm0, %v1830_v44  ;;  %v1831_v46 = vadd.f32 %v1887_v3, %v1823_v45 }
0x11ae   :  { %1833 = vst.msk [vmem:[%s2749_s20 + $0x8] sm:$0xff] %vm96_vm0, %v1831_v46 }

</bundles_post_ra>
